<compile_context>
chip_gen: v6e
topology: v6e:2x2x1
jax: 0.10.0
libtpu: 0.0.40
codegen_flags: <defaults>
</compile_context>

<pallas_src>
import functools
import math

import jax
import jax.numpy as jnp
from jax.experimental import pallas as pl
from jax.experimental.pallas import tpu as pltpu


_VMEM_BUDGET = 40 * 1024 * 1024   # tile-math budget (safe under v7x's 64 MiB)
_VMEM_LIMIT = 50 * 1024 * 1024    # scoped VMEM limit handed to Mosaic


def _pad_to(n, m):
    return -(-n // m) * m


def _invariant_spec(block_shape, index_map):
    """BlockSpec for grid-invariant inputs: single-buffered (constant index_map
    means a second pipeline buffer is pure VMEM waste)."""
    try:
        return pl.BlockSpec(block_shape, index_map, pipeline_mode=pl.Buffered(1))
    except TypeError:  # older BlockSpec without pipeline_mode
        return pl.BlockSpec(block_shape, index_map)


# ----------------------------- Pallas kernels ------------------------------


def linear_kernel(x_ref, w_ref, b_ref, o_ref):
    """o = x @ w + b   x:(tn,K)  w:(K,tv)  b:(1,tv)  o:(tn,tv)."""
    o_ref[...] = (jnp.dot(x_ref[...], w_ref[...],
                          preferred_element_type=jnp.float32)
                  + b_ref[...]).astype(o_ref.dtype)


def lstm_chunk_kernel(x_ref, h0_ref, c0_ref, wih_ref, whh_ref, b_ref,
                      y_ref, hT_ref, cT_ref, h_sc, c_sc, gx_sc,
                      *, t_total, guard_tail):
    """One LSTM layer, streamed over time chunks.

    x_ref   : (tc, Bp, Din_p)  raw layer input chunk (features lane-padded)
    h0/c0   : (Bp, Hp)         initial state (consumed only at grid step 0)
    wih_ref : (Din_p, 4*Hp)    packed input weight, gate order [i|f|g|o]
    whh_ref : (Hp, 4*Hp)       packed recurrent weight
    b_ref   : (1, 4*Hp)        b_ih + b_hh (zero in padded columns)
    y_ref   : (tc, Bp, Hp)     per-chunk hidden outputs
    hT/cT   : (Bp, Hp)         final state (written only at last grid step)
    h_sc/c_sc : VMEM (Bp, Hp) f32 — state carried across grid steps
    gx_sc   : VMEM (tc, Bp, 4*Hp) f32 — per-chunk input projection (never HBM)
    """
    tc, Bp, Din_p = x_ref.shape
    Hp = h0_ref.shape[-1]

    @pl.when(pl.program_id(0) == 0)
    def _init():
        h_sc[...] = h0_ref[...].astype(jnp.float32)
        c_sc[...] = c0_ref[...].astype(jnp.float32)

    # Fused input projection for the whole chunk: one big MXU matmul (bias
    # folded in), result stays in VMEM scratch — no gx HBM roundtrip.
    x_flat = x_ref[...].reshape(tc * Bp, Din_p)
    gx = jnp.dot(x_flat, wih_ref[...], preferred_element_type=jnp.float32)
    gx_sc[...] = (gx + b_ref[...]).reshape(tc, Bp, 4 * Hp)

    whh = whh_ref[...]                       # hoisted out of the time loop
    t_base = pl.program_id(0) * tc

    def step(t, carry):
        # Single fused gate matmul: (Bp,Hp) @ (Hp,4Hp) -> (Bp,4Hp)
        gates = gx_sc[t] + jnp.dot(h_sc[...], whh,
                                   preferred_element_type=jnp.float32)
        i_g = jax.nn.sigmoid(gates[:, 0 * Hp:1 * Hp])
        f_g = jax.nn.sigmoid(gates[:, 1 * Hp:2 * Hp])
        g_g = jnp.tanh(gates[:, 2 * Hp:3 * Hp])
        o_g = jax.nn.sigmoid(gates[:, 3 * Hp:4 * Hp])
        c_new = f_g * c_sc[...] + i_g * g_g
        h_new = o_g * jnp.tanh(c_new)
        y_ref[t] = h_new.astype(y_ref.dtype)
        if guard_tail:
            valid = (t_base + t) < t_total       # mask state updates past T
            c_sc[...] = jnp.where(valid, c_new, c_sc[...])
            h_sc[...] = jnp.where(valid, h_new, h_sc[...])
        else:
            c_sc[...] = c_new
            h_sc[...] = h_new
        return carry

    jax.lax.fori_loop(0, tc, step, 0, unroll=min(4, tc))

    @pl.when(pl.program_id(0) == pl.num_programs(0) - 1)
    def _finalize():
        hT_ref[...] = h_sc[...].astype(hT_ref.dtype)
        cT_ref[...] = c_sc[...].astype(cT_ref.dtype)


# ------------------------------ Pallas wrappers -----------------------------


def linear(x, w, b, *, tn_target=512, tv_target=1024):
    """Tiled o = x @ w + b.  x:(N,K)  w:(K,V)  b:(1,V)  -> (N,V)."""
    N, K = x.shape
    V = w.shape[1]
    tn = N if N <= tn_target else (tn_target // 8) * 8
    tv = V if V <= tv_target else (tv_target // 128) * 128
    Np = _pad_to(N, tn)
    Vp = _pad_to(V, tv)
    if Np != N:
        x = jnp.pad(x, ((0, Np - N), (0, 0)))
    if Vp != V:
        w = jnp.pad(w, ((0, 0), (0, Vp - V)))
        b = jnp.pad(b, ((0, 0), (0, Vp - V)))
    out = pl.pallas_call(
        linear_kernel,
        grid=(Np // tn, Vp // tv),
        in_specs=[pl.BlockSpec((tn, K), lambda i, j: (i, 0)),
                  pl.BlockSpec((K, tv), lambda i, j: (0, j)),
                  pl.BlockSpec((1, tv), lambda i, j: (0, j))],
        out_specs=pl.BlockSpec((tn, tv), lambda i, j: (i, j)),
        out_shape=jax.ShapeDtypeStruct((Np, Vp), x.dtype),
        compiler_params=pltpu.CompilerParams(
            dimension_semantics=("parallel", "parallel"),
            vmem_limit_bytes=_VMEM_LIMIT),
    )(x, w, b)
    return out[:N, :V] if (Np != N or Vp != V) else out


def _time_chunk(T, Bp, Din_p, Hp, requested=None):
    """Largest time chunk whose pipelined VMEM footprint fits the budget."""
    if requested is not None:
        return max(1, min(int(requested), T))
    # per-timestep bytes: x block (x2 buffers) + y block (x2) + gx scratch (x1)
    per_t = 4 * Bp * (2 * Din_p + 2 * Hp + 4 * Hp)
    # fixed bytes: weights (counted x2 for headroom), bias, states, scratch
    fixed = 4 * (2 * (Din_p + Hp) * 4 * Hp + 4 * Hp + 6 * Bp * Hp)
    avail = max(_VMEM_BUDGET - fixed, per_t)
    return int(max(1, min(T, avail // per_t)))


def lstm_layer(x, h0, c0, wih, whh, b, *, time_chunk=None):
    """One LSTM layer.

    x     : (T, Bp, Din_p)   Bp multiple of 8, Din_p multiple of 128
    h0/c0 : (Bp, Hp)         Hp multiple of 128
    wih   : (Din_p, 4Hp), whh : (Hp, 4Hp), b : (1, 4Hp) — gate order [i|f|g|o]
    """
    T, Bp, Din_p = x.shape
    Hp = h0.shape[-1]

    tc = _time_chunk(T, Bp, Din_p, Hp, requested=time_chunk)
    n_chunks = -(-T // tc)
    Tp = n_chunks * tc
    guard_tail = (Tp != T)
    if guard_tail:
        x = jnp.pad(x, ((0, Tp - T), (0, 0), (0, 0)))

    kernel = functools.partial(lstm_chunk_kernel,
                               t_total=T, guard_tail=guard_tail)
    y, hT, cT = pl.pallas_call(
        kernel,
        grid=(n_chunks,),
        in_specs=[pl.BlockSpec((tc, Bp, Din_p), lambda t: (t, 0, 0)),
                  _invariant_spec((Bp, Hp), lambda t: (0, 0)),
                  _invariant_spec((Bp, Hp), lambda t: (0, 0)),
                  _invariant_spec((Din_p, 4 * Hp), lambda t: (0, 0)),
                  _invariant_spec((Hp, 4 * Hp), lambda t: (0, 0)),
                  _invariant_spec((1, 4 * Hp), lambda t: (0, 0))],
        out_specs=[pl.BlockSpec((tc, Bp, Hp), lambda t: (t, 0, 0)),
                   pl.BlockSpec((Bp, Hp), lambda t: (0, 0)),
                   pl.BlockSpec((Bp, Hp), lambda t: (0, 0))],
        out_shape=(jax.ShapeDtypeStruct((Tp, Bp, Hp), x.dtype),
                   jax.ShapeDtypeStruct((Bp, Hp), x.dtype),
                   jax.ShapeDtypeStruct((Bp, Hp), x.dtype)),
        scratch_shapes=[pltpu.VMEM((Bp, Hp), jnp.float32),
                        pltpu.VMEM((Bp, Hp), jnp.float32),
                        pltpu.VMEM((tc, Bp, 4 * Hp), jnp.float32)],
        compiler_params=pltpu.CompilerParams(
            dimension_semantics=("arbitrary",),
            vmem_limit_bytes=_VMEM_LIMIT),
    )(x, h0, c0, wih, whh, b)
    if guard_tail:
        y = y[:T]
    return y, hT, cT


# ------------------------------ Model / params ------------------------------


def init_params(key, ntoken, ninp, nhid, nlayers):
    """Deterministic params mirroring RNNModel.__init__ / init_weights, packed
    for the TPU kernels (lane-padded, gate-fused, pre-transposed)."""
    ks = jax.random.split(key, 2 + 4 * nlayers)
    initrange = 0.1
    Hp = _pad_to(nhid, 128)
    Vp = _pad_to(ntoken, 128)

    enc_w = jax.random.uniform(ks[0], (ntoken, ninp), jnp.float32,
                               -initrange, initrange)
    dec_w = jax.random.uniform(ks[1], (ntoken, nhid), jnp.float32,
                               -initrange, initrange)
    dec_wp = jnp.zeros((Hp, Vp), jnp.float32).at[:nhid, :ntoken].set(dec_w.T)
    dec_bp = jnp.zeros((1, Vp), jnp.float32)

    params = {"encoder_w": enc_w, "decoder_w": dec_wp, "decoder_b": dec_bp,
              "layers": []}
    for l in range(nlayers):
        din = ninp if l == 0 else nhid
        Din_p = _pad_to(ninp, 128) if l == 0 else Hp
        h = nhid                      # last layer also nhid (tie_weights=False)
        bound = 1.0 / math.sqrt(h)
        kl = ks[2 + 4 * l: 2 + 4 * (l + 1)]
        w_ih = jax.random.uniform(kl[0], (4 * h, din), jnp.float32, -bound, bound)
        w_hh = jax.random.uniform(kl[1], (4 * h, h), jnp.float32, -bound, bound)
        b_ih = jax.random.uniform(kl[2], (4 * h,), jnp.float32, -bound, bound)
        b_hh = jax.random.uniform(kl[3], (4 * h,), jnp.float32, -bound, bound)
        bsum = b_ih + b_hh
        # Pack per-gate blocks into lane-padded [i|f|g|o] columns; padded
        # rows/cols stay zero so padded hidden columns remain exactly zero.
        wih_p = jnp.zeros((Din_p, 4 * Hp), jnp.float32)
        whh_p = jnp.zeros((Hp, 4 * Hp), jnp.float32)
        b_p = jnp.zeros((1, 4 * Hp), jnp.float32)
        for k in range(4):
            wih_p = wih_p.at[:din, k * Hp:k * Hp + h].set(
                w_ih[k * h:(k + 1) * h, :].T)
            whh_p = whh_p.at[:h, k * Hp:k * Hp + h].set(
                w_hh[k * h:(k + 1) * h, :].T)
            b_p = b_p.at[0, k * Hp:k * Hp + h].set(bsum[k * h:(k + 1) * h])
        params["layers"].append({"wih": wih_p, "whh": whh_p, "b": b_p})
    return params


@functools.partial(jax.jit, static_argnames=("decode", "time_chunk"))
def rnn_model_forward(params, tokens, hidden, decode=True, time_chunk=None):
    """Eval-mode forward of RNNModel (LSTM). tokens: (T, B) int32."""
    T, B = tokens.shape
    ntoken, ninp = params["encoder_w"].shape
    Din_p0 = params["layers"][0]["wih"].shape[0]
    Hp = params["layers"][0]["whh"].shape[0]

    # embedded_dropout / lockdrop are identity in eval mode.
    emb = jnp.take(params["encoder_w"], tokens, axis=0)           # (T, B, ninp)

    # Pad batch to a multiple of 8 sublanes, features to a multiple of 128 lanes.
    Bp = _pad_to(B, 8)
    x = jnp.zeros((T, Bp, Din_p0), jnp.float32).at[:, :B, :ninp].set(emb)

    new_hidden = []
    for l, lp in enumerate(params["layers"]):
        h0, c0 = hidden[l]                                        # (1, B, H)
        H = h0.shape[-1]
        h0p = jnp.zeros((Bp, Hp), jnp.float32).at[:B, :H].set(h0[0])
        c0p = jnp.zeros((Bp, Hp), jnp.float32).at[:B, :H].set(c0[0])
        y, hT, cT = lstm_layer(x, h0p, c0p, lp["wih"], lp["whh"], lp["b"],
                               time_chunk=time_chunk)
        new_hidden.append((hT[:B, :H][None, :, :], cT[:B, :H][None, :, :]))
        x = y                                                     # (T, Bp, Hp)

    output = x[:, :B, :]                                          # (T, B, Hp)
    flat = output.reshape(T * B, Hp)
    if decode:
        result = linear(flat, params["decoder_w"], params["decoder_b"])
        result = result[:, :ntoken]
    else:
        H_last = hidden[-1][0].shape[-1]
        result = flat[:, :H_last]
    return result, new_hidden


# ----------------------------------- main -----------------------------------

if __name__ == "__main__":
    ntoken, ninp, nhid, nlayers = 64, 32, 32, 2
    T, B = 8, 2

    key = jax.random.PRNGKey(0)
    params = init_params(key, ntoken, ninp, nhid, nlayers)

    tok_key = jax.random.fold_in(key, 123)
    tokens = jax.random.randint(tok_key, (T, B), 0, ntoken, dtype=jnp.int32)

    # init_hidden(bsz): zeros of shape (1, B, nhid) per layer (tie_weights=False)
    hidden = [(jnp.zeros((1, B, nhid), jnp.float32),
               jnp.zeros((1, B, nhid), jnp.float32)) for _ in range(nlayers)]

    # time_chunk=3 exercises the cdiv grid + tail-guard path (T=8 -> Tp=9).
    result, new_hidden = rnn_model_forward(params, tokens, hidden,
                                           decode=True, time_chunk=3)
    result = jax.block_until_ready(result)
    for h, c in new_hidden:
        jax.block_until_ready(h)
        jax.block_until_ready(c)

    assert result.shape == (T * B, ntoken)
    assert all(h.shape == (1, B, nhid) and c.shape == (1, B, nhid)
               for h, c in new_hidden)
    assert bool(jnp.all(jnp.isfinite(result)))

    print("KERNEL_OK")
</pallas_src>

<mosaic_0001>
module attributes {stable_mosaic.version = 11 : i64} {
  func.func @linear_kernel(%arg0: i32, %arg1: i32, %arg2: memref<16x128xf32, #tpu.memory_space<vmem>>, %arg3: memref<128x128xf32, #tpu.memory_space<vmem>>, %arg4: memref<1x128xf32, #tpu.memory_space<vmem>>, %arg5: memref<16x128xf32, #tpu.memory_space<vmem>>) attributes {dimension_semantics = [#tpu.dimension_semantics<parallel>, #tpu.dimension_semantics<parallel>], iteration_bounds = array<i64: 1, 1>, scalar_prefetch = 0 : i64, scratch_operands = 0 : i64, tpu.core_type = #tpu.core_type<tc>, window_params = [{transform_indices = @transform_0, window_bounds = array<i64: 16, 128>}, {transform_indices = @transform_1, window_bounds = array<i64: 128, 128>}, {transform_indices = @transform_2, window_bounds = array<i64: 1, 128>}, {transform_indices = @transform_3, window_bounds = array<i64: 16, 128>}]} {
    %c0 = arith.constant 0 : index
    %c0_0 = arith.constant 0 : index
    %0 = vector.load %arg2[%c0, %c0_0] : memref<16x128xf32, #tpu.memory_space<vmem>>, vector<16x128xf32>
    %c0_1 = arith.constant 0 : index
    %c0_2 = arith.constant 0 : index
    %1 = vector.load %arg3[%c0_1, %c0_2] : memref<128x128xf32, #tpu.memory_space<vmem>>, vector<128x128xf32>
    %cst = arith.constant dense<0.000000e+00> : vector<16x128xf32>
    %2 = tpu.matmul %0, %1, %cst {dimension_numbers = #tpu.dot_dimension_numbers<[1], [0], [0], [1], [0, 0, 1, 1], [], []>} : vector<16x128xf32>, vector<128x128xf32>, vector<16x128xf32> -> vector<16x128xf32>
    %c0_3 = arith.constant 0 : index
    %c0_4 = arith.constant 0 : index
    %3 = vector.load %arg4[%c0_3, %c0_4] : memref<1x128xf32, #tpu.memory_space<vmem>>, vector<1x128xf32>
    %4 = vector.broadcast %3 : vector<1x128xf32> to vector<16x128xf32>
    %5 = arith.addf %2, %4 : vector<16x128xf32>
    %c0_5 = arith.constant 0 : index
    %c0_6 = arith.constant 0 : index
    %6 = vector.load %arg5[%c0_5, %c0_6] : memref<16x128xf32, #tpu.memory_space<vmem>>, vector<16x128xf32>
    tpu.vector_store %arg5[%c0_5, %c0_6], %5 {strides = array<i32>} : memref<16x128xf32, #tpu.memory_space<vmem>>, vector<16x128xf32>,
    return
  }
  func.func @transform_0(%arg0: i32, %arg1: i32) -> (i32, i32) {
    %c0_i32 = arith.constant 0 : i32
    %c0_i32_0 = arith.constant 0 : i32
    return %arg0, %c0_i32 : i32, i32
  }
  func.func @transform_1(%arg0: i32, %arg1: i32) -> (i32, i32) {
    %c0_i32 = arith.constant 0 : i32
    %c0_i32_0 = arith.constant 0 : i32
    return %c0_i32, %arg1 : i32, i32
  }
  func.func @transform_2(%arg0: i32, %arg1: i32) -> (i32, i32) {
    %c0_i32 = arith.constant 0 : i32
    %c0_i32_0 = arith.constant 0 : i32
    return %c0_i32, %arg1 : i32, i32
  }
  func.func @transform_3(%arg0: i32, %arg1: i32) -> (i32, i32) {
    %c0_i32 = arith.constant 0 : i32
    return %arg0, %arg1 : i32, i32
  }
}

module attributes {stable_mosaic.version = 11 : i64} {
  func.func @lstm_chunk_kernel(%arg0: i32, %arg1: memref<3x8x128xf32, #tpu.memory_space<vmem>>, %arg2: memref<8x128xf32, #tpu.memory_space<vmem>>, %arg3: memref<8x128xf32, #tpu.memory_space<vmem>>, %arg4: memref<128x512xf32, #tpu.memory_space<vmem>>, %arg5: memref<128x512xf32, #tpu.memory_space<vmem>>, %arg6: memref<1x512xf32, #tpu.memory_space<vmem>>, %arg7: memref<3x8x128xf32, #tpu.memory_space<vmem>>, %arg8: memref<8x128xf32, #tpu.memory_space<vmem>>, %arg9: memref<8x128xf32, #tpu.memory_space<vmem>>, %arg10: memref<8x128xf32, #tpu.memory_space<vmem>>, %arg11: memref<8x128xf32, #tpu.memory_space<vmem>>, %arg12: memref<3x8x512xf32, #tpu.memory_space<vmem>>) attributes {dimension_semantics = [#tpu.dimension_semantics<arbitrary>], iteration_bounds = array<i64: 3>, scalar_prefetch = 0 : i64, scratch_operands = 3 : i64, tpu.core_type = #tpu.core_type<tc>, window_params = [{transform_indices = @transform_0, window_bounds = array<i64: 3, 8, 128>}, {pipeline_mode = #tpu.pipeline_mode<synchronous>, transform_indices = @transform_1, window_bounds = array<i64: 8, 128>}, {pipeline_mode = #tpu.pipeline_mode<synchronous>, transform_indices = @transform_2, window_bounds = array<i64: 8, 128>}, {pipeline_mode = #tpu.pipeline_mode<synchronous>, transform_indices = @transform_3, window_bounds = array<i64: 128, 512>}, {pipeline_mode = #tpu.pipeline_mode<synchronous>, transform_indices = @transform_4, window_bounds = array<i64: 128, 512>}, {pipeline_mode = #tpu.pipeline_mode<synchronous>, transform_indices = @transform_5, window_bounds = array<i64: 1, 512>}, {transform_indices = @transform_6, window_bounds = array<i64: 3, 8, 128>}, {pipeline_mode = #tpu.pipeline_mode<synchronous>, transform_indices = @transform_7, window_bounds = array<i64: 8, 128>}, {pipeline_mode = #tpu.pipeline_mode<synchronous>, transform_indices = @transform_8, window_bounds = array<i64: 8, 128>}]} {
    %c0_i32 = arith.constant 0 : i32
    %0 = arith.cmpi eq, %arg0, %c0_i32 : i32
    %1 = arith.extui %0 : i1 to i32
    %c0_i32_0 = arith.constant 0 : i32
    %2 = arith.cmpi ne, %1, %c0_i32_0 : i32
    scf.if %2 {
      %c0_78 = arith.constant 0 : index
      %c0_79 = arith.constant 0 : index
      %149 = vector.load %arg2[%c0_78, %c0_79] : memref<8x128xf32, #tpu.memory_space<vmem>>, vector<8x128xf32>
      %c0_80 = arith.constant 0 : index
      %c0_81 = arith.constant 0 : index
      %150 = vector.load %arg10[%c0_80, %c0_81] : memref<8x128xf32, #tpu.memory_space<vmem>>, vector<8x128xf32>
      tpu.vector_store %arg10[%c0_80, %c0_81], %149 {strides = array<i32>} : memref<8x128xf32, #tpu.memory_space<vmem>>, vector<8x128xf32>,
      %c0_82 = arith.constant 0 : index
      %c0_83 = arith.constant 0 : index
      %151 = vector.load %arg3[%c0_82, %c0_83] : memref<8x128xf32, #tpu.memory_space<vmem>>, vector<8x128xf32>
      %c0_84 = arith.constant 0 : index
      %c0_85 = arith.constant 0 : index
      %152 = vector.load %arg11[%c0_84, %c0_85] : memref<8x128xf32, #tpu.memory_space<vmem>>, vector<8x128xf32>
      tpu.vector_store %arg11[%c0_84, %c0_85], %151 {strides = array<i32>} : memref<8x128xf32, #tpu.memory_space<vmem>>, vector<8x128xf32>,
    } else {
    }
    %c0 = arith.constant 0 : index
    %c0_1 = arith.constant 0 : index
    %c0_2 = arith.constant 0 : index
    %3 = vector.load %arg1[%c0, %c0_1, %c0_2] : memref<3x8x128xf32, #tpu.memory_space<vmem>>, vector<3x8x128xf32>
    %4 = vector.shape_cast %3 : vector<3x8x128xf32> to vector<24x128xf32>
    %c0_3 = arith.constant 0 : index
    %c0_4 = arith.constant 0 : index
    %5 = vector.load %arg4[%c0_3, %c0_4] : memref<128x512xf32, #tpu.memory_space<vmem>>, vector<128x512xf32>
    %cst = arith.constant dense<0.000000e+00> : vector<24x512xf32>
    %6 = tpu.matmul %4, %5, %cst {dimension_numbers = #tpu.dot_dimension_numbers<[1], [0], [0], [1], [0, 0, 1, 1], [], []>} : vector<24x128xf32>, vector<128x512xf32>, vector<24x512xf32> -> vector<24x512xf32>
    %c0_5 = arith.constant 0 : index
    %c0_6 = arith.constant 0 : index
    %7 = vector.load %arg6[%c0_5, %c0_6] : memref<1x512xf32, #tpu.memory_space<vmem>>, vector<1x512xf32>
    %8 = vector.broadcast %7 : vector<1x512xf32> to vector<24x512xf32>
    %9 = arith.addf %6, %8 : vector<24x512xf32>
    %10 = vector.shape_cast %9 : vector<24x512xf32> to vector<3x8x512xf32>
    %c0_7 = arith.constant 0 : index
    %c0_8 = arith.constant 0 : index
    %c0_9 = arith.constant 0 : index
    %11 = vector.load %arg12[%c0_7, %c0_8, %c0_9] : memref<3x8x512xf32, #tpu.memory_space<vmem>>, vector<3x8x512xf32>
    tpu.vector_store %arg12[%c0_7, %c0_8, %c0_9], %10 {strides = array<i32>} : memref<3x8x512xf32, #tpu.memory_space<vmem>>, vector<3x8x512xf32>,
    %c0_10 = arith.constant 0 : index
    %c0_11 = arith.constant 0 : index
    %12 = vector.load %arg5[%c0_10, %c0_11] : memref<128x512xf32, #tpu.memory_space<vmem>>, vector<128x512xf32>
    %c3_i32 = arith.constant 3 : i32
    %13 = arith.muli %arg0, %c3_i32 : i32
    %c0_i32_12 = arith.constant 0 : i32
    %14 = arith.index_cast %c0_i32_12 : i32 to index
    %c0_13 = arith.constant 0 : index
    %c0_14 = arith.constant 0 : index
    %15 = vector.load %arg12[%14, %c0_13, %c0_14] : memref<3x8x512xf32, #tpu.memory_space<vmem>>, vector<1x8x512xf32>
    %16 = vector.shape_cast %15 : vector<1x8x512xf32> to vector<8x512xf32>
    %c0_15 = arith.constant 0 : index
    %c0_16 = arith.constant 0 : index
    %17 = vector.load %arg10[%c0_15, %c0_16] : memref<8x128xf32, #tpu.memory_space<vmem>>, vector<8x128xf32>
    %cst_17 = arith.constant dense<0.000000e+00> : vector<8x512xf32>
    %18 = tpu.matmul %17, %12, %cst_17 {dimension_numbers = #tpu.dot_dimension_numbers<[1], [0], [0], [1], [0, 0, 1, 1], [], []>} : vector<8x128xf32>, vector<128x512xf32>, vector<8x512xf32> -> vector<8x512xf32>
    %19 = arith.addf %16, %18 : vector<8x512xf32>
    %20 = vector.extract_strided_slice %19 {offsets = [0, 0], sizes = [8, 128], strides = [1, 1]} : vector<8x512xf32> to vector<8x128xf32>
    %21 = arith.negf %20 : vector<8x128xf32>
    %22 = math.exp %21 : vector<8x128xf32>
    %cst_18 = arith.constant 1.000000e+00 : f32
    %23 = vector.broadcast %cst_18 : f32 to vector<8x128xf32>
    %24 = arith.addf %23, %22 : vector<8x128xf32>
    %25 = arith.divf %23, %24 : vector<8x128xf32>
    %26 = vector.extract_strided_slice %19 {offsets = [0, 128], sizes = [8, 128], strides = [1, 1]} : vector<8x512xf32> to vector<8x128xf32>
    %27 = arith.negf %26 : vector<8x128xf32>
    %28 = math.exp %27 : vector<8x128xf32>
    %cst_19 = arith.constant 1.000000e+00 : f32
    %29 = vector.broadcast %cst_19 : f32 to vector<8x128xf32>
    %30 = arith.addf %29, %28 : vector<8x128xf32>
    %31 = arith.divf %29, %30 : vector<8x128xf32>
    %32 = vector.extract_strided_slice %19 {offsets = [0, 256], sizes = [8, 128], strides = [1, 1]} : vector<8x512xf32> to vector<8x128xf32>
    %33 = math.tanh %32 : vector<8x128xf32>
    %34 = vector.extract_strided_slice %19 {offsets = [0, 384], sizes = [8, 128], strides = [1, 1]} : vector<8x512xf32> to vector<8x128xf32>
    %35 = arith.negf %34 : vector<8x128xf32>
    %36 = math.exp %35 : vector<8x128xf32>
    %cst_20 = arith.constant 1.000000e+00 : f32
    %37 = vector.broadcast %cst_20 : f32 to vector<8x128xf32>
    %38 = arith.addf %37, %36 : vector<8x128xf32>
    %39 = arith.divf %37, %38 : vector<8x128xf32>
    %c0_21 = arith.constant 0 : index
    %c0_22 = arith.constant 0 : index
    %40 = vector.load %arg11[%c0_21, %c0_22] : memref<8x128xf32, #tpu.memory_space<vmem>>, vector<8x128xf32>
    %41 = arith.mulf %31, %40 : vector<8x128xf32>
    %42 = arith.mulf %25, %33 : vector<8x128xf32>
    %43 = arith.addf %41, %42 : vector<8x128xf32>
    %44 = math.tanh %43 : vector<8x128xf32>
    %45 = arith.mulf %39, %44 : vector<8x128xf32>
    %46 = arith.index_cast %c0_i32_12 : i32 to index
    %c0_23 = arith.constant 0 : index
    %c0_24 = arith.constant 0 : index
    %47 = vector.load %arg7[%46, %c0_23, %c0_24] : memref<3x8x128xf32, #tpu.memory_space<vmem>>, vector<1x8x128xf32>
    %48 = vector.shape_cast %47 : vector<1x8x128xf32> to vector<8x128xf32>
    %49 = vector.shape_cast %45 : vector<8x128xf32> to vector<1x8x128xf32>
    tpu.vector_store %arg7[%46, %c0_23, %c0_24], %49 {strides = array<i32>} : memref<3x8x128xf32, #tpu.memory_space<vmem>>, vector<1x8x128xf32>,
    %50 = arith.addi %13, %c0_i32_12 : i32
    %c8_i32 = arith.constant 8 : i32
    %51 = arith.cmpi slt, %50, %c8_i32 : i32
    %c0_25 = arith.constant 0 : index
    %c0_26 = arith.constant 0 : index
    %52 = vector.load %arg11[%c0_25, %c0_26] : memref<8x128xf32, #tpu.memory_space<vmem>>, vector<8x128xf32>
    %53 = arith.select %51, %43, %52 : vector<8x128xf32>
    %c0_27 = arith.constant 0 : index
    %c0_28 = arith.constant 0 : index
    %54 = vector.load %arg11[%c0_27, %c0_28] : memref<8x128xf32, #tpu.memory_space<vmem>>, vector<8x128xf32>
    tpu.vector_store %arg11[%c0_27, %c0_28], %53 {strides = array<i32>} : memref<8x128xf32, #tpu.memory_space<vmem>>, vector<8x128xf32>,
    %c0_29 = arith.constant 0 : index
    %c0_30 = arith.constant 0 : index
    %55 = vector.load %arg10[%c0_29, %c0_30] : memref<8x128xf32, #tpu.memory_space<vmem>>, vector<8x128xf32>
    %56 = arith.select %51, %45, %55 : vector<8x128xf32>
    %c0_31 = arith.constant 0 : index
    %c0_32 = arith.constant 0 : index
    %57 = vector.load %arg10[%c0_31, %c0_32] : memref<8x128xf32, #tpu.memory_space<vmem>>, vector<8x128xf32>
    tpu.vector_store %arg10[%c0_31, %c0_32], %56 {strides = array<i32>} : memref<8x128xf32, #tpu.memory_space<vmem>>, vector<8x128xf32>,
    %c1_i32 = arith.constant 1 : i32
    %58 = arith.index_cast %c1_i32 : i32 to index
    %c0_33 = arith.constant 0 : index
    %c0_34 = arith.constant 0 : index
    %59 = vector.load %arg12[%58, %c0_33, %c0_34] : memref<3x8x512xf32, #tpu.memory_space<vmem>>, vector<1x8x512xf32>
    %60 = vector.shape_cast %59 : vector<1x8x512xf32> to vector<8x512xf32>
    %c0_35 = arith.constant 0 : index
    %c0_36 = arith.constant 0 : index
    %61 = vector.load %arg10[%c0_35, %c0_36] : memref<8x128xf32, #tpu.memory_space<vmem>>, vector<8x128xf32>
    %cst_37 = arith.constant dense<0.000000e+00> : vector<8x512xf32>
    %62 = tpu.matmul %61, %12, %cst_37 {dimension_numbers = #tpu.dot_dimension_numbers<[1], [0], [0], [1], [0, 0, 1, 1], [], []>} : vector<8x128xf32>, vector<128x512xf32>, vector<8x512xf32> -> vector<8x512xf32>
    %63 = arith.addf %60, %62 : vector<8x512xf32>
    %64 = vector.extract_strided_slice %63 {offsets = [0, 0], sizes = [8, 128], strides = [1, 1]} : vector<8x512xf32> to vector<8x128xf32>
    %65 = arith.negf %64 : vector<8x128xf32>
    %66 = math.exp %65 : vector<8x128xf32>
    %cst_38 = arith.constant 1.000000e+00 : f32
    %67 = vector.broadcast %cst_38 : f32 to vector<8x128xf32>
    %68 = arith.addf %67, %66 : vector<8x128xf32>
    %69 = arith.divf %67, %68 : vector<8x128xf32>
    %70 = vector.extract_strided_slice %63 {offsets = [0, 128], sizes = [8, 128], strides = [1, 1]} : vector<8x512xf32> to vector<8x128xf32>
    %71 = arith.negf %70 : vector<8x128xf32>
    %72 = math.exp %71 : vector<8x128xf32>
    %cst_39 = arith.constant 1.000000e+00 : f32
    %73 = vector.broadcast %cst_39 : f32 to vector<8x128xf32>
    %74 = arith.addf %73, %72 : vector<8x128xf32>
    %75 = arith.divf %73, %74 : vector<8x128xf32>
    %76 = vector.extract_strided_slice %63 {offsets = [0, 256], sizes = [8, 128], strides = [1, 1]} : vector<8x512xf32> to vector<8x128xf32>
    %77 = math.tanh %76 : vector<8x128xf32>
    %78 = vector.extract_strided_slice %63 {offsets = [0, 384], sizes = [8, 128], strides = [1, 1]} : vector<8x512xf32> to vector<8x128xf32>
    %79 = arith.negf %78 : vector<8x128xf32>
    %80 = math.exp %79 : vector<8x128xf32>
    %cst_40 = arith.constant 1.000000e+00 : f32
    %81 = vector.broadcast %cst_40 : f32 to vector<8x128xf32>
    %82 = arith.addf %81, %80 : vector<8x128xf32>
    %83 = arith.divf %81, %82 : vector<8x128xf32>
    %c0_41 = arith.constant 0 : index
    %c0_42 = arith.constant 0 : index
    %84 = vector.load %arg11[%c0_41, %c0_42] : memref<8x128xf32, #tpu.memory_space<vmem>>, vector<8x128xf32>
    %85 = arith.mulf %75, %84 : vector<8x128xf32>
    %86 = arith.mulf %69, %77 : vector<8x128xf32>
    %87 = arith.addf %85, %86 : vector<8x128xf32>
    %88 = math.tanh %87 : vector<8x128xf32>
    %89 = arith.mulf %83, %88 : vector<8x128xf32>
    %90 = arith.index_cast %c1_i32 : i32 to index
    %c0_43 = arith.constant 0 : index
    %c0_44 = arith.constant 0 : index
    %91 = vector.load %arg7[%90, %c0_43, %c0_44] : memref<3x8x128xf32, #tpu.memory_space<vmem>>, vector<1x8x128xf32>
    %92 = vector.shape_cast %91 : vector<1x8x128xf32> to vector<8x128xf32>
    %93 = vector.shape_cast %89 : vector<8x128xf32> to vector<1x8x128xf32>
    tpu.vector_store %arg7[%90, %c0_43, %c0_44], %93 {strides = array<i32>} : memref<3x8x128xf32, #tpu.memory_space<vmem>>, vector<1x8x128xf32>,
    %94 = arith.addi %13, %c1_i32 : i32
    %c8_i32_45 = arith.constant 8 : i32
    %95 = arith.cmpi slt, %94, %c8_i32_45 : i32
    %c0_46 = arith.constant 0 : index
    %c0_47 = arith.constant 0 : index
    %96 = vector.load %arg11[%c0_46, %c0_47] : memref<8x128xf32, #tpu.memory_space<vmem>>, vector<8x128xf32>
    %97 = arith.select %95, %87, %96 : vector<8x128xf32>
    %c0_48 = arith.constant 0 : index
    %c0_49 = arith.constant 0 : index
    %98 = vector.load %arg11[%c0_48, %c0_49] : memref<8x128xf32, #tpu.memory_space<vmem>>, vector<8x128xf32>
    tpu.vector_store %arg11[%c0_48, %c0_49], %97 {strides = array<i32>} : memref<8x128xf32, #tpu.memory_space<vmem>>, vector<8x128xf32>,
    %c0_50 = arith.constant 0 : index
    %c0_51 = arith.constant 0 : index
    %99 = vector.load %arg10[%c0_50, %c0_51] : memref<8x128xf32, #tpu.memory_space<vmem>>, vector<8x128xf32>
    %100 = arith.select %95, %89, %99 : vector<8x128xf32>
    %c0_52 = arith.constant 0 : index
    %c0_53 = arith.constant 0 : index
    %101 = vector.load %arg10[%c0_52, %c0_53] : memref<8x128xf32, #tpu.memory_space<vmem>>, vector<8x128xf32>
    tpu.vector_store %arg10[%c0_52, %c0_53], %100 {strides = array<i32>} : memref<8x128xf32, #tpu.memory_space<vmem>>, vector<8x128xf32>,
    %c2_i32 = arith.constant 2 : i32
    %102 = arith.index_cast %c2_i32 : i32 to index
    %c0_54 = arith.constant 0 : index
    %c0_55 = arith.constant 0 : index
    %103 = vector.load %arg12[%102, %c0_54, %c0_55] : memref<3x8x512xf32, #tpu.memory_space<vmem>>, vector<1x8x512xf32>
    %104 = vector.shape_cast %103 : vector<1x8x512xf32> to vector<8x512xf32>
    %c0_56 = arith.constant 0 : index
    %c0_57 = arith.constant 0 : index
    %105 = vector.load %arg10[%c0_56, %c0_57] : memref<8x128xf32, #tpu.memory_space<vmem>>, vector<8x128xf32>
    %cst_58 = arith.constant dense<0.000000e+00> : vector<8x512xf32>
    %106 = tpu.matmul %105, %12, %cst_58 {dimension_numbers = #tpu.dot_dimension_numbers<[1], [0], [0], [1], [0, 0, 1, 1], [], []>} : vector<8x128xf32>, vector<128x512xf32>, vector<8x512xf32> -> vector<8x512xf32>
    %107 = arith.addf %104, %106 : vector<8x512xf32>
    %108 = vector.extract_strided_slice %107 {offsets = [0, 0], sizes = [8, 128], strides = [1, 1]} : vector<8x512xf32> to vector<8x128xf32>
    %109 = arith.negf %108 : vector<8x128xf32>
    %110 = math.exp %109 : vector<8x128xf32>
    %cst_59 = arith.constant 1.000000e+00 : f32
    %111 = vector.broadcast %cst_59 : f32 to vector<8x128xf32>
    %112 = arith.addf %111, %110 : vector<8x128xf32>
    %113 = arith.divf %111, %112 : vector<8x128xf32>
    %114 = vector.extract_strided_slice %107 {offsets = [0, 128], sizes = [8, 128], strides = [1, 1]} : vector<8x512xf32> to vector<8x128xf32>
    %115 = arith.negf %114 : vector<8x128xf32>
    %116 = math.exp %115 : vector<8x128xf32>
    %cst_60 = arith.constant 1.000000e+00 : f32
    %117 = vector.broadcast %cst_60 : f32 to vector<8x128xf32>
    %118 = arith.addf %117, %116 : vector<8x128xf32>
    %119 = arith.divf %117, %118 : vector<8x128xf32>
    %120 = vector.extract_strided_slice %107 {offsets = [0, 256], sizes = [8, 128], strides = [1, 1]} : vector<8x512xf32> to vector<8x128xf32>
    %121 = math.tanh %120 : vector<8x128xf32>
    %122 = vector.extract_strided_slice %107 {offsets = [0, 384], sizes = [8, 128], strides = [1, 1]} : vector<8x512xf32> to vector<8x128xf32>
    %123 = arith.negf %122 : vector<8x128xf32>
    %124 = math.exp %123 : vector<8x128xf32>
    %cst_61 = arith.constant 1.000000e+00 : f32
    %125 = vector.broadcast %cst_61 : f32 to vector<8x128xf32>
    %126 = arith.addf %125, %124 : vector<8x128xf32>
    %127 = arith.divf %125, %126 : vector<8x128xf32>
    %c0_62 = arith.constant 0 : index
    %c0_63 = arith.constant 0 : index
    %128 = vector.load %arg11[%c0_62, %c0_63] : memref<8x128xf32, #tpu.memory_space<vmem>>, vector<8x128xf32>
    %129 = arith.mulf %119, %128 : vector<8x128xf32>
    %130 = arith.mulf %113, %121 : vector<8x128xf32>
    %131 = arith.addf %129, %130 : vector<8x128xf32>
    %132 = math.tanh %131 : vector<8x128xf32>
    %133 = arith.mulf %127, %132 : vector<8x128xf32>
    %134 = arith.index_cast %c2_i32 : i32 to index
    %c0_64 = arith.constant 0 : index
    %c0_65 = arith.constant 0 : index
    %135 = vector.load %arg7[%134, %c0_64, %c0_65] : memref<3x8x128xf32, #tpu.memory_space<vmem>>, vector<1x8x128xf32>
    %136 = vector.shape_cast %135 : vector<1x8x128xf32> to vector<8x128xf32>
    %137 = vector.shape_cast %133 : vector<8x128xf32> to vector<1x8x128xf32>
    tpu.vector_store %arg7[%134, %c0_64, %c0_65], %137 {strides = array<i32>} : memref<3x8x128xf32, #tpu.memory_space<vmem>>, vector<1x8x128xf32>,
    %138 = arith.addi %13, %c2_i32 : i32
    %c8_i32_66 = arith.constant 8 : i32
    %139 = arith.cmpi slt, %138, %c8_i32_66 : i32
    %c0_67 = arith.constant 0 : index
    %c0_68 = arith.constant 0 : index
    %140 = vector.load %arg11[%c0_67, %c0_68] : memref<8x128xf32, #tpu.memory_space<vmem>>, vector<8x128xf32>
    %141 = arith.select %139, %131, %140 : vector<8x128xf32>
    %c0_69 = arith.constant 0 : index
    %c0_70 = arith.constant 0 : index
    %142 = vector.load %arg11[%c0_69, %c0_70] : memref<8x128xf32, #tpu.memory_space<vmem>>, vector<8x128xf32>
    tpu.vector_store %arg11[%c0_69, %c0_70], %141 {strides = array<i32>} : memref<8x128xf32, #tpu.memory_space<vmem>>, vector<8x128xf32>,
    %c0_71 = arith.constant 0 : index
    %c0_72 = arith.constant 0 : index
    %143 = vector.load %arg10[%c0_71, %c0_72] : memref<8x128xf32, #tpu.memory_space<vmem>>, vector<8x128xf32>
    %144 = arith.select %139, %133, %143 : vector<8x128xf32>
    %c0_73 = arith.constant 0 : index
    %c0_74 = arith.constant 0 : index
    %145 = vector.load %arg10[%c0_73, %c0_74] : memref<8x128xf32, #tpu.memory_space<vmem>>, vector<8x128xf32>
    tpu.vector_store %arg10[%c0_73, %c0_74], %144 {strides = array<i32>} : memref<8x128xf32, #tpu.memory_space<vmem>>, vector<8x128xf32>,
    %c3_i32_75 = arith.constant 3 : i32
    %c2_i32_76 = arith.constant 2 : i32
    %146 = arith.cmpi eq, %arg0, %c2_i32_76 : i32
    %147 = arith.extui %146 : i1 to i32
    %c0_i32_77 = arith.constant 0 : i32
    %148 = arith.cmpi ne, %147, %c0_i32_77 : i32
    scf.if %148 {
      %c0_78 = arith.constant 0 : index
      %c0_79 = arith.constant 0 : index
      %149 = vector.load %arg10[%c0_78, %c0_79] : memref<8x128xf32, #tpu.memory_space<vmem>>, vector<8x128xf32>
      %c0_80 = arith.constant 0 : index
      %c0_81 = arith.constant 0 : index
      %150 = vector.load %arg8[%c0_80, %c0_81] : memref<8x128xf32, #tpu.memory_space<vmem>>, vector<8x128xf32>
      tpu.vector_store %arg8[%c0_80, %c0_81], %149 {strides = array<i32>} : memref<8x128xf32, #tpu.memory_space<vmem>>, vector<8x128xf32>,
      %c0_82 = arith.constant 0 : index
      %c0_83 = arith.constant 0 : index
      %151 = vector.load %arg11[%c0_82, %c0_83] : memref<8x128xf32, #tpu.memory_space<vmem>>, vector<8x128xf32>
      %c0_84 = arith.constant 0 : index
      %c0_85 = arith.constant 0 : index
      %152 = vector.load %arg9[%c0_84, %c0_85] : memref<8x128xf32, #tpu.memory_space<vmem>>, vector<8x128xf32>
      tpu.vector_store %arg9[%c0_84, %c0_85], %151 {strides = array<i32>} : memref<8x128xf32, #tpu.memory_space<vmem>>, vector<8x128xf32>,
    } else {
    }
    return
  }
  func.func @transform_0(%arg0: i32) -> (i32, i32, i32) {
    %c0_i32 = arith.constant 0 : i32
    %c0_i32_0 = arith.constant 0 : i32
    %c0_i32_1 = arith.constant 0 : i32
    return %arg0, %c0_i32, %c0_i32_0 : i32, i32, i32
  }
  func.func @transform_1(%arg0: i32) -> (i32, i32) {
    %c0_i32 = arith.constant 0 : i32
    %c0_i32_0 = arith.constant 0 : i32
    %c0_i32_1 = arith.constant 0 : i32
    return %c0_i32, %c0_i32_0 : i32, i32
  }
  func.func @transform_2(%arg0: i32) -> (i32, i32) {
    %c0_i32 = arith.constant 0 : i32
    %c0_i32_0 = arith.constant 0 : i32
    %c0_i32_1 = arith.constant 0 : i32
    return %c0_i32, %c0_i32_0 : i32, i32
  }
  func.func @transform_3(%arg0: i32) -> (i32, i32) {
    %c0_i32 = arith.constant 0 : i32
    %c0_i32_0 = arith.constant 0 : i32
    %c0_i32_1 = arith.constant 0 : i32
    return %c0_i32, %c0_i32_0 : i32, i32
  }
  func.func @transform_4(%arg0: i32) -> (i32, i32) {
    %c0_i32 = arith.constant 0 : i32
    %c0_i32_0 = arith.constant 0 : i32
    %c0_i32_1 = arith.constant 0 : i32
    return %c0_i32, %c0_i32_0 : i32, i32
  }
  func.func @transform_5(%arg0: i32) -> (i32, i32) {
    %c0_i32 = arith.constant 0 : i32
    %c0_i32_0 = arith.constant 0 : i32
    %c0_i32_1 = arith.constant 0 : i32
    return %c0_i32, %c0_i32_0 : i32, i32
  }
  func.func @transform_6(%arg0: i32) -> (i32, i32, i32) {
    %c0_i32 = arith.constant 0 : i32
    %c0_i32_0 = arith.constant 0 : i32
    %c0_i32_1 = arith.constant 0 : i32
    return %arg0, %c0_i32, %c0_i32_0 : i32, i32, i32
  }
  func.func @transform_7(%arg0: i32) -> (i32, i32) {
    %c0_i32 = arith.constant 0 : i32
    %c0_i32_0 = arith.constant 0 : i32
    %c0_i32_1 = arith.constant 0 : i32
    return %c0_i32, %c0_i32_0 : i32, i32
  }
  func.func @transform_8(%arg0: i32) -> (i32, i32) {
    %c0_i32 = arith.constant 0 : i32
    %c0_i32_0 = arith.constant 0 : i32
    %c0_i32_1 = arith.constant 0 : i32
    return %c0_i32, %c0_i32_0 : i32, i32
  }
}

module attributes {stable_mosaic.version = 11 : i64} {
  func.func @lstm_chunk_kernel(%arg0: i32, %arg1: memref<3x8x128xf32, #tpu.memory_space<vmem>>, %arg2: memref<8x128xf32, #tpu.memory_space<vmem>>, %arg3: memref<8x128xf32, #tpu.memory_space<vmem>>, %arg4: memref<128x512xf32, #tpu.memory_space<vmem>>, %arg5: memref<128x512xf32, #tpu.memory_space<vmem>>, %arg6: memref<1x512xf32, #tpu.memory_space<vmem>>, %arg7: memref<3x8x128xf32, #tpu.memory_space<vmem>>, %arg8: memref<8x128xf32, #tpu.memory_space<vmem>>, %arg9: memref<8x128xf32, #tpu.memory_space<vmem>>, %arg10: memref<8x128xf32, #tpu.memory_space<vmem>>, %arg11: memref<8x128xf32, #tpu.memory_space<vmem>>, %arg12: memref<3x8x512xf32, #tpu.memory_space<vmem>>) attributes {dimension_semantics = [#tpu.dimension_semantics<arbitrary>], iteration_bounds = array<i64: 3>, scalar_prefetch = 0 : i64, scratch_operands = 3 : i64, tpu.core_type = #tpu.core_type<tc>, window_params = [{transform_indices = @transform_0, window_bounds = array<i64: 3, 8, 128>}, {pipeline_mode = #tpu.pipeline_mode<synchronous>, transform_indices = @transform_1, window_bounds = array<i64: 8, 128>}, {pipeline_mode = #tpu.pipeline_mode<synchronous>, transform_indices = @transform_2, window_bounds = array<i64: 8, 128>}, {pipeline_mode = #tpu.pipeline_mode<synchronous>, transform_indices = @transform_3, window_bounds = array<i64: 128, 512>}, {pipeline_mode = #tpu.pipeline_mode<synchronous>, transform_indices = @transform_4, window_bounds = array<i64: 128, 512>}, {pipeline_mode = #tpu.pipeline_mode<synchronous>, transform_indices = @transform_5, window_bounds = array<i64: 1, 512>}, {transform_indices = @transform_6, window_bounds = array<i64: 3, 8, 128>}, {pipeline_mode = #tpu.pipeline_mode<synchronous>, transform_indices = @transform_7, window_bounds = array<i64: 8, 128>}, {pipeline_mode = #tpu.pipeline_mode<synchronous>, transform_indices = @transform_8, window_bounds = array<i64: 8, 128>}]} {
    %c0_i32 = arith.constant 0 : i32
    %0 = arith.cmpi eq, %arg0, %c0_i32 : i32
    %1 = arith.extui %0 : i1 to i32
    %c0_i32_0 = arith.constant 0 : i32
    %2 = arith.cmpi ne, %1, %c0_i32_0 : i32
    scf.if %2 {
      %c0_78 = arith.constant 0 : index
      %c0_79 = arith.constant 0 : index
      %149 = vector.load %arg2[%c0_78, %c0_79] : memref<8x128xf32, #tpu.memory_space<vmem>>, vector<8x128xf32>
      %c0_80 = arith.constant 0 : index
      %c0_81 = arith.constant 0 : index
      %150 = vector.load %arg10[%c0_80, %c0_81] : memref<8x128xf32, #tpu.memory_space<vmem>>, vector<8x128xf32>
      tpu.vector_store %arg10[%c0_80, %c0_81], %149 {strides = array<i32>} : memref<8x128xf32, #tpu.memory_space<vmem>>, vector<8x128xf32>,
      %c0_82 = arith.constant 0 : index
      %c0_83 = arith.constant 0 : index
      %151 = vector.load %arg3[%c0_82, %c0_83] : memref<8x128xf32, #tpu.memory_space<vmem>>, vector<8x128xf32>
      %c0_84 = arith.constant 0 : index
      %c0_85 = arith.constant 0 : index
      %152 = vector.load %arg11[%c0_84, %c0_85] : memref<8x128xf32, #tpu.memory_space<vmem>>, vector<8x128xf32>
      tpu.vector_store %arg11[%c0_84, %c0_85], %151 {strides = array<i32>} : memref<8x128xf32, #tpu.memory_space<vmem>>, vector<8x128xf32>,
    } else {
    }
    %c0 = arith.constant 0 : index
    %c0_1 = arith.constant 0 : index
    %c0_2 = arith.constant 0 : index
    %3 = vector.load %arg1[%c0, %c0_1, %c0_2] : memref<3x8x128xf32, #tpu.memory_space<vmem>>, vector<3x8x128xf32>
    %4 = vector.shape_cast %3 : vector<3x8x128xf32> to vector<24x128xf32>
    %c0_3 = arith.constant 0 : index
    %c0_4 = arith.constant 0 : index
    %5 = vector.load %arg4[%c0_3, %c0_4] : memref<128x512xf32, #tpu.memory_space<vmem>>, vector<128x512xf32>
    %cst = arith.constant dense<0.000000e+00> : vector<24x512xf32>
    %6 = tpu.matmul %4, %5, %cst {dimension_numbers = #tpu.dot_dimension_numbers<[1], [0], [0], [1], [0, 0, 1, 1], [], []>} : vector<24x128xf32>, vector<128x512xf32>, vector<24x512xf32> -> vector<24x512xf32>
    %c0_5 = arith.constant 0 : index
    %c0_6 = arith.constant 0 : index
    %7 = vector.load %arg6[%c0_5, %c0_6] : memref<1x512xf32, #tpu.memory_space<vmem>>, vector<1x512xf32>
    %8 = vector.broadcast %7 : vector<1x512xf32> to vector<24x512xf32>
    %9 = arith.addf %6, %8 : vector<24x512xf32>
    %10 = vector.shape_cast %9 : vector<24x512xf32> to vector<3x8x512xf32>
    %c0_7 = arith.constant 0 : index
    %c0_8 = arith.constant 0 : index
    %c0_9 = arith.constant 0 : index
    %11 = vector.load %arg12[%c0_7, %c0_8, %c0_9] : memref<3x8x512xf32, #tpu.memory_space<vmem>>, vector<3x8x512xf32>
    tpu.vector_store %arg12[%c0_7, %c0_8, %c0_9], %10 {strides = array<i32>} : memref<3x8x512xf32, #tpu.memory_space<vmem>>, vector<3x8x512xf32>,
    %c0_10 = arith.constant 0 : index
    %c0_11 = arith.constant 0 : index
    %12 = vector.load %arg5[%c0_10, %c0_11] : memref<128x512xf32, #tpu.memory_space<vmem>>, vector<128x512xf32>
    %c3_i32 = arith.constant 3 : i32
    %13 = arith.muli %arg0, %c3_i32 : i32
    %c0_i32_12 = arith.constant 0 : i32
    %14 = arith.index_cast %c0_i32_12 : i32 to index
    %c0_13 = arith.constant 0 : index
    %c0_14 = arith.constant 0 : index
    %15 = vector.load %arg12[%14, %c0_13, %c0_14] : memref<3x8x512xf32, #tpu.memory_space<vmem>>, vector<1x8x512xf32>
    %16 = vector.shape_cast %15 : vector<1x8x512xf32> to vector<8x512xf32>
    %c0_15 = arith.constant 0 : index
    %c0_16 = arith.constant 0 : index
    %17 = vector.load %arg10[%c0_15, %c0_16] : memref<8x128xf32, #tpu.memory_space<vmem>>, vector<8x128xf32>
    %cst_17 = arith.constant dense<0.000000e+00> : vector<8x512xf32>
    %18 = tpu.matmul %17, %12, %cst_17 {dimension_numbers = #tpu.dot_dimension_numbers<[1], [0], [0], [1], [0, 0, 1, 1], [], []>} : vector<8x128xf32>, vector<128x512xf32>, vector<8x512xf32> -> vector<8x512xf32>
    %19 = arith.addf %16, %18 : vector<8x512xf32>
    %20 = vector.extract_strided_slice %19 {offsets = [0, 0], sizes = [8, 128], strides = [1, 1]} : vector<8x512xf32> to vector<8x128xf32>
    %21 = arith.negf %20 : vector<8x128xf32>
    %22 = math.exp %21 : vector<8x128xf32>
    %cst_18 = arith.constant 1.000000e+00 : f32
    %23 = vector.broadcast %cst_18 : f32 to vector<8x128xf32>
    %24 = arith.addf %23, %22 : vector<8x128xf32>
    %25 = arith.divf %23, %24 : vector<8x128xf32>
    %26 = vector.extract_strided_slice %19 {offsets = [0, 128], sizes = [8, 128], strides = [1, 1]} : vector<8x512xf32> to vector<8x128xf32>
    %27 = arith.negf %26 : vector<8x128xf32>
    %28 = math.exp %27 : vector<8x128xf32>
    %cst_19 = arith.constant 1.000000e+00 : f32
    %29 = vector.broadcast %cst_19 : f32 to vector<8x128xf32>
    %30 = arith.addf %29, %28 : vector<8x128xf32>
    %31 = arith.divf %29, %30 : vector<8x128xf32>
    %32 = vector.extract_strided_slice %19 {offsets = [0, 256], sizes = [8, 128], strides = [1, 1]} : vector<8x512xf32> to vector<8x128xf32>
    %33 = math.tanh %32 : vector<8x128xf32>
    %34 = vector.extract_strided_slice %19 {offsets = [0, 384], sizes = [8, 128], strides = [1, 1]} : vector<8x512xf32> to vector<8x128xf32>
    %35 = arith.negf %34 : vector<8x128xf32>
    %36 = math.exp %35 : vector<8x128xf32>
    %cst_20 = arith.constant 1.000000e+00 : f32
    %37 = vector.broadcast %cst_20 : f32 to vector<8x128xf32>
    %38 = arith.addf %37, %36 : vector<8x128xf32>
    %39 = arith.divf %37, %38 : vector<8x128xf32>
    %c0_21 = arith.constant 0 : index
    %c0_22 = arith.constant 0 : index
    %40 = vector.load %arg11[%c0_21, %c0_22] : memref<8x128xf32, #tpu.memory_space<vmem>>, vector<8x128xf32>
    %41 = arith.mulf %31, %40 : vector<8x128xf32>
    %42 = arith.mulf %25, %33 : vector<8x128xf32>
    %43 = arith.addf %41, %42 : vector<8x128xf32>
    %44 = math.tanh %43 : vector<8x128xf32>
    %45 = arith.mulf %39, %44 : vector<8x128xf32>
    %46 = arith.index_cast %c0_i32_12 : i32 to index
    %c0_23 = arith.constant 0 : index
    %c0_24 = arith.constant 0 : index
    %47 = vector.load %arg7[%46, %c0_23, %c0_24] : memref<3x8x128xf32, #tpu.memory_space<vmem>>, vector<1x8x128xf32>
    %48 = vector.shape_cast %47 : vector<1x8x128xf32> to vector<8x128xf32>
    %49 = vector.shape_cast %45 : vector<8x128xf32> to vector<1x8x128xf32>
    tpu.vector_store %arg7[%46, %c0_23, %c0_24], %49 {strides = array<i32>} : memref<3x8x128xf32, #tpu.memory_space<vmem>>, vector<1x8x128xf32>,
    %50 = arith.addi %13, %c0_i32_12 : i32
    %c8_i32 = arith.constant 8 : i32
    %51 = arith.cmpi slt, %50, %c8_i32 : i32
    %c0_25 = arith.constant 0 : index
    %c0_26 = arith.constant 0 : index
    %52 = vector.load %arg11[%c0_25, %c0_26] : memref<8x128xf32, #tpu.memory_space<vmem>>, vector<8x128xf32>
    %53 = arith.select %51, %43, %52 : vector<8x128xf32>
    %c0_27 = arith.constant 0 : index
    %c0_28 = arith.constant 0 : index
    %54 = vector.load %arg11[%c0_27, %c0_28] : memref<8x128xf32, #tpu.memory_space<vmem>>, vector<8x128xf32>
    tpu.vector_store %arg11[%c0_27, %c0_28], %53 {strides = array<i32>} : memref<8x128xf32, #tpu.memory_space<vmem>>, vector<8x128xf32>,
    %c0_29 = arith.constant 0 : index
    %c0_30 = arith.constant 0 : index
    %55 = vector.load %arg10[%c0_29, %c0_30] : memref<8x128xf32, #tpu.memory_space<vmem>>, vector<8x128xf32>
    %56 = arith.select %51, %45, %55 : vector<8x128xf32>
    %c0_31 = arith.constant 0 : index
    %c0_32 = arith.constant 0 : index
    %57 = vector.load %arg10[%c0_31, %c0_32] : memref<8x128xf32, #tpu.memory_space<vmem>>, vector<8x128xf32>
    tpu.vector_store %arg10[%c0_31, %c0_32], %56 {strides = array<i32>} : memref<8x128xf32, #tpu.memory_space<vmem>>, vector<8x128xf32>,
    %c1_i32 = arith.constant 1 : i32
    %58 = arith.index_cast %c1_i32 : i32 to index
    %c0_33 = arith.constant 0 : index
    %c0_34 = arith.constant 0 : index
    %59 = vector.load %arg12[%58, %c0_33, %c0_34] : memref<3x8x512xf32, #tpu.memory_space<vmem>>, vector<1x8x512xf32>
    %60 = vector.shape_cast %59 : vector<1x8x512xf32> to vector<8x512xf32>
    %c0_35 = arith.constant 0 : index
    %c0_36 = arith.constant 0 : index
    %61 = vector.load %arg10[%c0_35, %c0_36] : memref<8x128xf32, #tpu.memory_space<vmem>>, vector<8x128xf32>
    %cst_37 = arith.constant dense<0.000000e+00> : vector<8x512xf32>
    %62 = tpu.matmul %61, %12, %cst_37 {dimension_numbers = #tpu.dot_dimension_numbers<[1], [0], [0], [1], [0, 0, 1, 1], [], []>} : vector<8x128xf32>, vector<128x512xf32>, vector<8x512xf32> -> vector<8x512xf32>
    %63 = arith.addf %60, %62 : vector<8x512xf32>
    %64 = vector.extract_strided_slice %63 {offsets = [0, 0], sizes = [8, 128], strides = [1, 1]} : vector<8x512xf32> to vector<8x128xf32>
    %65 = arith.negf %64 : vector<8x128xf32>
    %66 = math.exp %65 : vector<8x128xf32>
    %cst_38 = arith.constant 1.000000e+00 : f32
    %67 = vector.broadcast %cst_38 : f32 to vector<8x128xf32>
    %68 = arith.addf %67, %66 : vector<8x128xf32>
    %69 = arith.divf %67, %68 : vector<8x128xf32>
    %70 = vector.extract_strided_slice %63 {offsets = [0, 128], sizes = [8, 128], strides = [1, 1]} : vector<8x512xf32> to vector<8x128xf32>
    %71 = arith.negf %70 : vector<8x128xf32>
    %72 = math.exp %71 : vector<8x128xf32>
    %cst_39 = arith.constant 1.000000e+00 : f32
    %73 = vector.broadcast %cst_39 : f32 to vector<8x128xf32>
    %74 = arith.addf %73, %72 : vector<8x128xf32>
    %75 = arith.divf %73, %74 : vector<8x128xf32>
    %76 = vector.extract_strided_slice %63 {offsets = [0, 256], sizes = [8, 128], strides = [1, 1]} : vector<8x512xf32> to vector<8x128xf32>
    %77 = math.tanh %76 : vector<8x128xf32>
    %78 = vector.extract_strided_slice %63 {offsets = [0, 384], sizes = [8, 128], strides = [1, 1]} : vector<8x512xf32> to vector<8x128xf32>
    %79 = arith.negf %78 : vector<8x128xf32>
    %80 = math.exp %79 : vector<8x128xf32>
    %cst_40 = arith.constant 1.000000e+00 : f32
    %81 = vector.broadcast %cst_40 : f32 to vector<8x128xf32>
    %82 = arith.addf %81, %80 : vector<8x128xf32>
    %83 = arith.divf %81, %82 : vector<8x128xf32>
    %c0_41 = arith.constant 0 : index
    %c0_42 = arith.constant 0 : index
    %84 = vector.load %arg11[%c0_41, %c0_42] : memref<8x128xf32, #tpu.memory_space<vmem>>, vector<8x128xf32>
    %85 = arith.mulf %75, %84 : vector<8x128xf32>
    %86 = arith.mulf %69, %77 : vector<8x128xf32>
    %87 = arith.addf %85, %86 : vector<8x128xf32>
    %88 = math.tanh %87 : vector<8x128xf32>
    %89 = arith.mulf %83, %88 : vector<8x128xf32>
    %90 = arith.index_cast %c1_i32 : i32 to index
    %c0_43 = arith.constant 0 : index
    %c0_44 = arith.constant 0 : index
    %91 = vector.load %arg7[%90, %c0_43, %c0_44] : memref<3x8x128xf32, #tpu.memory_space<vmem>>, vector<1x8x128xf32>
    %92 = vector.shape_cast %91 : vector<1x8x128xf32> to vector<8x128xf32>
    %93 = vector.shape_cast %89 : vector<8x128xf32> to vector<1x8x128xf32>
    tpu.vector_store %arg7[%90, %c0_43, %c0_44], %93 {strides = array<i32>} : memref<3x8x128xf32, #tpu.memory_space<vmem>>, vector<1x8x128xf32>,
    %94 = arith.addi %13, %c1_i32 : i32
    %c8_i32_45 = arith.constant 8 : i32
    %95 = arith.cmpi slt, %94, %c8_i32_45 : i32
    %c0_46 = arith.constant 0 : index
    %c0_47 = arith.constant 0 : index
    %96 = vector.load %arg11[%c0_46, %c0_47] : memref<8x128xf32, #tpu.memory_space<vmem>>, vector<8x128xf32>
    %97 = arith.select %95, %87, %96 : vector<8x128xf32>
    %c0_48 = arith.constant 0 : index
    %c0_49 = arith.constant 0 : index
    %98 = vector.load %arg11[%c0_48, %c0_49] : memref<8x128xf32, #tpu.memory_space<vmem>>, vector<8x128xf32>
    tpu.vector_store %arg11[%c0_48, %c0_49], %97 {strides = array<i32>} : memref<8x128xf32, #tpu.memory_space<vmem>>, vector<8x128xf32>,
    %c0_50 = arith.constant 0 : index
    %c0_51 = arith.constant 0 : index
    %99 = vector.load %arg10[%c0_50, %c0_51] : memref<8x128xf32, #tpu.memory_space<vmem>>, vector<8x128xf32>
    %100 = arith.select %95, %89, %99 : vector<8x128xf32>
    %c0_52 = arith.constant 0 : index
    %c0_53 = arith.constant 0 : index
    %101 = vector.load %arg10[%c0_52, %c0_53] : memref<8x128xf32, #tpu.memory_space<vmem>>, vector<8x128xf32>
    tpu.vector_store %arg10[%c0_52, %c0_53], %100 {strides = array<i32>} : memref<8x128xf32, #tpu.memory_space<vmem>>, vector<8x128xf32>,
    %c2_i32 = arith.constant 2 : i32
    %102 = arith.index_cast %c2_i32 : i32 to index
    %c0_54 = arith.constant 0 : index
    %c0_55 = arith.constant 0 : index
    %103 = vector.load %arg12[%102, %c0_54, %c0_55] : memref<3x8x512xf32, #tpu.memory_space<vmem>>, vector<1x8x512xf32>
    %104 = vector.shape_cast %103 : vector<1x8x512xf32> to vector<8x512xf32>
    %c0_56 = arith.constant 0 : index
    %c0_57 = arith.constant 0 : index
    %105 = vector.load %arg10[%c0_56, %c0_57] : memref<8x128xf32, #tpu.memory_space<vmem>>, vector<8x128xf32>
    %cst_58 = arith.constant dense<0.000000e+00> : vector<8x512xf32>
    %106 = tpu.matmul %105, %12, %cst_58 {dimension_numbers = #tpu.dot_dimension_numbers<[1], [0], [0], [1], [0, 0, 1, 1], [], []>} : vector<8x128xf32>, vector<128x512xf32>, vector<8x512xf32> -> vector<8x512xf32>
    %107 = arith.addf %104, %106 : vector<8x512xf32>
    %108 = vector.extract_strided_slice %107 {offsets = [0, 0], sizes = [8, 128], strides = [1, 1]} : vector<8x512xf32> to vector<8x128xf32>
    %109 = arith.negf %108 : vector<8x128xf32>
    %110 = math.exp %109 : vector<8x128xf32>
    %cst_59 = arith.constant 1.000000e+00 : f32
    %111 = vector.broadcast %cst_59 : f32 to vector<8x128xf32>
    %112 = arith.addf %111, %110 : vector<8x128xf32>
    %113 = arith.divf %111, %112 : vector<8x128xf32>
    %114 = vector.extract_strided_slice %107 {offsets = [0, 128], sizes = [8, 128], strides = [1, 1]} : vector<8x512xf32> to vector<8x128xf32>
    %115 = arith.negf %114 : vector<8x128xf32>
    %116 = math.exp %115 : vector<8x128xf32>
    %cst_60 = arith.constant 1.000000e+00 : f32
    %117 = vector.broadcast %cst_60 : f32 to vector<8x128xf32>
    %118 = arith.addf %117, %116 : vector<8x128xf32>
    %119 = arith.divf %117, %118 : vector<8x128xf32>
    %120 = vector.extract_strided_slice %107 {offsets = [0, 256], sizes = [8, 128], strides = [1, 1]} : vector<8x512xf32> to vector<8x128xf32>
    %121 = math.tanh %120 : vector<8x128xf32>
    %122 = vector.extract_strided_slice %107 {offsets = [0, 384], sizes = [8, 128], strides = [1, 1]} : vector<8x512xf32> to vector<8x128xf32>
    %123 = arith.negf %122 : vector<8x128xf32>
    %124 = math.exp %123 : vector<8x128xf32>
    %cst_61 = arith.constant 1.000000e+00 : f32
    %125 = vector.broadcast %cst_61 : f32 to vector<8x128xf32>
    %126 = arith.addf %125, %124 : vector<8x128xf32>
    %127 = arith.divf %125, %126 : vector<8x128xf32>
    %c0_62 = arith.constant 0 : index
    %c0_63 = arith.constant 0 : index
    %128 = vector.load %arg11[%c0_62, %c0_63] : memref<8x128xf32, #tpu.memory_space<vmem>>, vector<8x128xf32>
    %129 = arith.mulf %119, %128 : vector<8x128xf32>
    %130 = arith.mulf %113, %121 : vector<8x128xf32>
    %131 = arith.addf %129, %130 : vector<8x128xf32>
    %132 = math.tanh %131 : vector<8x128xf32>
    %133 = arith.mulf %127, %132 : vector<8x128xf32>
    %134 = arith.index_cast %c2_i32 : i32 to index
    %c0_64 = arith.constant 0 : index
    %c0_65 = arith.constant 0 : index
    %135 = vector.load %arg7[%134, %c0_64, %c0_65] : memref<3x8x128xf32, #tpu.memory_space<vmem>>, vector<1x8x128xf32>
    %136 = vector.shape_cast %135 : vector<1x8x128xf32> to vector<8x128xf32>
    %137 = vector.shape_cast %133 : vector<8x128xf32> to vector<1x8x128xf32>
    tpu.vector_store %arg7[%134, %c0_64, %c0_65], %137 {strides = array<i32>} : memref<3x8x128xf32, #tpu.memory_space<vmem>>, vector<1x8x128xf32>,
    %138 = arith.addi %13, %c2_i32 : i32
    %c8_i32_66 = arith.constant 8 : i32
    %139 = arith.cmpi slt, %138, %c8_i32_66 : i32
    %c0_67 = arith.constant 0 : index
    %c0_68 = arith.constant 0 : index
    %140 = vector.load %arg11[%c0_67, %c0_68] : memref<8x128xf32, #tpu.memory_space<vmem>>, vector<8x128xf32>
    %141 = arith.select %139, %131, %140 : vector<8x128xf32>
    %c0_69 = arith.constant 0 : index
    %c0_70 = arith.constant 0 : index
    %142 = vector.load %arg11[%c0_69, %c0_70] : memref<8x128xf32, #tpu.memory_space<vmem>>, vector<8x128xf32>
    tpu.vector_store %arg11[%c0_69, %c0_70], %141 {strides = array<i32>} : memref<8x128xf32, #tpu.memory_space<vmem>>, vector<8x128xf32>,
    %c0_71 = arith.constant 0 : index
    %c0_72 = arith.constant 0 : index
    %143 = vector.load %arg10[%c0_71, %c0_72] : memref<8x128xf32, #tpu.memory_space<vmem>>, vector<8x128xf32>
    %144 = arith.select %139, %133, %143 : vector<8x128xf32>
    %c0_73 = arith.constant 0 : index
    %c0_74 = arith.constant 0 : index
    %145 = vector.load %arg10[%c0_73, %c0_74] : memref<8x128xf32, #tpu.memory_space<vmem>>, vector<8x128xf32>
    tpu.vector_store %arg10[%c0_73, %c0_74], %144 {strides = array<i32>} : memref<8x128xf32, #tpu.memory_space<vmem>>, vector<8x128xf32>,
    %c3_i32_75 = arith.constant 3 : i32
    %c2_i32_76 = arith.constant 2 : i32
    %146 = arith.cmpi eq, %arg0, %c2_i32_76 : i32
    %147 = arith.extui %146 : i1 to i32
    %c0_i32_77 = arith.constant 0 : i32
    %148 = arith.cmpi ne, %147, %c0_i32_77 : i32
    scf.if %148 {
      %c0_78 = arith.constant 0 : index
      %c0_79 = arith.constant 0 : index
      %149 = vector.load %arg10[%c0_78, %c0_79] : memref<8x128xf32, #tpu.memory_space<vmem>>, vector<8x128xf32>
      %c0_80 = arith.constant 0 : index
      %c0_81 = arith.constant 0 : index
      %150 = vector.load %arg8[%c0_80, %c0_81] : memref<8x128xf32, #tpu.memory_space<vmem>>, vector<8x128xf32>
      tpu.vector_store %arg8[%c0_80, %c0_81], %149 {strides = array<i32>} : memref<8x128xf32, #tpu.memory_space<vmem>>, vector<8x128xf32>,
      %c0_82 = arith.constant 0 : index
      %c0_83 = arith.constant 0 : index
      %151 = vector.load %arg11[%c0_82, %c0_83] : memref<8x128xf32, #tpu.memory_space<vmem>>, vector<8x128xf32>
      %c0_84 = arith.constant 0 : index
      %c0_85 = arith.constant 0 : index
      %152 = vector.load %arg9[%c0_84, %c0_85] : memref<8x128xf32, #tpu.memory_space<vmem>>, vector<8x128xf32>
      tpu.vector_store %arg9[%c0_84, %c0_85], %151 {strides = array<i32>} : memref<8x128xf32, #tpu.memory_space<vmem>>, vector<8x128xf32>,
    } else {
    }
    return
  }
  func.func @transform_0(%arg0: i32) -> (i32, i32, i32) {
    %c0_i32 = arith.constant 0 : i32
    %c0_i32_0 = arith.constant 0 : i32
    %c0_i32_1 = arith.constant 0 : i32
    return %arg0, %c0_i32, %c0_i32_0 : i32, i32, i32
  }
  func.func @transform_1(%arg0: i32) -> (i32, i32) {
    %c0_i32 = arith.constant 0 : i32
    %c0_i32_0 = arith.constant 0 : i32
    %c0_i32_1 = arith.constant 0 : i32
    return %c0_i32, %c0_i32_0 : i32, i32
  }
  func.func @transform_2(%arg0: i32) -> (i32, i32) {
    %c0_i32 = arith.constant 0 : i32
    %c0_i32_0 = arith.constant 0 : i32
    %c0_i32_1 = arith.constant 0 : i32
    return %c0_i32, %c0_i32_0 : i32, i32
  }
  func.func @transform_3(%arg0: i32) -> (i32, i32) {
    %c0_i32 = arith.constant 0 : i32
    %c0_i32_0 = arith.constant 0 : i32
    %c0_i32_1 = arith.constant 0 : i32
    return %c0_i32, %c0_i32_0 : i32, i32
  }
  func.func @transform_4(%arg0: i32) -> (i32, i32) {
    %c0_i32 = arith.constant 0 : i32
    %c0_i32_0 = arith.constant 0 : i32
    %c0_i32_1 = arith.constant 0 : i32
    return %c0_i32, %c0_i32_0 : i32, i32
  }
  func.func @transform_5(%arg0: i32) -> (i32, i32) {
    %c0_i32 = arith.constant 0 : i32
    %c0_i32_0 = arith.constant 0 : i32
    %c0_i32_1 = arith.constant 0 : i32
    return %c0_i32, %c0_i32_0 : i32, i32
  }
  func.func @transform_6(%arg0: i32) -> (i32, i32, i32) {
    %c0_i32 = arith.constant 0 : i32
    %c0_i32_0 = arith.constant 0 : i32
    %c0_i32_1 = arith.constant 0 : i32
    return %arg0, %c0_i32, %c0_i32_0 : i32, i32, i32
  }
  func.func @transform_7(%arg0: i32) -> (i32, i32) {
    %c0_i32 = arith.constant 0 : i32
    %c0_i32_0 = arith.constant 0 : i32
    %c0_i32_1 = arith.constant 0 : i32
    return %c0_i32, %c0_i32_0 : i32, i32
  }
  func.func @transform_8(%arg0: i32) -> (i32, i32) {
    %c0_i32 = arith.constant 0 : i32
    %c0_i32_0 = arith.constant 0 : i32
    %c0_i32_1 = arith.constant 0 : i32
    return %c0_i32, %c0_i32_0 : i32, i32
  }
}

</mosaic_0001>

<bundles_post_ra>
// kernel: rnn_model_forward.5
= control target key start
LH: loop header
LB: loop body
LE: loop exit
PB: predicated region body
PF: predicated region fallthrough
CT: control target
= control target key end

     0   :  { %s295_s0 = inlined_call_operand.vmem [shape: f32[16,128], index: 0, kind: input, shape index: {}]   ;;  %s296_s1 = inlined_call_operand.vmem [shape: f32[128,128], index: 1, kind: input, shape index: {}]   ;;  %s297_s2 = inlined_call_operand.vmem [shape: f32[1,128], index: 2, kind: input, shape index: {}]   ;;  %s298_s3 = inlined_call_operand.hbm [shape: f32[16,128], index: 3, kind: output, shape index: {}]  }
   0x1   :  { %v32_v0 = vld [vmem:[%s296_s1 + $0x78] sm:$0xff]  ;;  %v31_v1 = vld [vmem:[%s296_s1 + $0x70] sm:$0xff]  ;;  %v30_v2 = vld [vmem:[%s296_s1 + $0x68] sm:$0xff] }
   0x2   :  { %152 = vmatprep.subr.mxu0 %v32_v0  ;;  %v29_v3 = vld [vmem:[%s296_s1 + $0x60] sm:$0xff]  ;;  %v28_v5 = vld [vmem:[%s296_s1 + $0x58] sm:$0xff] }
   0x3   :  { %153 = vmatpush3.msra.mxu0 %v32_v0  ;;  %v15_v4 = vld [vmem:[%s295_s0] sm:$0xff] }
   0x4   :  { %154 = vmatprep.subr.mxu0 %v31_v1  ;;  %184 = vmatprep.mubr.f32.mxu0 %v15_v4 }
   0x5   :  { %155 = vmatpush3.msra.mxu0 %v31_v1 }
   0x6   :  { %156 = vmatprep.subr.mxu0 %v30_v2 }
   0x7   :  { %157 = vmatpush3.msra.mxu0 %v30_v2 }
   0x8   :  { %8 = vsyncpa [#allocation3], 0  ;;  %158 = vmatprep.subr.mxu0 %v29_v3  ;;  %v27_v6 = vld [vmem:[%s296_s1 + $0x50] sm:$0xff]  ;;  %v26_v7 = vld [vmem:[%s296_s1 + $0x48] sm:$0xff]  ;;  %s212_s23 = smov [#allocation2]  }
   0x9   :  { %159 = vmatpush3.msra.mxu0 %v29_v3  ;;  %v25_v8 = vld [vmem:[%s296_s1 + $0x40] sm:$0xff]  ;;  %v24_v9 = vld [vmem:[%s296_s1 + $0x38] sm:$0xff]  ;;  %v23_v10 = vld [vmem:[%s296_s1 + $0x30] sm:$0xff]  ;;  %s122_s24 = sshll.u32 %s212_s23, 4  ;;  %s123_s24 = int_to_ptr.vmem [resolvable:$true] %s122_s24 }
   0xa   :  { %160 = vmatprep.subr.mxu0 %v28_v5  ;;  %v22_v11 = vld [vmem:[%s296_s1 + $0x28] sm:$0xff]  ;;  %v21_v12 = vld [vmem:[%s296_s1 + $0x20] sm:$0xff]  ;;  %v20_v13 = vld [vmem:[%s296_s1 + $0x18] sm:$0xff]  ;;  %p195_p1 = scmp.lt.s32.totalorder %s123_s24, %s123_s24 }
   0xb   :  { %161 = vmatpush3.msra.mxu0 %v28_v5  ;;  %v19_v14 = vld [vmem:[%s296_s1 + $0x10] sm:$0xff]  ;;  %v18_v15 = vld [vmem:[%s296_s1 + $0x8] sm:$0xff]  ;;  %v17_v16 = vld [vmem:[%s296_s1] sm:$0xff]  ;;  %s190_s1 = scalar_lea.vmem %s123_s24, 256 }
   0xc   :  { %162 = vmatprep.subr.mxu0 %v27_v6  ;;  %v16_v17 = vld [vmem:[%s295_s0 + $0x8] sm:$0xff]  ;;  %v133_v18 = vld [vmem:[%s297_s2] ss:$0 sm:$0xff]  ;;  %p191_p0 = scmp.ne.s32.totalorder %s123_s24, %s190_s1  ;;  %p196_p2 = scmp.lt.s32.totalorder %s190_s1, %s190_s1 }
   0xd   :  { %163 = vmatpush3.msra.mxu0 %v27_v6 }
   0xe   :  { %164 = vmatprep.subr.mxu0 %v26_v7  ;;  %p197_p3 = por %p196_p2, %p195_p1 }
   0xf   :  { %165 = vmatpush3.msra.mxu0 %v26_v7 }
  0x10   :  { %166 = vmatprep.subr.mxu0 %v25_v8  ;;  %p198_p4 = pnand %p197_p3, %p191_p0 }
  0x11   :  { %167 = vmatpush3.msra.mxu0 %v25_v8 }
  0x12   :  { %168 = vmatprep.subr.mxu0 %v24_v9 }
  0x13   :  { %169 = vmatpush3.msra.mxu0 %v24_v9 }
  0x14   :  { %170 = vmatprep.subr.mxu0 %v23_v10 }
  0x15   :  { %171 = vmatpush3.msra.mxu0 %v23_v10 }
  0x16   :  { %172 = vmatprep.subr.mxu0 %v22_v11 }
  0x17   :  { %173 = vmatpush3.msra.mxu0 %v22_v11 }
  0x18   :  { %174 = vmatprep.subr.mxu0 %v21_v12 }
  0x19   :  { %175 = vmatpush3.msra.mxu0 %v21_v12 }
  0x1a   :  { %176 = vmatprep.subr.mxu0 %v20_v13 }
  0x1b   :  { %177 = vmatpush3.msra.mxu0 %v20_v13 }
  0x1c   :  { %178 = vmatprep.subr.mxu0 %v19_v14 }
  0x1d   :  { %179 = vmatpush3.msra.mxu0 %v19_v14 }
  0x1e   :  { %180 = vmatprep.subr.mxu0 %v18_v15 }
  0x1f   :  { %181 = vmatpush3.msra.mxu0 %v18_v15 }
  0x20   :  { %182 = vmatprep.subr.mxu0 %v17_v16 }
  0x21   :  { %183 = vmatpush3.msra.mxu0 %v17_v16 }
  0x22   :  { %185 = vmatmul.mubr.f32.vlgmr.msra.gmra.mxu0 %v16_v17 }
  0xe2   :  { %v186_v19 = vpop.f32.mrf.mxu0 }
  0xe3   :  { %v112_v20 = vadd.f32 %v186_v19, %v133_v18 }
  0xe4   :  { %v106_v21 = vpop.f32.mrf.mxu0 }
  0xe5   :  { %116 = vst [vmem:[#allocation2 + $0x8] sm:$0xff] %v112_v20  ;;  %v107_v22 = vadd.f32 %v133_v18, %v106_v21 }
  0xe7   :  { %115 = vst [vmem:[#allocation2] sm:$0xff] %v107_v22 }
  0xe8   :  { %201 = shalt.err (!%p198_p4)
}
  0xe9   :  { %s213_s0 = smov 128   ;;  %s214_s25 = smov 8  }
  0xea   :  { %128 = dma.vmem_to_hbm [thread:$0]  %s123_s24, 256, %s298_s3, [#allocation3], %s213_s0, %s213_s0, %s214_s25  }
  0xeb   :  { %210 = dma.done.wait [#allocation3], 256  }
  0xec   :  { %211 = vsyncadd [#allocation3], 4294967040 }
  0xed   :  { %132 = vsyncpa [#allocation3], 1 }

// kernel: rnn_model_forward.4
= control target key start
LH: loop header
LB: loop body
LE: loop exit
PB: predicated region body
PF: predicated region fallthrough
CT: control target
= control target key end

     0   :  { %s1420_s27 = smov 0   ;;  %s2231_s0 = inlined_call_operand.vmem [shape: f32[9,8,128], index: 0, kind: input, shape index: {}]   ;;  %s2232_s1 = inlined_call_operand.vmem [shape: f32[8,128], index: 1, kind: input, shape index: {}]   ;;  %s2233_s2 = inlined_call_operand.vmem [shape: f32[8,128], index: 2, kind: input, shape index: {}]   ;;  %s2234_s3 = inlined_call_operand.vmem [shape: f32[128,512], index: 3, kind: input, shape index: {}]   ;;  %s2235_s4 = inlined_call_operand.vmem [shape: f32[128,512], index: 4, kind: input, shape index: {}]   ;;  %s2236_s5 = inlined_call_operand.vmem [shape: f32[1,512], index: 5, kind: input, shape index: {}]   ;;  %s2237_s6 = inlined_call_operand.vmem [shape: f32[9,8,128], index: 6, kind: output, shape index: {0}]   ;;  %s2238_s7 = inlined_call_operand.vmem [shape: f32[8,128], index: 7, kind: output, shape index: {1}]   ;;  %s2239_s8 = inlined_call_operand.vmem [shape: f32[8,128], index: 8, kind: output, shape index: {2}]  }
   0x1 LB: > { %s1426_s28 = sadd.s32 4294967295, %s1372_s27   ;;  %p1291_p0 = scmp.ge.s32.totalorder %s1372_s27, 1  ;;  %s1372_s27 = sphi %s1420_s27, %s19_s27  }
   0x2   : > { %p258_p1 = scmp.lt.s32.totalorder %s1372_s27, 4 }
   0x4   : > { %p259_p2 = pnand %p1291_p0, %p258_p1 }
   0x6   : > { %262 = sbr.rel (%p259_p2) target bundleno = 853 (0x355), region = 44 }
   0xb   : > { %s1431_s29 = smul.u32 3, %s1426_s28  ;;  %p1294_p4 = scmp.ne.s32.totalorder %s1426_s28, 0 }
   0xd   : > { %p293_p3 = scmp.lt.s32.totalorder %s1431_s29, 8 }
   0xe   : > { %307 = sbr.rel (%p1294_p4) target bundleno = 22 (0x16), region = 48 }
   0xf   : > { %s294_s30 = scalar_select %p293_p3, %s1431_s29, 8 }
  0x11   : > { %s1292_s9 = sshll.u32 %s294_s30, 3 }
  0x12   : > { %s1440_s12 = scalar_lea.vmem %s2231_s0, %s1292_s9  ;;  %s1445_s15 = scalar_lea.vmem %s2237_s6, %s1292_s9 }
  0x13   : > { %v308_v0 = vld [vmem:[%s2232_s1] sm:$0xff] }
  0x14   : > { %v310_v1 = vld [vmem:[%s2233_s2] sm:$0xff]  ;;  %309 = vst [vmem:[#allocation2] sm:$0xff] %v308_v0 }
  0x15   : > { %311 = vst [vmem:[#allocation3] sm:$0xff] %v310_v1 }
  0x16 PF: > { %v376_v2 = vld [vmem:[%s2234_s3 + $0x1e8] sm:$0xff]  ;;  %v378_v3 = vld [vmem:[%s2234_s3 + $0x1f8] sm:$0xff]  ;;  %v375_v4 = vld [vmem:[%s2234_s3 + $0x1e0] sm:$0xff]  ;;  %s823_s21 = scalar_select %p293_p3, 1, 0 }
  0x17   : > { %401 = vmatprep.subr.mxu0 %v376_v2  ;;  %484 = vmatprep.subr.mxu1 %v378_v3  ;;  %v377_v5 = vld [vmem:[%s2234_s3 + $0x1f0] sm:$0xff]  ;;  %v372_v6 = vld [vmem:[%s2234_s3 + $0x1c8] sm:$0xff]  ;;  %v374_v7 = vld [vmem:[%s2234_s3 + $0x1d8] sm:$0xff]  ;;  %s1010_s22 = sadd.s32 1, %s1431_s29  ;;  %s1200_s24 = sadd.s32 2, %s1431_s29 }
  0x18   : > { %402 = vmatpush1.msra.mxu0 %v375_v4  ;;  %485 = vmatpush1.msra.mxu1 %v377_v5  ;;  %v371_v8 = vld [vmem:[%s2234_s3 + $0x1c0] sm:$0xff]  ;;  %v373_v9 = vld [vmem:[%s2234_s3 + $0x1d0] sm:$0xff]  ;;  %v368_v10 = vld [vmem:[%s2234_s3 + $0x1a8] sm:$0xff]  ;;  %v2240_v4 = vmov 0.0   ;;  %p1011_p5 = scmp.lt.s32.totalorder %s1010_s22, 8  ;;  %p1201_p6 = scmp.lt.s32.totalorder %s1200_s24, 8 }
  0x19   : > { %403 = vmatprep.subr.mxu0 %v372_v6  ;;  %486 = vmatprep.subr.mxu1 %v374_v7  ;;  %v370_v11 = vld [vmem:[%s2234_s3 + $0x1b8] sm:$0xff]  ;;  %v367_v12 = vld [vmem:[%s2234_s3 + $0x1a0] sm:$0xff]  ;;  %v369_v13 = vld [vmem:[%s2234_s3 + $0x1b0] sm:$0xff]  ;;  %p1306_p7 = scmp.ne.s32.totalorder %s1426_s28, 2 }
  0x1a   : > { %404 = vmatpush1.msra.mxu0 %v371_v8  ;;  %487 = vmatpush1.msra.mxu1 %v373_v9  ;;  %v364_v14 = vld [vmem:[%s2234_s3 + $0x188] sm:$0xff]  ;;  %v366_v15 = vld [vmem:[%s2234_s3 + $0x198] sm:$0xff]  ;;  %v363_v16 = vld [vmem:[%s2234_s3 + $0x180] sm:$0xff]  ;;  %s1013_s23 = scalar_select %p1011_p5, 1, 0 }
  0x1b   : > { %405 = vmatprep.subr.mxu0 %v368_v10  ;;  %488 = vmatprep.subr.mxu1 %v370_v11  ;;  %v365_v17 = vld [vmem:[%s2234_s3 + $0x190] sm:$0xff]  ;;  %v360_v18 = vld [vmem:[%s2234_s3 + $0x168] sm:$0xff]  ;;  %v362_v19 = vld [vmem:[%s2234_s3 + $0x178] sm:$0xff]  ;;  %s1203_s25 = scalar_select %p1201_p6, 1, 0 }
  0x1c   : > { %406 = vmatpush1.msra.mxu0 %v367_v12  ;;  %489 = vmatpush1.msra.mxu1 %v369_v13  ;;  %v359_v20 = vld [vmem:[%s2234_s3 + $0x160] sm:$0xff]  ;;  %v361_v21 = vld [vmem:[%s2234_s3 + $0x170] sm:$0xff]  ;;  %v356_v22 = vld [vmem:[%s2234_s3 + $0x148] sm:$0xff] }
  0x1d   : > { %407 = vmatprep.subr.mxu0 %v364_v14  ;;  %490 = vmatprep.subr.mxu1 %v366_v15  ;;  %v358_v23 = vld [vmem:[%s2234_s3 + $0x158] sm:$0xff]  ;;  %v355_v24 = vld [vmem:[%s2234_s3 + $0x140] sm:$0xff]  ;;  %v357_v25 = vld [vmem:[%s2234_s3 + $0x150] sm:$0xff] }
  0x1e   : > { %408 = vmatpush1.msra.mxu0 %v363_v16  ;;  %491 = vmatpush1.msra.mxu1 %v365_v17  ;;  %v352_v26 = vld [vmem:[%s2234_s3 + $0x128] sm:$0xff]  ;;  %v354_v27 = vld [vmem:[%s2234_s3 + $0x138] sm:$0xff]  ;;  %v351_v28 = vld [vmem:[%s2234_s3 + $0x120] sm:$0xff] }
  0x1f   : > { %409 = vmatprep.subr.mxu0 %v360_v18  ;;  %492 = vmatprep.subr.mxu1 %v362_v19  ;;  %v353_v29 = vld [vmem:[%s2234_s3 + $0x130] sm:$0xff]  ;;  %v348_v30 = vld [vmem:[%s2234_s3 + $0x108] sm:$0xff]  ;;  %v350_v31 = vld [vmem:[%s2234_s3 + $0x118] sm:$0xff] }
  0x20   : > { %410 = vmatpush1.msra.mxu0 %v359_v20  ;;  %493 = vmatpush1.msra.mxu1 %v361_v21  ;;  %v347_v32 = vld [vmem:[%s2234_s3 + $0x100] sm:$0xff]  ;;  %v349_v33 = vld [vmem:[%s2234_s3 + $0x110] sm:$0xff]  ;;  %v344_v34 = vld [vmem:[%s2234_s3 + $0xe8] sm:$0xff] }
  0x21   : > { %411 = vmatprep.subr.mxu0 %v356_v22  ;;  %494 = vmatprep.subr.mxu1 %v358_v23  ;;  %v346_v35 = vld [vmem:[%s2234_s3 + $0xf8] sm:$0xff]  ;;  %v343_v36 = vld [vmem:[%s2234_s3 + $0xe0] sm:$0xff]  ;;  %v345_v37 = vld [vmem:[%s2234_s3 + $0xf0] sm:$0xff] }
  0x22   : > { %412 = vmatpush1.msra.mxu0 %v355_v24  ;;  %495 = vmatpush1.msra.mxu1 %v357_v25  ;;  %v340_v38 = vld [vmem:[%s2234_s3 + $0xc8] sm:$0xff]  ;;  %v342_v39 = vld [vmem:[%s2234_s3 + $0xd8] sm:$0xff]  ;;  %v339_v40 = vld [vmem:[%s2234_s3 + $0xc0] sm:$0xff] }
  0x23   : > { %413 = vmatprep.subr.mxu0 %v352_v26  ;;  %496 = vmatprep.subr.mxu1 %v354_v27  ;;  %v341_v41 = vld [vmem:[%s2234_s3 + $0xd0] sm:$0xff]  ;;  %v336_v42 = vld [vmem:[%s2234_s3 + $0xa8] sm:$0xff]  ;;  %v338_v43 = vld [vmem:[%s2234_s3 + $0xb8] sm:$0xff] }
  0x24   : > { %414 = vmatpush1.msra.mxu0 %v351_v28  ;;  %497 = vmatpush1.msra.mxu1 %v353_v29  ;;  %v335_v44 = vld [vmem:[%s2234_s3 + $0xa0] sm:$0xff]  ;;  %v337_v45 = vld [vmem:[%s2234_s3 + $0xb0] sm:$0xff]  ;;  %v332_v46 = vld [vmem:[%s2234_s3 + $0x88] sm:$0xff] }
  0x25   : > { %415 = vmatprep.subr.mxu0 %v348_v30  ;;  %498 = vmatprep.subr.mxu1 %v350_v31  ;;  %v334_v47 = vld [vmem:[%s2234_s3 + $0x98] sm:$0xff]  ;;  %v331_v48 = vld [vmem:[%s2234_s3 + $0x80] sm:$0xff]  ;;  %v333_v49 = vld [vmem:[%s2234_s3 + $0x90] sm:$0xff] }
  0x26   : > { %416 = vmatpush1.msra.mxu0 %v347_v32  ;;  %499 = vmatpush1.msra.mxu1 %v349_v33  ;;  %v328_v50 = vld [vmem:[%s2234_s3 + $0x68] sm:$0xff]  ;;  %v330_v51 = vld [vmem:[%s2234_s3 + $0x78] sm:$0xff]  ;;  %v327_v52 = vld [vmem:[%s2234_s3 + $0x60] sm:$0xff] }
  0x27   : > { %417 = vmatprep.subr.mxu0 %v344_v34  ;;  %500 = vmatprep.subr.mxu1 %v346_v35  ;;  %v329_v53 = vld [vmem:[%s2234_s3 + $0x70] sm:$0xff]  ;;  %v324_v54 = vld [vmem:[%s2234_s3 + $0x48] sm:$0xff]  ;;  %v326_v55 = vld [vmem:[%s2234_s3 + $0x58] sm:$0xff] }
  0x28   : > { %418 = vmatpush1.msra.mxu0 %v343_v36  ;;  %501 = vmatpush1.msra.mxu1 %v345_v37  ;;  %v323_v56 = vld [vmem:[%s2234_s3 + $0x40] sm:$0xff]  ;;  %v325_v57 = vld [vmem:[%s2234_s3 + $0x50] sm:$0xff]  ;;  %v320_v58 = vld [vmem:[%s2234_s3 + $0x28] sm:$0xff] }
  0x29   : > { %419 = vmatprep.subr.mxu0 %v340_v38  ;;  %502 = vmatprep.subr.mxu1 %v342_v39  ;;  %v322_v59 = vld [vmem:[%s2234_s3 + $0x38] sm:$0xff]  ;;  %v319_v60 = vld [vmem:[%s2234_s3 + $0x20] sm:$0xff]  ;;  %v321_v61 = vld [vmem:[%s2234_s3 + $0x30] sm:$0xff] }
  0x2a   : > { %420 = vmatpush1.msra.mxu0 %v339_v40  ;;  %503 = vmatpush1.msra.mxu1 %v341_v41  ;;  %v316_v62 = vld [vmem:[%s2234_s3 + $0x8] sm:$0xff]  ;;  %v318_v63 = vld [vmem:[%s2234_s3 + $0x18] sm:$0xff]  ;;  %v315_v0 = vld [vmem:[%s2234_s3] sm:$0xff] }
  0x2b   : > { %421 = vmatprep.subr.mxu0 %v336_v42  ;;  %504 = vmatprep.subr.mxu1 %v338_v43  ;;  %v317_v1 = vld [vmem:[%s2234_s3 + $0x10] sm:$0xff]  ;;  %v312_v2 = vld [vmem:[%s1440_s12] sm:$0xff]  ;;  %v1650_v3 = vld [vmem:[%s2235_s4 + $0x1e8] sm:$0xff] }
  0x2c   : > { %422 = vmatpush1.msra.mxu0 %v335_v44  ;;  %505 = vmatpush1.msra.mxu1 %v337_v45  ;;  %v1656_v5 = vld [vmem:[%s2235_s4 + $0x1f8] sm:$0xff]  ;;  %v1661_v6 = vld [vmem:[%s2235_s4 + $0x1e0] sm:$0xff]  ;;  %v1666_v7 = vld [vmem:[%s2235_s4 + $0x1f0] sm:$0xff] }
  0x2d   : > { %423 = vmatprep.subr.mxu0 %v332_v46  ;;  %506 = vmatprep.subr.mxu1 %v334_v47  ;;  %v1673_v8 = vld [vmem:[%s2235_s4 + $0x1c8] sm:$0xff]  ;;  %v1678_v9 = vld [vmem:[%s2235_s4 + $0x1d8] sm:$0xff]  ;;  %v1684_v10 = vld [vmem:[%s2235_s4 + $0x1c0] sm:$0xff] }
  0x2e   : > { %424 = vmatpush1.msra.mxu0 %v331_v48  ;;  %507 = vmatpush1.msra.mxu1 %v333_v49  ;;  %v1689_v11 = vld [vmem:[%s2235_s4 + $0x1d0] sm:$0xff]  ;;  %v1696_v12 = vld [vmem:[%s2235_s4 + $0x1a8] sm:$0xff]  ;;  %v1701_v13 = vld [vmem:[%s2235_s4 + $0x1b8] sm:$0xff] }
  0x2f   : > { %425 = vmatprep.subr.mxu0 %v328_v50  ;;  %508 = vmatprep.subr.mxu1 %v330_v51  ;;  %v1708_v14 = vld [vmem:[%s2235_s4 + $0x1a0] sm:$0xff]  ;;  %v1713_v15 = vld [vmem:[%s2235_s4 + $0x1b0] sm:$0xff]  ;;  %v1720_v16 = vld [vmem:[%s2235_s4 + $0x188] sm:$0xff] }
  0x30   : > { %426 = vmatpush1.msra.mxu0 %v327_v52  ;;  %509 = vmatpush1.msra.mxu1 %v329_v53  ;;  %v1725_v17 = vld [vmem:[%s2235_s4 + $0x198] sm:$0xff]  ;;  %v1732_v18 = vld [vmem:[%s2235_s4 + $0x180] sm:$0xff]  ;;  %v1737_v19 = vld [vmem:[%s2235_s4 + $0x190] sm:$0xff] }
  0x31   : > { %427 = vmatprep.subr.mxu0 %v324_v54  ;;  %510 = vmatprep.subr.mxu1 %v326_v55  ;;  %v1744_v20 = vld [vmem:[%s2235_s4 + $0x168] sm:$0xff]  ;;  %v1749_v21 = vld [vmem:[%s2235_s4 + $0x178] sm:$0xff]  ;;  %v1756_v22 = vld [vmem:[%s2235_s4 + $0x160] sm:$0xff] }
  0x32   : > { %428 = vmatpush1.msra.mxu0 %v323_v56  ;;  %511 = vmatpush1.msra.mxu1 %v325_v57  ;;  %v1761_v23 = vld [vmem:[%s2235_s4 + $0x170] sm:$0xff]  ;;  %v1768_v24 = vld [vmem:[%s2235_s4 + $0x148] sm:$0xff]  ;;  %v1773_v25 = vld [vmem:[%s2235_s4 + $0x158] sm:$0xff] }
  0x33   : > { %429 = vmatprep.subr.mxu0 %v320_v58  ;;  %512 = vmatprep.subr.mxu1 %v322_v59  ;;  %v1780_v26 = vld [vmem:[%s2235_s4 + $0x140] sm:$0xff]  ;;  %v1785_v27 = vld [vmem:[%s2235_s4 + $0x150] sm:$0xff]  ;;  %v1792_v28 = vld [vmem:[%s2235_s4 + $0x128] sm:$0xff] }
  0x34   : > { %430 = vmatpush1.msra.mxu0 %v319_v60  ;;  %513 = vmatpush1.msra.mxu1 %v321_v61  ;;  %v1797_v29 = vld [vmem:[%s2235_s4 + $0x138] sm:$0xff]  ;;  %v1804_v30 = vld [vmem:[%s2235_s4 + $0x120] sm:$0xff]  ;;  %v1809_v31 = vld [vmem:[%s2235_s4 + $0x130] sm:$0xff] }
  0x35   : > { %431 = vmatprep.subr.mxu0 %v316_v62  ;;  %514 = vmatprep.subr.mxu1 %v318_v63  ;;  %v1816_v32 = vld [vmem:[%s2235_s4 + $0x108] sm:$0xff]  ;;  %v1821_v33 = vld [vmem:[%s2235_s4 + $0x118] sm:$0xff]  ;;  %v1828_v34 = vld [vmem:[%s2235_s4 + $0x100] sm:$0xff] }
  0x36   : > { %432 = vmatpush1.msra.mxu0 %v315_v0  ;;  %465 = vmatprep.mubr.f32.mxu0 %v2240_v4  ;;  %v1833_v35 = vld [vmem:[%s2235_s4 + $0x110] sm:$0xff]  ;;  %v1840_v36 = vld [vmem:[%s2235_s4 + $0xe8] sm:$0xff]  ;;  %v1845_v37 = vld [vmem:[%s2235_s4 + $0xf8] sm:$0xff] }
  0x37   : > { %515 = vmatpush1.msra.mxu1 %v317_v1  ;;  %466 = vmatmul.mubr.f32.vlgmr.msra.gmra.mxu0 %v312_v2  ;;  %v1852_v38 = vld [vmem:[%s2235_s4 + $0xe0] sm:$0xff]  ;;  %v1857_v39 = vld [vmem:[%s2235_s4 + $0xf0] sm:$0xff]  ;;  %v1864_v40 = vld [vmem:[%s2235_s4 + $0xc8] sm:$0xff] }
  0x38   : > { %548 = vmatprep.mubr.f32.mxu1 %v2240_v4  ;;  %649 = vmatprep.subr.mxu0 %v1650_v3  ;;  %v1869_v41 = vld [vmem:[%s2235_s4 + $0xd8] sm:$0xff]  ;;  %v1876_v42 = vld [vmem:[%s2235_s4 + $0xc0] sm:$0xff]  ;;  %v1881_v43 = vld [vmem:[%s2235_s4 + $0xd0] sm:$0xff] }
  0x39   : > { %720 = vmatprep.subr.mxu1 %v1656_v5  ;;  %549 = vmatmul.mubr.f32.vlgmr.msra.gmra.mxu1 %v312_v2  ;;  %v1888_v44 = vld [vmem:[%s2235_s4 + $0xa8] sm:$0xff]  ;;  %v1893_v45 = vld [vmem:[%s2235_s4 + $0xb8] sm:$0xff]  ;;  %v1900_v46 = vld [vmem:[%s2235_s4 + $0xa0] sm:$0xff] }
  0x3a   : > { %650 = vmatpush1.msra.mxu0 %v1661_v6  ;;  %721 = vmatpush1.msra.mxu1 %v1666_v7  ;;  %2269 = vst [vmem:[#allocation5_spill] sm:$0xff] %v1888_v44  ;;  %2270 = vst [vmem:[#allocation6_spill] sm:$0xff] %v1893_v45  ;;  %v1907_v47 = vld [vmem:[%s2235_s4 + $0xb0] sm:$0xff]  ;;  %v313_v48 = vld [vmem:[%s1440_s12 + $0x8] sm:$0xff] }
  0x3b   : > { %651 = vmatprep.subr.mxu0 %v1673_v8  ;;  %722 = vmatprep.subr.mxu1 %v1678_v9  ;;  %2271 = vst [vmem:[#allocation7_spill] sm:$0xff] %v1900_v46  ;;  %2272 = vst [vmem:[#allocation8_spill] sm:$0xff] %v1907_v47  ;;  %v1915_v49 = vld [vmem:[%s2235_s4 + $0x88] sm:$0xff]  ;;  %v1920_v50 = vld [vmem:[%s2235_s4 + $0x98] sm:$0xff] }
  0x3c   : > { %652 = vmatpush1.msra.mxu0 %v1684_v10  ;;  %723 = vmatpush1.msra.mxu1 %v1689_v11  ;;  %2273 = vst [vmem:[#allocation9_spill] sm:$0xff] %v1915_v49  ;;  %2274 = vst [vmem:[#allocation10_spill] sm:$0xff] %v1920_v50  ;;  %v1927_v51 = vld [vmem:[%s2235_s4 + $0x80] sm:$0xff]  ;;  %v1933_v52 = vld [vmem:[%s2235_s4 + $0x90] sm:$0xff] }
  0x3d   : > { %653 = vmatprep.subr.mxu0 %v1696_v12  ;;  %724 = vmatprep.subr.mxu1 %v1701_v13  ;;  %2275 = vst [vmem:[#allocation11_spill] sm:$0xff] %v1927_v51  ;;  %2276 = vst [vmem:[#allocation12_spill] sm:$0xff] %v1933_v52  ;;  %v1938_v53 = vld [vmem:[%s2235_s4 + $0x68] sm:$0xff]  ;;  %v1945_v54 = vld [vmem:[%s2235_s4 + $0x78] sm:$0xff] }
  0x3e   : > { %654 = vmatpush1.msra.mxu0 %v1708_v14  ;;  %725 = vmatpush1.msra.mxu1 %v1713_v15  ;;  %2277 = vst [vmem:[#allocation13_spill] sm:$0xff] %v1938_v53  ;;  %2278 = vst [vmem:[#allocation14_spill] sm:$0xff] %v1945_v54  ;;  %v1952_v55 = vld [vmem:[%s2235_s4 + $0x60] sm:$0xff]  ;;  %v1959_v56 = vld [vmem:[%s2235_s4 + $0x70] sm:$0xff] }
  0x3f   : > { %655 = vmatprep.subr.mxu0 %v1720_v16  ;;  %726 = vmatprep.subr.mxu1 %v1725_v17  ;;  %2279 = vst [vmem:[#allocation15_spill] sm:$0xff] %v1952_v55  ;;  %2280 = vst [vmem:[#allocation16_spill] sm:$0xff] %v1959_v56  ;;  %v314_v57 = vld [vmem:[%s1440_s12 + $0x10] sm:$0xff]  ;;  %v1966_v58 = vld [vmem:[%s2235_s4 + $0x48] sm:$0xff] }
  0x40   : > { %656 = vmatpush1.msra.mxu0 %v1732_v18  ;;  %727 = vmatpush1.msra.mxu1 %v1737_v19  ;;  %2281 = vst [vmem:[#allocation17_spill] sm:$0xff] %v1966_v58  ;;  %v1971_v59 = vld [vmem:[%s2235_s4 + $0x58] sm:$0xff]  ;;  %v1978_v60 = vld [vmem:[%s2235_s4 + $0x40] sm:$0xff]  ;;  %v1984_v61 = vld [vmem:[%s2235_s4 + $0x50] sm:$0xff] }
  0x41   : > { %657 = vmatprep.subr.mxu0 %v1744_v20  ;;  %728 = vmatprep.subr.mxu1 %v1749_v21  ;;  %2282 = vst [vmem:[#allocation18_spill] sm:$0xff] %v1971_v59  ;;  %2283 = vst [vmem:[#allocation19_spill] sm:$0xff] %v1978_v60  ;;  %v1989_v62 = vld [vmem:[%s2235_s4 + $0x28] sm:$0xff]  ;;  %v1996_v63 = vld [vmem:[%s2235_s4 + $0x38] sm:$0xff] }
  0x42   : > { %658 = vmatpush1.msra.mxu0 %v1756_v22  ;;  %729 = vmatpush1.msra.mxu1 %v1761_v23  ;;  %2284 = vst [vmem:[#allocation20_spill] sm:$0xff] %v1984_v61  ;;  %2285 = vst [vmem:[#allocation21_spill] sm:$0xff] %v1989_v62  ;;  %v2003_v0 = vld [vmem:[%s2235_s4 + $0x20] sm:$0xff]  ;;  %v2008_v1 = vld [vmem:[%s2235_s4 + $0x30] sm:$0xff] }
  0x43   : > { %659 = vmatprep.subr.mxu0 %v1768_v24  ;;  %730 = vmatprep.subr.mxu1 %v1773_v25  ;;  %2286 = vst [vmem:[#allocation22_spill] sm:$0xff] %v1996_v63  ;;  %2287 = vst [vmem:[#allocation23_spill] sm:$0xff] %v2003_v0  ;;  %v2015_v2 = vld [vmem:[%s2235_s4 + $0x8] sm:$0xff] }
  0x44   : > { %660 = vmatpush1.msra.mxu0 %v1780_v26  ;;  %731 = vmatpush1.msra.mxu1 %v1785_v27  ;;  %2288 = vst [vmem:[#allocation24_spill] sm:$0xff] %v2008_v1  ;;  %2289 = vst [vmem:[#allocation25_spill] sm:$0xff] %v2015_v2 }
  0x45   : > { %661 = vmatprep.subr.mxu0 %v1792_v28  ;;  %732 = vmatprep.subr.mxu1 %v1797_v29 }
  0x46   : > { %662 = vmatpush1.msra.mxu0 %v1804_v30  ;;  %733 = vmatpush1.msra.mxu1 %v1809_v31 }
  0x47   : > { %663 = vmatprep.subr.mxu0 %v1816_v32  ;;  %734 = vmatprep.subr.mxu1 %v1821_v33 }
  0x48   : > { %664 = vmatpush1.msra.mxu0 %v1828_v34  ;;  %735 = vmatpush1.msra.mxu1 %v1833_v35 }
  0x49   : > { %665 = vmatprep.subr.mxu0 %v1840_v36  ;;  %736 = vmatprep.subr.mxu1 %v1845_v37 }
  0x4a   : > { %666 = vmatpush1.msra.mxu0 %v1852_v38  ;;  %737 = vmatpush1.msra.mxu1 %v1857_v39 }
  0x4b   : > { %667 = vmatprep.subr.mxu0 %v1864_v40  ;;  %738 = vmatprep.subr.mxu1 %v1869_v41 }
  0x4c   : > { %668 = vmatpush1.msra.mxu0 %v1876_v42  ;;  %739 = vmatpush1.msra.mxu1 %v1881_v43 }
  0x4d   : > { %669 = vmatprep.subr.mxu0 %v1888_v44  ;;  %740 = vmatprep.subr.mxu1 %v1893_v45 }
  0x4e   : > { %471 = vmatprep.mubr.f32.mxu0 %v2240_v4  ;;  %670 = vmatpush1.msra.mxu0 %v1900_v46 }
  0x4f   : > { %741 = vmatpush1.msra.mxu1 %v1907_v47  ;;  %472 = vmatmul.mubr.f32.gmra.mxu0 %v313_v48 }
  0x50   : > { %671 = vmatprep.subr.mxu0 %v1915_v49  ;;  %742 = vmatprep.subr.mxu1 %v1920_v50 }
  0x51   : > { %554 = vmatprep.mubr.f32.mxu1 %v2240_v4  ;;  %672 = vmatpush1.msra.mxu0 %v1927_v51 }
  0x52   : > { %743 = vmatpush1.msra.mxu1 %v1933_v52  ;;  %673 = vmatprep.subr.mxu0 %v1938_v53 }
  0x53   : > { %555 = vmatmul.mubr.f32.gmra.mxu1 %v313_v48  ;;  %744 = vmatprep.subr.mxu1 %v1945_v54  ;;  %v2020_v48 = vld [vmem:[%s2235_s4 + $0x18] sm:$0xff] }
  0x54   : > { %477 = vmatprep.mubr.f32.mxu0 %v2240_v4  ;;  %674 = vmatpush1.msra.mxu0 %v1952_v55  ;;  %2290 = vst [vmem:[#allocation26_spill] sm:$0xff] %v2020_v48 }
  0x55   : > { %745 = vmatpush1.msra.mxu1 %v1959_v56  ;;  %478 = vmatmul.mubr.f32.gmra.mxu0 %v314_v57 }
  0x56   : > { %675 = vmatprep.subr.mxu0 %v1966_v58  ;;  %746 = vmatprep.subr.mxu1 %v1971_v59 }
  0x57   : > { %560 = vmatprep.mubr.f32.mxu1 %v2240_v4  ;;  %676 = vmatpush1.msra.mxu0 %v1978_v60  ;;  %v2026_v4 = vld [vmem:[%s2235_s4] sm:$0xff] }
  0x58   : > { %747 = vmatpush1.msra.mxu1 %v1984_v61  ;;  %677 = vmatprep.subr.mxu0 %v1989_v62  ;;  %2291 = vst [vmem:[#allocation27_spill] sm:$0xff] %v2026_v4  ;;  %v2033_v62 = vld [vmem:[%s2235_s4 + $0x10] sm:$0xff] }
  0x59   : > { %561 = vmatmul.mubr.f32.gmra.mxu1 %v314_v57  ;;  %748 = vmatprep.subr.mxu1 %v1996_v63  ;;  %2292 = vst [vmem:[#allocation28_spill] sm:$0xff] %v2033_v62  ;;  %v2037_v57 = vld [vmem:[#allocation2] sm:$0xff]  ;;  %v2293_v63 = vmov 0.0  }
  0x5a   : > { %678 = vmatpush1.msra.mxu0 %v2003_v0  ;;  %749 = vmatpush1.msra.mxu1 %v2008_v1 }
  0x5b   : > { %679 = vmatprep.subr.mxu0 %v2015_v2  ;;  %750 = vmatprep.subr.mxu1 %v2020_v48 }
  0x5c   : > { %680 = vmatpush1.msra.mxu0 %v2026_v4  ;;  %713 = vmatprep.mubr.f32.mxu0 %v2293_v63 }
  0x5d   : > { %751 = vmatpush1.msra.mxu1 %v2033_v62  ;;  %784 = vmatprep.mubr.f32.mxu1 %v2293_v63 }
  0x5e   : > { %714 = vmatmul.mubr.f32.vlgmr.msra.gmra.mxu0 %v2037_v57  ;;  %785 = vmatmul.mubr.f32.vlgmr.msra.gmra.mxu1 %v2037_v57 }
  0x5f   : > { %837 = vmatprep.subr.mxu0 %v1650_v3  ;;  %908 = vmatprep.subr.mxu1 %v1656_v5 }
  0x60   : > { %838 = vmatpush1.msra.mxu0 %v1661_v6  ;;  %909 = vmatpush1.msra.mxu1 %v1666_v7 }
  0x61   : > { %839 = vmatprep.subr.mxu0 %v1673_v8  ;;  %910 = vmatprep.subr.mxu1 %v1678_v9 }
  0x62   : > { %840 = vmatpush1.msra.mxu0 %v1684_v10  ;;  %911 = vmatpush1.msra.mxu1 %v1689_v11 }
  0x63   : > { %841 = vmatprep.subr.mxu0 %v1696_v12  ;;  %912 = vmatprep.subr.mxu1 %v1701_v13 }
  0x64   : > { %842 = vmatpush1.msra.mxu0 %v1708_v14  ;;  %913 = vmatpush1.msra.mxu1 %v1713_v15 }
  0x65   : > { %843 = vmatprep.subr.mxu0 %v1720_v16  ;;  %914 = vmatprep.subr.mxu1 %v1725_v17 }
  0x66   : > { %844 = vmatpush1.msra.mxu0 %v1732_v18  ;;  %915 = vmatpush1.msra.mxu1 %v1737_v19 }
  0x67   : > { %845 = vmatprep.subr.mxu0 %v1744_v20  ;;  %916 = vmatprep.subr.mxu1 %v1749_v21 }
  0x68   : > { %846 = vmatpush1.msra.mxu0 %v1756_v22  ;;  %917 = vmatpush1.msra.mxu1 %v1761_v23 }
  0x69   : > { %847 = vmatprep.subr.mxu0 %v1768_v24  ;;  %918 = vmatprep.subr.mxu1 %v1773_v25 }
  0x6a   : > { %848 = vmatpush1.msra.mxu0 %v1780_v26  ;;  %919 = vmatpush1.msra.mxu1 %v1785_v27 }
  0x6b   : > { %849 = vmatprep.subr.mxu0 %v1792_v28  ;;  %920 = vmatprep.subr.mxu1 %v1797_v29 }
  0x6c   : > { %850 = vmatpush1.msra.mxu0 %v1804_v30  ;;  %921 = vmatpush1.msra.mxu1 %v1809_v31 }
  0x6d   : > { %851 = vmatprep.subr.mxu0 %v1816_v32  ;;  %922 = vmatprep.subr.mxu1 %v1821_v33 }
  0x6e   : > { %852 = vmatpush1.msra.mxu0 %v1828_v34  ;;  %923 = vmatpush1.msra.mxu1 %v1833_v35 }
  0x6f   : > { %853 = vmatprep.subr.mxu0 %v1840_v36  ;;  %924 = vmatprep.subr.mxu1 %v1845_v37 }
  0x70   : > { %854 = vmatpush1.msra.mxu0 %v1852_v38  ;;  %925 = vmatpush1.msra.mxu1 %v1857_v39 }
  0x71   : > { %855 = vmatprep.subr.mxu0 %v1864_v40  ;;  %926 = vmatprep.subr.mxu1 %v1869_v41 }
  0x72   : > { %856 = vmatpush1.msra.mxu0 %v1876_v42  ;;  %927 = vmatpush1.msra.mxu1 %v1881_v43 }
  0x73   : > { %857 = vmatprep.subr.mxu0 %v1888_v44  ;;  %928 = vmatprep.subr.mxu1 %v1893_v45 }
  0x74   : > { %858 = vmatpush1.msra.mxu0 %v1900_v46  ;;  %929 = vmatpush1.msra.mxu1 %v1907_v47 }
  0x75   : > { %859 = vmatprep.subr.mxu0 %v1915_v49  ;;  %930 = vmatprep.subr.mxu1 %v1920_v50  ;;  %v2294_v50 = vld [vmem:[#allocation21_spill] sm:$0xff] }
  0x76   : > { %860 = vmatpush1.msra.mxu0 %v1927_v51  ;;  %931 = vmatpush1.msra.mxu1 %v1933_v52  ;;  %v2295_v51 = vld [vmem:[#allocation22_spill] sm:$0xff] }
  0x77   : > { %861 = vmatprep.subr.mxu0 %v1938_v53  ;;  %932 = vmatprep.subr.mxu1 %v1945_v54 }
  0x78   : > { %862 = vmatpush1.msra.mxu0 %v1952_v55  ;;  %933 = vmatpush1.msra.mxu1 %v1959_v56 }
  0x79   : > { %863 = vmatprep.subr.mxu0 %v1966_v58  ;;  %934 = vmatprep.subr.mxu1 %v1971_v59 }
  0x7a   : > { %864 = vmatpush1.msra.mxu0 %v1978_v60  ;;  %935 = vmatpush1.msra.mxu1 %v1984_v61 }
  0x7b   : > { %865 = vmatprep.subr.mxu0 %v2294_v50  ;;  %936 = vmatprep.subr.mxu1 %v2295_v51  ;;  %v381_v51 = vlaneseq }
  0x7c   : > { %866 = vmatpush1.msra.mxu0 %v2003_v0  ;;  %937 = vmatpush1.msra.mxu1 %v2008_v1 }
  0x7d   : > { %867 = vmatprep.subr.mxu0 %v2015_v2  ;;  %938 = vmatprep.subr.mxu1 %v2020_v48  ;;  %v382_v0 = vshrl.u32 %v381_v51, 7  ;;  %v379_v48 = vld [vmem:[%s2236_s5] sm:$0xf] }
  0x7e   : > { %868 = vmatpush1.msra.mxu0 %v2026_v4  ;;  %901 = vmatprep.mubr.f32.mxu0 %v2293_v63 }
  0x7f   : > { %939 = vmatpush1.msra.mxu1 %v2033_v62  ;;  %972 = vmatprep.mubr.f32.mxu1 %v2293_v63  ;;  %v383_v1 = vsub.s32 0, %v382_v0  ;;  %v387_v2 = vsub.s32 1, %v382_v0  ;;  %v391_v59 = vsub.s32 2, %v382_v0  ;;  %v395_v63 = vsub.s32 3, %v382_v0 }
  0x80   : > { %1027 = vmatprep.subr.mxu0 %v1650_v3  ;;  %1098 = vmatprep.subr.mxu1 %v1656_v5 }
  0x81   : > { %v384_v60 = vrot.slane %v379_v48, %v383_v1  ;;  %v388_v58 = vrot.slane %v379_v48, %v387_v2  ;;  %v392_v55 = vrot.slane %v379_v48, %v391_v59  ;;  %v396_v53 = vrot.slane %v379_v48, %v395_v63 }
  0xf7   : > { %v467_v50 = vpop.f32.mrf.mxu0 }
  0xf9   : > { %v469_v4 = vpop.f32.mrf.mxu0  ;;  %v550_v61 = vpop.f32.mrf.mxu1 }
  0xfa   : > { %v470_v63 = vadd.f32 %v469_v4, %v388_v58 }
  0xfb   : > { %v552_v3 = vpop.f32.mrf.mxu1 }
 0x10f   : > { %v473_v62 = vpop.f32.mrf.mxu0 }
 0x110   : > { %v2116_v56 = vadd.f32 %v473_v62, %v384_v60 }
 0x111   : > { %v475_v5 = vpop.f32.mrf.mxu0 }
 0x112   : > { %2296 = vst [vmem:[#allocation29_spill] sm:$0xff] %v2116_v56  ;;  %v2118_v51 = vadd.f32 %v475_v5, %v388_v58  ;;  %v468_v5 = vadd.f32 %v467_v50, %v384_v60 }
 0x113   : > { %v556_v54 = vpop.f32.mrf.mxu1 }
 0x114   : > { %2297 = vst [vmem:[#allocation30_spill] sm:$0xff] %v2118_v51  ;;  %v2120_v52 = vadd.f32 %v556_v54, %v392_v55 }
 0x115   : > { %v479_v49 = vpop.f32.mrf.mxu0  ;;  %v558_v47 = vpop.f32.mrf.mxu1 }
 0x116   : > { %2298 = vst [vmem:[#allocation31_spill] sm:$0xff] %v2120_v52  ;;  %v2122_v46 = vadd.f32 %v479_v49, %v384_v60  ;;  %v2124_v1 = vadd.f32 %v558_v47, %v396_v53 }
 0x117   : > { %v481_v45 = vpop.f32.mrf.mxu0 }
 0x118   : > { %2299 = vst [vmem:[#allocation32_spill] sm:$0xff] %v2122_v46  ;;  %2300 = vst [vmem:[#allocation33_spill] sm:$0xff] %v2124_v1  ;;  %v2126_v2 = vadd.f32 %v481_v45, %v388_v58  ;;  %v814_v58 = vld [vmem:[#allocation3] sm:$0xff] }
 0x119   : > { %v562_v62 = vpop.f32.mrf.mxu1 }
 0x11a   : > { %2301 = vst [vmem:[#allocation34_spill] sm:$0xff] %v2126_v2  ;;  %v2128_v0 = vadd.f32 %v562_v62, %v392_v55  ;;  %v553_v2 = vadd.f32 %v552_v3, %v396_v53  ;;  %v551_v62 = vadd.f32 %v550_v61, %v392_v55 }
 0x11b   : > { %v564_v56 = vpop.f32.mrf.mxu1 }
 0x11c   : > { %2302 = vst [vmem:[#allocation35_spill] sm:$0xff] %v2128_v0  ;;  %v2130_v59 = vadd.f32 %v564_v56, %v396_v53  ;;  %v824_v53 = vstv %s823_s21 }
 0x11d   : > { %vm825_vm0 = vcmp.eq.s32.totalorder %v824_v53, 1 }
 0x11e   : > { %2303 = vst [vmem:[#allocation36_spill] sm:$0xff] %v2130_v59  ;;  %v715_v51 = vpop.f32.mrf.mxu0  ;;  %v786_v49 = vpop.f32.mrf.mxu1 }
 0x11f   : > { %v791_v54 = vadd.f32 %v715_v51, %v468_v5  ;;  %v793_v56 = vadd.f32 %v786_v49, %v551_v62 }
 0x120   : > { %v717_v48 = vpop.f32.mrf.mxu0  ;;  %v788_v45 = vpop.f32.mrf.mxu1 }
 0x121   : > { %v1295_v52 = vmul.f32 -1.442695, %v791_v54  ;;  %v792_v44 = vadd.f32 %v717_v48, %v470_v63  ;;  %v794_v46 = vadd.f32 %v788_v45, %v553_v2 }
 0x123   : > { %1318 = vpow2.f32 %v1295_v52  ;;  %v1296_v47 = vmul.f32 -1.442695, %v792_v44  ;;  %v1297_v0 = vmul.f32 -1.442695, %v794_v46 }
 0x125   : > { %1320 = vpow2.f32 %v1296_v47 }
 0x126   : > { %1322 = vpow2.f32 %v1297_v0 }
 0x130   : > { %v1319_v1 = vpop.eup %1318 }
 0x131   : > { %v798_v59 = vadd.f32 1.0, %v1319_v1 }
 0x132   : > { %v1321_v50 = vpop.eup %1320 }
 0x133   : > { %1324 = vrcp.f32 %v798_v59  ;;  %v804_v4 = vadd.f32 1.0, %v1321_v50  ;;  %v1323_v52 = vpop.eup %1322 }
 0x134   : > { %1326 = vtanh.f32 %v793_v56  ;;  %v811_v55 = vadd.f32 1.0, %v1323_v52 }
 0x135   : > { %1328 = vrcp.f32 %v804_v4  ;;  %v1014_v4 = vstv %s1013_s23 }
 0x136   : > { %1330 = vrcp.f32 %v811_v55  ;;  %vm1015_vm1 = vcmp.eq.s32.totalorder %v1014_v4, 1 }
 0x140   : > { %v1325_v44 = vpop.eup %1324 }
 0x141   : > { %v1327_v60 = vpop.eup %1326 }
 0x142   : > { %v1329_v3 = vpop.eup %1328  ;;  %v816_v46 = vmul.f32 %v1327_v60, %v1325_v44 }
 0x143   : > { %v815_v61 = vmul.f32 %v1329_v3, %v814_v58  ;;  %v1331_v2 = vpop.eup %1330 }
 0x145   : > { %v817_v51 = vadd.f32 %v816_v46, %v815_v61 }
 0x147   : > { %1332 = vtanh.f32 %v817_v51  ;;  %v2134_v1 = vsel %vm825_vm0, %v817_v51, %v814_v58 }
 0x154   : > { %v1333_v0 = vpop.eup %1332 }
 0x155   : > { %v819_v59 = vmul.f32 %v1333_v0, %v1331_v2  ;;  %v2333_v2 = vld [vmem:[#allocation32_spill] sm:$0xff] }
 0x157   : > { %820 = vst [vmem:[%s1445_s15] sm:$0xff] %v819_v59  ;;  %v2138_v5 = vsel %vm825_vm0, %v819_v59, %v2037_v57 }
 0x158   : > { %902 = vmatmul.mubr.f32.vlgmr.msra.gmra.mxu0 %v2138_v5  ;;  %973 = vmatmul.mubr.f32.vlgmr.msra.gmra.mxu1 %v2138_v5 }
 0x159   : > { %1028 = vmatpush1.msra.mxu0 %v1661_v6  ;;  %1099 = vmatpush1.msra.mxu1 %v1666_v7  ;;  %v2304_v6 = vld [vmem:[#allocation5_spill] sm:$0xff]  ;;  %v2305_v7 = vld [vmem:[#allocation6_spill] sm:$0xff] }
 0x15a   : > { %1029 = vmatprep.subr.mxu0 %v1673_v8  ;;  %1100 = vmatprep.subr.mxu1 %v1678_v9  ;;  %v2306_v8 = vld [vmem:[#allocation7_spill] sm:$0xff]  ;;  %v2307_v9 = vld [vmem:[#allocation8_spill] sm:$0xff] }
 0x15b   : > { %1030 = vmatpush1.msra.mxu0 %v1684_v10  ;;  %1101 = vmatpush1.msra.mxu1 %v1689_v11  ;;  %v2308_v10 = vld [vmem:[#allocation9_spill] sm:$0xff]  ;;  %v2309_v11 = vld [vmem:[#allocation10_spill] sm:$0xff] }
 0x15c   : > { %1031 = vmatprep.subr.mxu0 %v1696_v12  ;;  %1102 = vmatprep.subr.mxu1 %v1701_v13  ;;  %v2310_v12 = vld [vmem:[#allocation11_spill] sm:$0xff]  ;;  %v2311_v13 = vld [vmem:[#allocation12_spill] sm:$0xff] }
 0x15d   : > { %1032 = vmatpush1.msra.mxu0 %v1708_v14  ;;  %1103 = vmatpush1.msra.mxu1 %v1713_v15  ;;  %v2312_v14 = vld [vmem:[#allocation13_spill] sm:$0xff]  ;;  %v2313_v15 = vld [vmem:[#allocation14_spill] sm:$0xff] }
 0x15e   : > { %1033 = vmatprep.subr.mxu0 %v1720_v16  ;;  %1104 = vmatprep.subr.mxu1 %v1725_v17  ;;  %v2314_v16 = vld [vmem:[#allocation15_spill] sm:$0xff]  ;;  %v2315_v17 = vld [vmem:[#allocation16_spill] sm:$0xff] }
 0x15f   : > { %1034 = vmatpush1.msra.mxu0 %v1732_v18  ;;  %1105 = vmatpush1.msra.mxu1 %v1737_v19  ;;  %v2316_v18 = vld [vmem:[#allocation17_spill] sm:$0xff]  ;;  %v2317_v19 = vld [vmem:[#allocation18_spill] sm:$0xff] }
 0x160   : > { %1035 = vmatprep.subr.mxu0 %v1744_v20  ;;  %1106 = vmatprep.subr.mxu1 %v1749_v21  ;;  %v2318_v20 = vld [vmem:[#allocation19_spill] sm:$0xff]  ;;  %v2319_v21 = vld [vmem:[#allocation20_spill] sm:$0xff] }
 0x161   : > { %1036 = vmatpush1.msra.mxu0 %v1756_v22  ;;  %1107 = vmatpush1.msra.mxu1 %v1761_v23  ;;  %v2320_v22 = vld [vmem:[#allocation21_spill] sm:$0xff]  ;;  %v2321_v23 = vld [vmem:[#allocation22_spill] sm:$0xff] }
 0x162   : > { %1037 = vmatprep.subr.mxu0 %v1768_v24  ;;  %1108 = vmatprep.subr.mxu1 %v1773_v25  ;;  %v2322_v24 = vld [vmem:[#allocation23_spill] sm:$0xff]  ;;  %v2323_v25 = vld [vmem:[#allocation24_spill] sm:$0xff] }
 0x163   : > { %1038 = vmatpush1.msra.mxu0 %v1780_v26  ;;  %1109 = vmatpush1.msra.mxu1 %v1785_v27  ;;  %v2324_v26 = vld [vmem:[#allocation25_spill] sm:$0xff]  ;;  %v2325_v27 = vld [vmem:[#allocation26_spill] sm:$0xff] }
 0x164   : > { %1039 = vmatprep.subr.mxu0 %v1792_v28  ;;  %1110 = vmatprep.subr.mxu1 %v1797_v29  ;;  %v2326_v28 = vld [vmem:[#allocation27_spill] sm:$0xff]  ;;  %v2327_v29 = vmov 0.0  }
 0x165   : > { %1040 = vmatpush1.msra.mxu0 %v1804_v30  ;;  %1111 = vmatpush1.msra.mxu1 %v1809_v31  ;;  %v2328_v30 = vld [vmem:[#allocation28_spill] sm:$0xff] }
 0x166   : > { %1041 = vmatprep.subr.mxu0 %v1816_v32  ;;  %1112 = vmatprep.subr.mxu1 %v1821_v33  ;;  %v2329_v32 = vld [vmem:[#allocation29_spill] sm:$0xff] }
 0x167   : > { %1042 = vmatpush1.msra.mxu0 %v1828_v34  ;;  %1113 = vmatpush1.msra.mxu1 %v1833_v35 }
 0x168   : > { %1043 = vmatprep.subr.mxu0 %v1840_v36  ;;  %1114 = vmatprep.subr.mxu1 %v1845_v37  ;;  %v2330_v36 = vld [vmem:[#allocation30_spill] sm:$0xff] }
 0x169   : > { %1044 = vmatpush1.msra.mxu0 %v1852_v38  ;;  %1115 = vmatpush1.msra.mxu1 %v1857_v39 }
 0x16a   : > { %1045 = vmatprep.subr.mxu0 %v1864_v40  ;;  %1116 = vmatprep.subr.mxu1 %v1869_v41  ;;  %v2331_v41 = vld [vmem:[#allocation33_spill] sm:$0xff] }
 0x16b   : > { %1046 = vmatpush1.msra.mxu0 %v1876_v42  ;;  %1117 = vmatpush1.msra.mxu1 %v1881_v43  ;;  %v2332_v43 = vld [vmem:[#allocation31_spill] sm:$0xff] }
 0x16c   : > { %1047 = vmatprep.subr.mxu0 %v2304_v6  ;;  %1118 = vmatprep.subr.mxu1 %v2305_v7  ;;  %v2334_v7 = vld [vmem:[#allocation34_spill] sm:$0xff] }
 0x16d   : > { %1048 = vmatpush1.msra.mxu0 %v2306_v8  ;;  %1119 = vmatpush1.msra.mxu1 %v2307_v9 }
 0x16e   : > { %1049 = vmatprep.subr.mxu0 %v2308_v10  ;;  %1120 = vmatprep.subr.mxu1 %v2309_v11  ;;  %v2335_v11 = vld [vmem:[#allocation36_spill] sm:$0xff] }
 0x16f   : > { %1050 = vmatpush1.msra.mxu0 %v2310_v12  ;;  %1121 = vmatpush1.msra.mxu1 %v2311_v13  ;;  %v2336_v13 = vld [vmem:[#allocation35_spill] sm:$0xff] }
 0x170   : > { %1051 = vmatprep.subr.mxu0 %v2312_v14  ;;  %1122 = vmatprep.subr.mxu1 %v2313_v15 }
 0x171   : > { %1052 = vmatpush1.msra.mxu0 %v2314_v16  ;;  %1123 = vmatpush1.msra.mxu1 %v2315_v17 }
 0x172   : > { %1053 = vmatprep.subr.mxu0 %v2316_v18  ;;  %1124 = vmatprep.subr.mxu1 %v2317_v19 }
 0x173   : > { %1054 = vmatpush1.msra.mxu0 %v2318_v20  ;;  %1125 = vmatpush1.msra.mxu1 %v2319_v21 }
 0x174   : > { %1055 = vmatprep.subr.mxu0 %v2320_v22  ;;  %1126 = vmatprep.subr.mxu1 %v2321_v23  ;;  %v1204_v23 = vstv %s1203_s25 }
 0x175   : > { %1056 = vmatpush1.msra.mxu0 %v2322_v24  ;;  %1127 = vmatpush1.msra.mxu1 %v2323_v25  ;;  %vm1205_vm2 = vcmp.eq.s32.totalorder %v1204_v23, 1 }
 0x176   : > { %1057 = vmatprep.subr.mxu0 %v2324_v26  ;;  %1128 = vmatprep.subr.mxu1 %v2325_v27 }
 0x177   : > { %1058 = vmatpush1.msra.mxu0 %v2326_v28  ;;  %1091 = vmatprep.mubr.f32.mxu0 %v2327_v29 }
 0x178   : > { %1129 = vmatpush1.msra.mxu1 %v2328_v30  ;;  %1162 = vmatprep.mubr.f32.mxu1 %v2327_v29 }
 0x218   : > { %v903_v31 = vpop.f32.mrf.mxu0  ;;  %v974_v38 = vpop.f32.mrf.mxu1 }
 0x219   : > { %v979_v33 = vadd.f32 %v903_v31, %v2329_v32  ;;  %v981_v57 = vadd.f32 %v974_v38, %v2332_v43 }
 0x21a   : > { %v905_v34 = vpop.f32.mrf.mxu0  ;;  %v976_v40 = vpop.f32.mrf.mxu1 }
 0x21b   : > { %v1298_v35 = vmul.f32 -1.442695, %v979_v33  ;;  %v980_v37 = vadd.f32 %v905_v34, %v2330_v36  ;;  %v982_v42 = vadd.f32 %v976_v40, %v2331_v41 }
 0x21d   : > { %1334 = vpow2.f32 %v1298_v35  ;;  %v1299_v39 = vmul.f32 -1.442695, %v980_v37  ;;  %v1300_v63 = vmul.f32 -1.442695, %v982_v42 }
 0x21f   : > { %1336 = vpow2.f32 %v1299_v39 }
 0x220   : > { %1338 = vtanh.f32 %v981_v57 }
 0x221   : > { %1340 = vpow2.f32 %v1300_v63 }
 0x22a   : > { %v1335_v54 = vpop.eup %1334 }
 0x22b   : > { %v986_v48 = vadd.f32 1.0, %v1335_v54 }
 0x22c   : > { %v1337_v49 = vpop.eup %1336 }
 0x22d   : > { %1342 = vrcp.f32 %v986_v48  ;;  %v992_v47 = vadd.f32 1.0, %v1337_v49  ;;  %v1339_v45 = vpop.eup %1338 }
 0x22e   : > { %v1341_v62 = vpop.eup %1340 }
 0x22f   : > { %1344 = vrcp.f32 %v992_v47  ;;  %v999_v44 = vadd.f32 1.0, %v1341_v62 }
 0x231   : > { %1346 = vrcp.f32 %v999_v44 }
 0x23a   : > { %v1343_v56 = vpop.eup %1342 }
 0x23b   : > { %v1004_v50 = vmul.f32 %v1343_v56, %v1339_v45 }
 0x23c   : > { %v1345_v52 = vpop.eup %1344 }
 0x23d   : > { %v1003_v58 = vmul.f32 %v1345_v52, %v2134_v1 }
 0x23e   : > { %v1347_v3 = vpop.eup %1346 }
 0x23f   : > { %v1005_v60 = vadd.f32 %v1004_v50, %v1003_v58 }
 0x241   : > { %1348 = vtanh.f32 %v1005_v60  ;;  %v1016_v53 = vsel %vm1015_vm1, %v1005_v60, %v2134_v1 }
 0x24e   : > { %v1349_v55 = vpop.eup %1348 }
 0x24f   : > { %v1007_v46 = vmul.f32 %v1349_v55, %v1347_v3 }
 0x251   : > { %1301 = vst [vmem:[%s1445_s15 + $0x8] sm:$0xff] %v1007_v46  ;;  %v1019_v61 = vsel %vm1015_vm1, %v1007_v46, %v2138_v5 }
 0x252   : > { %1092 = vmatmul.mubr.f32.vlgmr.msra.gmra.mxu0 %v1019_v61  ;;  %1163 = vmatmul.mubr.f32.vlgmr.msra.gmra.mxu1 %v1019_v61 }
 0x312   : > { %v1093_v51 = vpop.f32.mrf.mxu0  ;;  %v1164_v9 = vpop.f32.mrf.mxu1 }
 0x313   : > { %v1169_v0 = vadd.f32 %v1093_v51, %v2333_v2  ;;  %v1171_v14 = vadd.f32 %v1164_v9, %v2336_v13 }
 0x314   : > { %v1095_v59 = vpop.f32.mrf.mxu0  ;;  %v1166_v1 = vpop.f32.mrf.mxu1 }
 0x315   : > { %v1302_v6 = vmul.f32 -1.442695, %v1169_v0  ;;  %v1170_v8 = vadd.f32 %v1095_v59, %v2334_v7  ;;  %v1172_v12 = vadd.f32 %v1166_v1, %v2335_v11 }
 0x317   : > { %1350 = vpow2.f32 %v1302_v6  ;;  %v1303_v10 = vmul.f32 -1.442695, %v1170_v8  ;;  %v1304_v5 = vmul.f32 -1.442695, %v1172_v12 }
 0x319   : > { %1352 = vpow2.f32 %v1303_v10 }
 0x31a   : > { %1354 = vtanh.f32 %v1171_v14 }
 0x31b   : > { %1356 = vpow2.f32 %v1304_v5 }
 0x324   : > { %v1351_v15 = vpop.eup %1350 }
 0x325   : > { %v1176_v16 = vadd.f32 1.0, %v1351_v15 }
 0x326   : > { %v1353_v17 = vpop.eup %1352 }
 0x327   : > { %1358 = vrcp.f32 %v1176_v16  ;;  %v1182_v18 = vadd.f32 1.0, %v1353_v17  ;;  %v1355_v19 = vpop.eup %1354 }
 0x328   : > { %v1357_v20 = vpop.eup %1356 }
 0x329   : > { %1360 = vrcp.f32 %v1182_v18  ;;  %v1189_v25 = vadd.f32 1.0, %v1357_v20 }
 0x32b   : > { %1362 = vrcp.f32 %v1189_v25 }
 0x334   : > { %v1359_v21 = vpop.eup %1358 }
 0x335   : > { %v1194_v22 = vmul.f32 %v1359_v21, %v1355_v19 }
 0x336   : > { %v1361_v24 = vpop.eup %1360 }
 0x337   : > { %v1193_v26 = vmul.f32 %v1361_v24, %v1016_v53 }
 0x338   : > { %v1363_v29 = vpop.eup %1362 }
 0x339   : > { %v1195_v27 = vadd.f32 %v1194_v22, %v1193_v26 }
 0x33b   : > { %1364 = vtanh.f32 %v1195_v27  ;;  %v1206_v28 = vsel %vm1205_vm2, %v1195_v27, %v1016_v53 }
 0x33c   : > { %1207 = vst [vmem:[#allocation3] sm:$0xff] %v1206_v28 }
 0x348   : > { %v1365_v30 = vpop.eup %1364  ;;  %1214 = sbr.rel (%p1306_p7) target bundleno = 853 (0x355), region = 52 }
 0x349   : > { %v1197_v31 = vmul.f32 %v1365_v30, %v1363_v29 }
 0x34b   : > { %1305 = vst [vmem:[%s1445_s15 + $0x10] sm:$0xff] %v1197_v31  ;;  %v1209_v32 = vsel %vm1205_vm2, %v1197_v31, %v1019_v61 }
 0x34c   : > { %1210 = vst [vmem:[#allocation2] sm:$0xff] %v1209_v32 }
 0x34d   : > { %v1217_v34 = vld [vmem:[#allocation3] sm:$0xff] }
 0x34e   : > { %1218 = vst [vmem:[%s2239_s8] sm:$0xff] %v1217_v34 }
 0x353   : > { %v1215_v33 = vld [vmem:[#allocation2] sm:$0xff] }
 0x354   : > { %1216 = vst [vmem:[%s2238_s7] sm:$0xff] %v1215_v33 }
 0x355 PF: > { %s19_s27 = sadd.s32 1, %s1372_s27  }
 0x356   : > { %p16_p8 = scmp.ge.s32.totalorder %s19_s27, 5  }
 0x358   :  { %18 = sbr.rel (!%p16_p8) target bundleno = 1 (0x1), region = 102 }

// kernel: rnn_model_forward.3
= control target key start
LH: loop header
LB: loop body
LE: loop exit
PB: predicated region body
PF: predicated region fallthrough
CT: control target
= control target key end

     0   :  { %14 = vsyncpa [#allocation6], 0  ;;  %s2033_s0 = inlined_call_operand.vmem [shape: f32[9,8,128], index: 0, kind: input, shape index: {}]   ;;  %s2034_s1 = inlined_call_operand.vmem [shape: f32[8,128], index: 1, kind: input, shape index: {}]   ;;  %s2035_s2 = inlined_call_operand.vmem [shape: f32[8,128], index: 2, kind: input, shape index: {}]   ;;  %s2036_s3 = inlined_call_operand.hbm [shape: f32[128,512], index: 3, kind: input, shape index: {}]   ;;  %s2037_s4 = inlined_call_operand.hbm [shape: f32[128,512], index: 4, kind: input, shape index: {}]   ;;  %s2038_s5 = inlined_call_operand.vmem [shape: f32[1,512], index: 5, kind: input, shape index: {}]   ;;  %s2039_s6 = inlined_call_operand.vmem [shape: f32[9,8,128], index: 6, kind: output, shape index: {0}]   ;;  %s2040_s7 = inlined_call_operand.vmem [shape: f32[8,128], index: 7, kind: output, shape index: {1}]   ;;  %s2041_s8 = inlined_call_operand.vmem [shape: f32[8,128], index: 8, kind: output, shape index: {2}]  }
   0x1   :  { %15 = vsyncpa [#allocation8], 0  ;;  %s1563_s27 = smov 0  }
   0x2 LB: > { %s1569_s28 = sadd.s32 4294967295, %s1511_s27   ;;  %p1341_p0 = scmp.ge.s32.totalorder %s1511_s27, 1  ;;  %s1511_s27 = sphi %s1563_s27, %s21_s27  }
   0x3   : > { %p225_p1 = scmp.lt.s32.totalorder %s1511_s27, 4  ;;  %s1513_s29 = smov [#allocation5]  }
   0x4   : > { %s243_s30 = sshll.u32 %s1513_s29, 4  ;;  %p1380_p4 = scmp.eq.s32.totalorder %s1569_s28, 0  ;;  %s244_s30 = int_to_ptr.vmem [resolvable:$true] %s243_s30 }
   0x5   : > { %p1574_p3 = pnand %p1341_p0, %p225_p1  ;;  %s1514_s10 = smov [#allocation7]  }
   0x6   : > { %s256_s11 = sshll.u32 %s1514_s10, 4  ;;  %s1456_s13 = scalar_lea.vmem %s244_s30, 8192  ;;  %s257_s11 = int_to_ptr.vmem [resolvable:$true] %s256_s11 }
   0x7   : > { %p1373_p5 = pneg %p1574_p3  ;;  %p1457_p8 = scmp.ne.s32.totalorder %s244_s30, %s1456_s13 }
   0x8   : > { %p1464_p11 = scmp.lt.s32.totalorder %s244_s30, %s244_s30  ;;  %p1465_p12 = scmp.lt.s32.totalorder %s1456_s13, %s1456_s13 }
   0x9   : > { %p1583_p6 = pnand %p1380_p4, %p1373_p5 }
   0xa   : > { %p1466_p13 = por %p1465_p12, %p1464_p11 }
   0xb   : > { %p1447_p7 = pneg %p1583_p6 }
   0xd   : > { %p1459_p9 = pnand %p1457_p8, %p1447_p7 }
   0xf   : > { %p1460_p10 = pneg %p1459_p9 }
  0x11   : > { %p1467_p0 = pnand %p1466_p13, %p1460_p10 }
  0x13   : > { %1470 = shalt.err (!%p1467_p0)
}
  0x14   : > { %s1515_s14 = smov 512   ;;  %s1516_s15 = smov 32  }
  0x15   : > { %1376 = dma.hbm_to_vmem [thread:$0]  (!%p1583_p6), %s2036_s3, 8192, %s244_s30, [#allocation6], %s1515_s14, %s1515_s14, %s1516_s15  }
  0x16   : > { %s1482_s18 = scalar_lea.vmem %s257_s11, 8192  ;;  %p1490_p9 = scmp.lt.s32.totalorder %s257_s11, %s257_s11 }
  0x17   : > { %p1483_p1 = scmp.ne.s32.totalorder %s257_s11, %s1482_s18  ;;  %p1491_p2 = scmp.lt.s32.totalorder %s1482_s18, %s1482_s18 }
  0x19   : > { %p1485_p5 = pnand %p1483_p1, %p1447_p7  ;;  %p1492_p11 = por %p1491_p2, %p1490_p9 }
  0x1b   : > { %p1486_p8 = pneg %p1485_p5 }
  0x1d   : > { %p1493_p10 = pnand %p1492_p11, %p1486_p8 }
  0x1f   : > { %1496 = shalt.err (!%p1493_p10)
}
  0x20   : > { %1379 = dma.hbm_to_vmem [thread:$0]  (!%p1583_p6), %s2037_s4, 8192, %s257_s11, [#allocation8], %s1515_s14, %s1515_s14, %s1516_s15  }
  0x21   : > { %284 = sbr.rel (%p1574_p3) target bundleno = 883 (0x373), region = 44 }
  0x26   : > { %1502 = dma.done.wait (%p1380_p4), [#allocation6], 8192  }
  0x27   : > { %1504 = vsyncadd (%p1380_p4), [#allocation6], 4294959104 }
  0x28   : > { %1506 = dma.done.wait (%p1380_p4), [#allocation8], 8192  }
  0x29   : > { %1508 = vsyncadd (%p1380_p4), [#allocation8], 4294959104  ;;  %s1616_s21 = smul.u32 3, %s1569_s28  ;;  %p2074_p3 = scmp.ne.s32.totalorder %s1569_s28, 0 }
  0x2b   : > { %p323_p2 = scmp.lt.s32.totalorder %s1616_s21, 8 }
  0x2c   : > { %337 = sbr.rel (%p2074_p3) target bundleno = 52 (0x34), region = 56 }
  0x2d   : > { %s324_s22 = scalar_select %p323_p2, %s1616_s21, 8 }
  0x2f   : > { %s1348_s23 = sshll.u32 %s324_s22, 3 }
  0x30   : > { %s1625_s26 = scalar_lea.vmem %s2033_s0, %s1348_s23  ;;  %s1630_s9 = scalar_lea.vmem %s2039_s6, %s1348_s23 }
  0x31   : > { %v338_v0 = vld [vmem:[%s2034_s1] sm:$0xff] }
  0x32   : > { %v340_v1 = vld [vmem:[%s2035_s2] sm:$0xff]  ;;  %339 = vst [vmem:[#allocation2] sm:$0xff] %v338_v0 }
  0x33   : > { %341 = vst [vmem:[#allocation3] sm:$0xff] %v340_v1 }
  0x34 PF: > { %v406_v2 = vld [vmem:[#allocation5 + $0x1e8] sm:$0xff]  ;;  %v408_v3 = vld [vmem:[#allocation5 + $0x1f8] sm:$0xff]  ;;  %v405_v4 = vld [vmem:[#allocation5 + $0x1e0] sm:$0xff]  ;;  %s853_s16 = scalar_select %p323_p2, 1, 0 }
  0x35   : > { %431 = vmatprep.subr.mxu0 %v406_v2  ;;  %514 = vmatprep.subr.mxu1 %v408_v3  ;;  %v407_v5 = vld [vmem:[#allocation5 + $0x1f0] sm:$0xff]  ;;  %v402_v6 = vld [vmem:[#allocation5 + $0x1c8] sm:$0xff]  ;;  %v404_v7 = vld [vmem:[#allocation5 + $0x1d8] sm:$0xff]  ;;  %s1040_s17 = sadd.s32 1, %s1616_s21  ;;  %s1230_s19 = sadd.s32 2, %s1616_s21 }
  0x36   : > { %432 = vmatpush1.msra.mxu0 %v405_v4  ;;  %515 = vmatpush1.msra.mxu1 %v407_v5  ;;  %v401_v8 = vld [vmem:[#allocation5 + $0x1c0] sm:$0xff]  ;;  %v403_v9 = vld [vmem:[#allocation5 + $0x1d0] sm:$0xff]  ;;  %v398_v10 = vld [vmem:[#allocation5 + $0x1a8] sm:$0xff]  ;;  %v2044_v4 = vmov 0.0   ;;  %p1041_p4 = scmp.lt.s32.totalorder %s1040_s17, 8  ;;  %p1231_p6 = scmp.lt.s32.totalorder %s1230_s19, 8 }
  0x37   : > { %433 = vmatprep.subr.mxu0 %v402_v6  ;;  %516 = vmatprep.subr.mxu1 %v404_v7  ;;  %v400_v11 = vld [vmem:[#allocation5 + $0x1b8] sm:$0xff]  ;;  %v397_v12 = vld [vmem:[#allocation5 + $0x1a0] sm:$0xff]  ;;  %v399_v13 = vld [vmem:[#allocation5 + $0x1b0] sm:$0xff]  ;;  %p1362_p7 = scmp.ne.s32.totalorder %s1569_s28, 2 }
  0x38   : > { %434 = vmatpush1.msra.mxu0 %v401_v8  ;;  %517 = vmatpush1.msra.mxu1 %v403_v9  ;;  %v394_v14 = vld [vmem:[#allocation5 + $0x188] sm:$0xff]  ;;  %v396_v15 = vld [vmem:[#allocation5 + $0x198] sm:$0xff]  ;;  %v393_v16 = vld [vmem:[#allocation5 + $0x180] sm:$0xff]  ;;  %s1043_s18 = scalar_select %p1041_p4, 1, 0 }
  0x39   : > { %435 = vmatprep.subr.mxu0 %v398_v10  ;;  %518 = vmatprep.subr.mxu1 %v400_v11  ;;  %v395_v17 = vld [vmem:[#allocation5 + $0x190] sm:$0xff]  ;;  %v390_v18 = vld [vmem:[#allocation5 + $0x168] sm:$0xff]  ;;  %v392_v19 = vld [vmem:[#allocation5 + $0x178] sm:$0xff]  ;;  %s1233_s20 = scalar_select %p1231_p6, 1, 0 }
  0x3a   : > { %436 = vmatpush1.msra.mxu0 %v397_v12  ;;  %519 = vmatpush1.msra.mxu1 %v399_v13  ;;  %v389_v20 = vld [vmem:[#allocation5 + $0x160] sm:$0xff]  ;;  %v391_v21 = vld [vmem:[#allocation5 + $0x170] sm:$0xff]  ;;  %v386_v22 = vld [vmem:[#allocation5 + $0x148] sm:$0xff] }
  0x3b   : > { %437 = vmatprep.subr.mxu0 %v394_v14  ;;  %520 = vmatprep.subr.mxu1 %v396_v15  ;;  %v388_v23 = vld [vmem:[#allocation5 + $0x158] sm:$0xff]  ;;  %v385_v24 = vld [vmem:[#allocation5 + $0x140] sm:$0xff]  ;;  %v387_v25 = vld [vmem:[#allocation5 + $0x150] sm:$0xff] }
  0x3c   : > { %438 = vmatpush1.msra.mxu0 %v393_v16  ;;  %521 = vmatpush1.msra.mxu1 %v395_v17  ;;  %v382_v26 = vld [vmem:[#allocation5 + $0x128] sm:$0xff]  ;;  %v384_v27 = vld [vmem:[#allocation5 + $0x138] sm:$0xff]  ;;  %v381_v28 = vld [vmem:[#allocation5 + $0x120] sm:$0xff] }
  0x3d   : > { %439 = vmatprep.subr.mxu0 %v390_v18  ;;  %522 = vmatprep.subr.mxu1 %v392_v19  ;;  %v383_v29 = vld [vmem:[#allocation5 + $0x130] sm:$0xff]  ;;  %v378_v30 = vld [vmem:[#allocation5 + $0x108] sm:$0xff]  ;;  %v380_v31 = vld [vmem:[#allocation5 + $0x118] sm:$0xff] }
  0x3e   : > { %440 = vmatpush1.msra.mxu0 %v389_v20  ;;  %523 = vmatpush1.msra.mxu1 %v391_v21  ;;  %v377_v32 = vld [vmem:[#allocation5 + $0x100] sm:$0xff]  ;;  %v379_v33 = vld [vmem:[#allocation5 + $0x110] sm:$0xff]  ;;  %v374_v34 = vld [vmem:[#allocation5 + $0xe8] sm:$0xff] }
  0x3f   : > { %441 = vmatprep.subr.mxu0 %v386_v22  ;;  %524 = vmatprep.subr.mxu1 %v388_v23  ;;  %v376_v35 = vld [vmem:[#allocation5 + $0xf8] sm:$0xff]  ;;  %v373_v36 = vld [vmem:[#allocation5 + $0xe0] sm:$0xff]  ;;  %v375_v37 = vld [vmem:[#allocation5 + $0xf0] sm:$0xff] }
  0x40   : > { %442 = vmatpush1.msra.mxu0 %v385_v24  ;;  %525 = vmatpush1.msra.mxu1 %v387_v25  ;;  %v370_v38 = vld [vmem:[#allocation5 + $0xc8] sm:$0xff]  ;;  %v372_v39 = vld [vmem:[#allocation5 + $0xd8] sm:$0xff]  ;;  %v369_v40 = vld [vmem:[#allocation5 + $0xc0] sm:$0xff] }
  0x41   : > { %443 = vmatprep.subr.mxu0 %v382_v26  ;;  %526 = vmatprep.subr.mxu1 %v384_v27  ;;  %v371_v41 = vld [vmem:[#allocation5 + $0xd0] sm:$0xff]  ;;  %v366_v42 = vld [vmem:[#allocation5 + $0xa8] sm:$0xff]  ;;  %v368_v43 = vld [vmem:[#allocation5 + $0xb8] sm:$0xff] }
  0x42   : > { %444 = vmatpush1.msra.mxu0 %v381_v28  ;;  %527 = vmatpush1.msra.mxu1 %v383_v29  ;;  %v365_v44 = vld [vmem:[#allocation5 + $0xa0] sm:$0xff]  ;;  %v367_v45 = vld [vmem:[#allocation5 + $0xb0] sm:$0xff]  ;;  %v362_v46 = vld [vmem:[#allocation5 + $0x88] sm:$0xff] }
  0x43   : > { %445 = vmatprep.subr.mxu0 %v378_v30  ;;  %528 = vmatprep.subr.mxu1 %v380_v31  ;;  %v364_v47 = vld [vmem:[#allocation5 + $0x98] sm:$0xff]  ;;  %v361_v48 = vld [vmem:[#allocation5 + $0x80] sm:$0xff]  ;;  %v363_v49 = vld [vmem:[#allocation5 + $0x90] sm:$0xff] }
  0x44   : > { %446 = vmatpush1.msra.mxu0 %v377_v32  ;;  %529 = vmatpush1.msra.mxu1 %v379_v33  ;;  %v358_v50 = vld [vmem:[#allocation5 + $0x68] sm:$0xff]  ;;  %v360_v51 = vld [vmem:[#allocation5 + $0x78] sm:$0xff]  ;;  %v357_v52 = vld [vmem:[#allocation5 + $0x60] sm:$0xff] }
  0x45   : > { %447 = vmatprep.subr.mxu0 %v374_v34  ;;  %530 = vmatprep.subr.mxu1 %v376_v35  ;;  %v359_v53 = vld [vmem:[#allocation5 + $0x70] sm:$0xff]  ;;  %v354_v54 = vld [vmem:[#allocation5 + $0x48] sm:$0xff]  ;;  %v356_v55 = vld [vmem:[#allocation5 + $0x58] sm:$0xff] }
  0x46   : > { %448 = vmatpush1.msra.mxu0 %v373_v36  ;;  %531 = vmatpush1.msra.mxu1 %v375_v37  ;;  %v353_v56 = vld [vmem:[#allocation5 + $0x40] sm:$0xff]  ;;  %v355_v57 = vld [vmem:[#allocation5 + $0x50] sm:$0xff]  ;;  %v350_v58 = vld [vmem:[#allocation5 + $0x28] sm:$0xff] }
  0x47   : > { %449 = vmatprep.subr.mxu0 %v370_v38  ;;  %532 = vmatprep.subr.mxu1 %v372_v39  ;;  %v352_v59 = vld [vmem:[#allocation5 + $0x38] sm:$0xff]  ;;  %v349_v60 = vld [vmem:[#allocation5 + $0x20] sm:$0xff]  ;;  %v351_v61 = vld [vmem:[#allocation5 + $0x30] sm:$0xff] }
  0x48   : > { %450 = vmatpush1.msra.mxu0 %v369_v40  ;;  %533 = vmatpush1.msra.mxu1 %v371_v41  ;;  %v346_v62 = vld [vmem:[#allocation5 + $0x8] sm:$0xff]  ;;  %v348_v63 = vld [vmem:[#allocation5 + $0x18] sm:$0xff]  ;;  %v345_v0 = vld [vmem:[#allocation5] sm:$0xff] }
  0x49   : > { %451 = vmatprep.subr.mxu0 %v366_v42  ;;  %534 = vmatprep.subr.mxu1 %v368_v43  ;;  %v347_v1 = vld [vmem:[#allocation5 + $0x10] sm:$0xff]  ;;  %v1641_v3 = vld [vmem:[#allocation7 + $0x1e8] sm:$0xff]  ;;  %v1644_v5 = vld [vmem:[#allocation7 + $0x1f8] sm:$0xff] }
  0x4a   : > { %452 = vmatpush1.msra.mxu0 %v365_v44  ;;  %535 = vmatpush1.msra.mxu1 %v367_v45  ;;  %v342_v2 = vld [vmem:[%s1625_s26] sm:$0xff]  ;;  %v1646_v6 = vld [vmem:[#allocation7 + $0x1e0] sm:$0xff]  ;;  %v1652_v8 = vld [vmem:[#allocation7 + $0x1c8] sm:$0xff] }
  0x4b   : > { %453 = vmatprep.subr.mxu0 %v362_v46  ;;  %536 = vmatprep.subr.mxu1 %v364_v47  ;;  %v1648_v7 = vld [vmem:[#allocation7 + $0x1f0] sm:$0xff]  ;;  %v1654_v9 = vld [vmem:[#allocation7 + $0x1d8] sm:$0xff]  ;;  %v1657_v10 = vld [vmem:[#allocation7 + $0x1c0] sm:$0xff] }
  0x4c   : > { %454 = vmatpush1.msra.mxu0 %v361_v48  ;;  %537 = vmatpush1.msra.mxu1 %v363_v49  ;;  %v1659_v11 = vld [vmem:[#allocation7 + $0x1d0] sm:$0xff]  ;;  %v1663_v12 = vld [vmem:[#allocation7 + $0x1a8] sm:$0xff]  ;;  %v1665_v13 = vld [vmem:[#allocation7 + $0x1b8] sm:$0xff] }
  0x4d   : > { %455 = vmatprep.subr.mxu0 %v358_v50  ;;  %538 = vmatprep.subr.mxu1 %v360_v51  ;;  %v1669_v14 = vld [vmem:[#allocation7 + $0x1a0] sm:$0xff]  ;;  %v1671_v15 = vld [vmem:[#allocation7 + $0x1b0] sm:$0xff]  ;;  %v1675_v16 = vld [vmem:[#allocation7 + $0x188] sm:$0xff] }
  0x4e   : > { %456 = vmatpush1.msra.mxu0 %v357_v52  ;;  %539 = vmatpush1.msra.mxu1 %v359_v53  ;;  %v1677_v17 = vld [vmem:[#allocation7 + $0x198] sm:$0xff]  ;;  %v1681_v18 = vld [vmem:[#allocation7 + $0x180] sm:$0xff]  ;;  %v1683_v19 = vld [vmem:[#allocation7 + $0x190] sm:$0xff] }
  0x4f   : > { %457 = vmatprep.subr.mxu0 %v354_v54  ;;  %540 = vmatprep.subr.mxu1 %v356_v55  ;;  %v1687_v20 = vld [vmem:[#allocation7 + $0x168] sm:$0xff]  ;;  %v1689_v21 = vld [vmem:[#allocation7 + $0x178] sm:$0xff]  ;;  %v1693_v22 = vld [vmem:[#allocation7 + $0x160] sm:$0xff] }
  0x50   : > { %458 = vmatpush1.msra.mxu0 %v353_v56  ;;  %541 = vmatpush1.msra.mxu1 %v355_v57  ;;  %v1695_v23 = vld [vmem:[#allocation7 + $0x170] sm:$0xff]  ;;  %v1699_v24 = vld [vmem:[#allocation7 + $0x148] sm:$0xff]  ;;  %v1701_v25 = vld [vmem:[#allocation7 + $0x158] sm:$0xff] }
  0x51   : > { %459 = vmatprep.subr.mxu0 %v350_v58  ;;  %542 = vmatprep.subr.mxu1 %v352_v59  ;;  %v1705_v26 = vld [vmem:[#allocation7 + $0x140] sm:$0xff]  ;;  %v1707_v27 = vld [vmem:[#allocation7 + $0x150] sm:$0xff]  ;;  %v1711_v28 = vld [vmem:[#allocation7 + $0x128] sm:$0xff] }
  0x52   : > { %460 = vmatpush1.msra.mxu0 %v349_v60  ;;  %543 = vmatpush1.msra.mxu1 %v351_v61  ;;  %v1713_v29 = vld [vmem:[#allocation7 + $0x138] sm:$0xff]  ;;  %v1717_v30 = vld [vmem:[#allocation7 + $0x120] sm:$0xff]  ;;  %v1719_v31 = vld [vmem:[#allocation7 + $0x130] sm:$0xff] }
  0x53   : > { %461 = vmatprep.subr.mxu0 %v346_v62  ;;  %544 = vmatprep.subr.mxu1 %v348_v63  ;;  %v1723_v32 = vld [vmem:[#allocation7 + $0x108] sm:$0xff]  ;;  %v1725_v33 = vld [vmem:[#allocation7 + $0x118] sm:$0xff]  ;;  %v1729_v34 = vld [vmem:[#allocation7 + $0x100] sm:$0xff] }
  0x54   : > { %462 = vmatpush1.msra.mxu0 %v345_v0  ;;  %495 = vmatprep.mubr.f32.mxu0 %v2044_v4  ;;  %v1731_v35 = vld [vmem:[#allocation7 + $0x110] sm:$0xff]  ;;  %v1735_v36 = vld [vmem:[#allocation7 + $0xe8] sm:$0xff]  ;;  %v1737_v37 = vld [vmem:[#allocation7 + $0xf8] sm:$0xff] }
  0x55   : > { %545 = vmatpush1.msra.mxu1 %v347_v1  ;;  %496 = vmatmul.mubr.f32.vlgmr.msra.gmra.mxu0 %v342_v2  ;;  %v1741_v38 = vld [vmem:[#allocation7 + $0xe0] sm:$0xff]  ;;  %v1743_v39 = vld [vmem:[#allocation7 + $0xf0] sm:$0xff]  ;;  %v1747_v40 = vld [vmem:[#allocation7 + $0xc8] sm:$0xff] }
  0x56   : > { %578 = vmatprep.mubr.f32.mxu1 %v2044_v4  ;;  %679 = vmatprep.subr.mxu0 %v1641_v3  ;;  %v1749_v41 = vld [vmem:[#allocation7 + $0xd8] sm:$0xff]  ;;  %v1753_v42 = vld [vmem:[#allocation7 + $0xc0] sm:$0xff]  ;;  %v1755_v43 = vld [vmem:[#allocation7 + $0xd0] sm:$0xff] }
  0x57   : > { %750 = vmatprep.subr.mxu1 %v1644_v5  ;;  %579 = vmatmul.mubr.f32.vlgmr.msra.gmra.mxu1 %v342_v2  ;;  %v1759_v44 = vld [vmem:[#allocation7 + $0xa8] sm:$0xff]  ;;  %v1761_v45 = vld [vmem:[#allocation7 + $0xb8] sm:$0xff]  ;;  %v1765_v46 = vld [vmem:[#allocation7 + $0xa0] sm:$0xff] }
  0x58   : > { %680 = vmatpush1.msra.mxu0 %v1646_v6  ;;  %751 = vmatpush1.msra.mxu1 %v1648_v7  ;;  %2075 = vst [vmem:[#allocation11_spill] sm:$0xff] %v1759_v44  ;;  %2076 = vst [vmem:[#allocation12_spill] sm:$0xff] %v1761_v45  ;;  %v1769_v47 = vld [vmem:[#allocation7 + $0xb0] sm:$0xff]  ;;  %v343_v48 = vld [vmem:[%s1625_s26 + $0x8] sm:$0xff] }
  0x59   : > { %681 = vmatprep.subr.mxu0 %v1652_v8  ;;  %752 = vmatprep.subr.mxu1 %v1654_v9  ;;  %2077 = vst [vmem:[#allocation13_spill] sm:$0xff] %v1765_v46  ;;  %2078 = vst [vmem:[#allocation14_spill] sm:$0xff] %v1769_v47  ;;  %v1774_v49 = vld [vmem:[#allocation7 + $0x88] sm:$0xff]  ;;  %v1776_v50 = vld [vmem:[#allocation7 + $0x98] sm:$0xff] }
  0x5a   : > { %682 = vmatpush1.msra.mxu0 %v1657_v10  ;;  %753 = vmatpush1.msra.mxu1 %v1659_v11  ;;  %2079 = vst [vmem:[#allocation15_spill] sm:$0xff] %v1774_v49  ;;  %2080 = vst [vmem:[#allocation16_spill] sm:$0xff] %v1776_v50  ;;  %v1780_v51 = vld [vmem:[#allocation7 + $0x80] sm:$0xff]  ;;  %v1783_v52 = vld [vmem:[#allocation7 + $0x90] sm:$0xff] }
  0x5b   : > { %683 = vmatprep.subr.mxu0 %v1663_v12  ;;  %754 = vmatprep.subr.mxu1 %v1665_v13  ;;  %2081 = vst [vmem:[#allocation17_spill] sm:$0xff] %v1780_v51  ;;  %2082 = vst [vmem:[#allocation18_spill] sm:$0xff] %v1783_v52  ;;  %v1785_v53 = vld [vmem:[#allocation7 + $0x68] sm:$0xff]  ;;  %v1789_v54 = vld [vmem:[#allocation7 + $0x78] sm:$0xff] }
  0x5c   : > { %684 = vmatpush1.msra.mxu0 %v1669_v14  ;;  %755 = vmatpush1.msra.mxu1 %v1671_v15  ;;  %2083 = vst [vmem:[#allocation19_spill] sm:$0xff] %v1785_v53  ;;  %2084 = vst [vmem:[#allocation20_spill] sm:$0xff] %v1789_v54  ;;  %v1793_v55 = vld [vmem:[#allocation7 + $0x60] sm:$0xff]  ;;  %v1797_v56 = vld [vmem:[#allocation7 + $0x70] sm:$0xff] }
  0x5d   : > { %685 = vmatprep.subr.mxu0 %v1675_v16  ;;  %756 = vmatprep.subr.mxu1 %v1677_v17  ;;  %2085 = vst [vmem:[#allocation21_spill] sm:$0xff] %v1793_v55  ;;  %2086 = vst [vmem:[#allocation22_spill] sm:$0xff] %v1797_v56  ;;  %v344_v57 = vld [vmem:[%s1625_s26 + $0x10] sm:$0xff]  ;;  %v1801_v58 = vld [vmem:[#allocation7 + $0x48] sm:$0xff] }
  0x5e   : > { %686 = vmatpush1.msra.mxu0 %v1681_v18  ;;  %757 = vmatpush1.msra.mxu1 %v1683_v19  ;;  %2087 = vst [vmem:[#allocation23_spill] sm:$0xff] %v1801_v58  ;;  %v1803_v59 = vld [vmem:[#allocation7 + $0x58] sm:$0xff]  ;;  %v1807_v60 = vld [vmem:[#allocation7 + $0x40] sm:$0xff]  ;;  %v1810_v61 = vld [vmem:[#allocation7 + $0x50] sm:$0xff] }
  0x5f   : > { %687 = vmatprep.subr.mxu0 %v1687_v20  ;;  %758 = vmatprep.subr.mxu1 %v1689_v21  ;;  %2088 = vst [vmem:[#allocation24_spill] sm:$0xff] %v1803_v59  ;;  %2089 = vst [vmem:[#allocation25_spill] sm:$0xff] %v1807_v60  ;;  %v1812_v62 = vld [vmem:[#allocation7 + $0x28] sm:$0xff]  ;;  %v1816_v63 = vld [vmem:[#allocation7 + $0x38] sm:$0xff] }
  0x60   : > { %688 = vmatpush1.msra.mxu0 %v1693_v22  ;;  %759 = vmatpush1.msra.mxu1 %v1695_v23  ;;  %2090 = vst [vmem:[#allocation26_spill] sm:$0xff] %v1810_v61  ;;  %2091 = vst [vmem:[#allocation27_spill] sm:$0xff] %v1812_v62  ;;  %v1820_v0 = vld [vmem:[#allocation7 + $0x20] sm:$0xff]  ;;  %v1822_v1 = vld [vmem:[#allocation7 + $0x30] sm:$0xff] }
  0x61   : > { %689 = vmatprep.subr.mxu0 %v1699_v24  ;;  %760 = vmatprep.subr.mxu1 %v1701_v25  ;;  %2092 = vst [vmem:[#allocation28_spill] sm:$0xff] %v1816_v63  ;;  %2093 = vst [vmem:[#allocation29_spill] sm:$0xff] %v1820_v0  ;;  %v1826_v2 = vld [vmem:[#allocation7 + $0x8] sm:$0xff] }
  0x62   : > { %690 = vmatpush1.msra.mxu0 %v1705_v26  ;;  %761 = vmatpush1.msra.mxu1 %v1707_v27  ;;  %2094 = vst [vmem:[#allocation30_spill] sm:$0xff] %v1822_v1  ;;  %2095 = vst [vmem:[#allocation31_spill] sm:$0xff] %v1826_v2 }
  0x63   : > { %691 = vmatprep.subr.mxu0 %v1711_v28  ;;  %762 = vmatprep.subr.mxu1 %v1713_v29 }
  0x64   : > { %692 = vmatpush1.msra.mxu0 %v1717_v30  ;;  %763 = vmatpush1.msra.mxu1 %v1719_v31 }
  0x65   : > { %693 = vmatprep.subr.mxu0 %v1723_v32  ;;  %764 = vmatprep.subr.mxu1 %v1725_v33 }
  0x66   : > { %694 = vmatpush1.msra.mxu0 %v1729_v34  ;;  %765 = vmatpush1.msra.mxu1 %v1731_v35 }
  0x67   : > { %695 = vmatprep.subr.mxu0 %v1735_v36  ;;  %766 = vmatprep.subr.mxu1 %v1737_v37 }
  0x68   : > { %696 = vmatpush1.msra.mxu0 %v1741_v38  ;;  %767 = vmatpush1.msra.mxu1 %v1743_v39 }
  0x69   : > { %697 = vmatprep.subr.mxu0 %v1747_v40  ;;  %768 = vmatprep.subr.mxu1 %v1749_v41 }
  0x6a   : > { %698 = vmatpush1.msra.mxu0 %v1753_v42  ;;  %769 = vmatpush1.msra.mxu1 %v1755_v43 }
  0x6b   : > { %699 = vmatprep.subr.mxu0 %v1759_v44  ;;  %770 = vmatprep.subr.mxu1 %v1761_v45 }
  0x6c   : > { %501 = vmatprep.mubr.f32.mxu0 %v2044_v4  ;;  %700 = vmatpush1.msra.mxu0 %v1765_v46 }
  0x6d   : > { %771 = vmatpush1.msra.mxu1 %v1769_v47  ;;  %502 = vmatmul.mubr.f32.gmra.mxu0 %v343_v48 }
  0x6e   : > { %701 = vmatprep.subr.mxu0 %v1774_v49  ;;  %772 = vmatprep.subr.mxu1 %v1776_v50 }
  0x6f   : > { %584 = vmatprep.mubr.f32.mxu1 %v2044_v4  ;;  %702 = vmatpush1.msra.mxu0 %v1780_v51 }
  0x70   : > { %773 = vmatpush1.msra.mxu1 %v1783_v52  ;;  %703 = vmatprep.subr.mxu0 %v1785_v53 }
  0x71   : > { %585 = vmatmul.mubr.f32.gmra.mxu1 %v343_v48  ;;  %774 = vmatprep.subr.mxu1 %v1789_v54  ;;  %v1828_v48 = vld [vmem:[#allocation7 + $0x18] sm:$0xff] }
  0x72   : > { %507 = vmatprep.mubr.f32.mxu0 %v2044_v4  ;;  %704 = vmatpush1.msra.mxu0 %v1793_v55  ;;  %2096 = vst [vmem:[#allocation32_spill] sm:$0xff] %v1828_v48 }
  0x73   : > { %775 = vmatpush1.msra.mxu1 %v1797_v56  ;;  %508 = vmatmul.mubr.f32.gmra.mxu0 %v344_v57 }
  0x74   : > { %705 = vmatprep.subr.mxu0 %v1801_v58  ;;  %776 = vmatprep.subr.mxu1 %v1803_v59  ;;  %v1831_v59 = vld [vmem:[#allocation7] sm:$0xff] }
  0x75   : > { %590 = vmatprep.mubr.f32.mxu1 %v2044_v4  ;;  %706 = vmatpush1.msra.mxu0 %v1807_v60  ;;  %2097 = vst [vmem:[#allocation33_spill] sm:$0xff] %v1831_v59  ;;  %v1835_v4 = vld [vmem:[#allocation7 + $0x10] sm:$0xff] }
  0x76   : > { %777 = vmatpush1.msra.mxu1 %v1810_v61  ;;  %707 = vmatprep.subr.mxu0 %v1812_v62  ;;  %2098 = vst [vmem:[#allocation34_spill] sm:$0xff] %v1835_v4  ;;  %v1839_v62 = vld [vmem:[#allocation2] sm:$0xff]  ;;  %v2099_v61 = vmov 0.0  }
  0x77   : > { %591 = vmatmul.mubr.f32.gmra.mxu1 %v344_v57  ;;  %778 = vmatprep.subr.mxu1 %v1816_v63  ;;  %v2100_v57 = vld [vmem:[#allocation24_spill] sm:$0xff] }
  0x78   : > { %708 = vmatpush1.msra.mxu0 %v1820_v0  ;;  %779 = vmatpush1.msra.mxu1 %v1822_v1 }
  0x79   : > { %709 = vmatprep.subr.mxu0 %v1826_v2  ;;  %780 = vmatprep.subr.mxu1 %v1828_v48 }
  0x7a   : > { %710 = vmatpush1.msra.mxu0 %v1831_v59  ;;  %743 = vmatprep.mubr.f32.mxu0 %v2099_v61 }
  0x7b   : > { %781 = vmatpush1.msra.mxu1 %v1835_v4  ;;  %814 = vmatprep.mubr.f32.mxu1 %v2099_v61 }
  0x7c   : > { %744 = vmatmul.mubr.f32.vlgmr.msra.gmra.mxu0 %v1839_v62  ;;  %815 = vmatmul.mubr.f32.vlgmr.msra.gmra.mxu1 %v1839_v62 }
  0x7d   : > { %867 = vmatprep.subr.mxu0 %v1641_v3  ;;  %938 = vmatprep.subr.mxu1 %v1644_v5 }
  0x7e   : > { %868 = vmatpush1.msra.mxu0 %v1646_v6  ;;  %939 = vmatpush1.msra.mxu1 %v1648_v7 }
  0x7f   : > { %869 = vmatprep.subr.mxu0 %v1652_v8  ;;  %940 = vmatprep.subr.mxu1 %v1654_v9 }
  0x80   : > { %870 = vmatpush1.msra.mxu0 %v1657_v10  ;;  %941 = vmatpush1.msra.mxu1 %v1659_v11 }
  0x81   : > { %871 = vmatprep.subr.mxu0 %v1663_v12  ;;  %942 = vmatprep.subr.mxu1 %v1665_v13 }
  0x82   : > { %872 = vmatpush1.msra.mxu0 %v1669_v14  ;;  %943 = vmatpush1.msra.mxu1 %v1671_v15 }
  0x83   : > { %873 = vmatprep.subr.mxu0 %v1675_v16  ;;  %944 = vmatprep.subr.mxu1 %v1677_v17 }
  0x84   : > { %874 = vmatpush1.msra.mxu0 %v1681_v18  ;;  %945 = vmatpush1.msra.mxu1 %v1683_v19 }
  0x85   : > { %875 = vmatprep.subr.mxu0 %v1687_v20  ;;  %946 = vmatprep.subr.mxu1 %v1689_v21 }
  0x86   : > { %876 = vmatpush1.msra.mxu0 %v1693_v22  ;;  %947 = vmatpush1.msra.mxu1 %v1695_v23 }
  0x87   : > { %877 = vmatprep.subr.mxu0 %v1699_v24  ;;  %948 = vmatprep.subr.mxu1 %v1701_v25 }
  0x88   : > { %878 = vmatpush1.msra.mxu0 %v1705_v26  ;;  %949 = vmatpush1.msra.mxu1 %v1707_v27 }
  0x89   : > { %879 = vmatprep.subr.mxu0 %v1711_v28  ;;  %950 = vmatprep.subr.mxu1 %v1713_v29 }
  0x8a   : > { %880 = vmatpush1.msra.mxu0 %v1717_v30  ;;  %951 = vmatpush1.msra.mxu1 %v1719_v31 }
  0x8b   : > { %881 = vmatprep.subr.mxu0 %v1723_v32  ;;  %952 = vmatprep.subr.mxu1 %v1725_v33 }
  0x8c   : > { %882 = vmatpush1.msra.mxu0 %v1729_v34  ;;  %953 = vmatpush1.msra.mxu1 %v1731_v35 }
  0x8d   : > { %883 = vmatprep.subr.mxu0 %v1735_v36  ;;  %954 = vmatprep.subr.mxu1 %v1737_v37 }
  0x8e   : > { %884 = vmatpush1.msra.mxu0 %v1741_v38  ;;  %955 = vmatpush1.msra.mxu1 %v1743_v39 }
  0x8f   : > { %885 = vmatprep.subr.mxu0 %v1747_v40  ;;  %956 = vmatprep.subr.mxu1 %v1749_v41 }
  0x90   : > { %886 = vmatpush1.msra.mxu0 %v1753_v42  ;;  %957 = vmatpush1.msra.mxu1 %v1755_v43 }
  0x91   : > { %887 = vmatprep.subr.mxu0 %v1759_v44  ;;  %958 = vmatprep.subr.mxu1 %v1761_v45 }
  0x92   : > { %888 = vmatpush1.msra.mxu0 %v1765_v46  ;;  %959 = vmatpush1.msra.mxu1 %v1769_v47 }
  0x93   : > { %889 = vmatprep.subr.mxu0 %v1774_v49  ;;  %960 = vmatprep.subr.mxu1 %v1776_v50  ;;  %v2101_v49 = vld [vmem:[#allocation26_spill] sm:$0xff]  ;;  %v2102_v50 = vld [vmem:[#allocation27_spill] sm:$0xff] }
  0x94   : > { %890 = vmatpush1.msra.mxu0 %v1780_v51  ;;  %961 = vmatpush1.msra.mxu1 %v1783_v52 }
  0x95   : > { %891 = vmatprep.subr.mxu0 %v1785_v53  ;;  %962 = vmatprep.subr.mxu1 %v1789_v54 }
  0x96   : > { %892 = vmatpush1.msra.mxu0 %v1793_v55  ;;  %963 = vmatpush1.msra.mxu1 %v1797_v56 }
  0x97   : > { %893 = vmatprep.subr.mxu0 %v1801_v58  ;;  %964 = vmatprep.subr.mxu1 %v2100_v57 }
  0x98   : > { %894 = vmatpush1.msra.mxu0 %v1807_v60  ;;  %965 = vmatpush1.msra.mxu1 %v2101_v49 }
  0x99   : > { %895 = vmatprep.subr.mxu0 %v2102_v50  ;;  %966 = vmatprep.subr.mxu1 %v1816_v63  ;;  %v411_v63 = vlaneseq }
  0x9a   : > { %896 = vmatpush1.msra.mxu0 %v1820_v0  ;;  %967 = vmatpush1.msra.mxu1 %v1822_v1 }
  0x9b   : > { %897 = vmatprep.subr.mxu0 %v1826_v2  ;;  %968 = vmatprep.subr.mxu1 %v1828_v48  ;;  %v412_v0 = vshrl.u32 %v411_v63, 7  ;;  %v409_v48 = vld [vmem:[%s2038_s5] sm:$0xf] }
  0x9c   : > { %898 = vmatpush1.msra.mxu0 %v1831_v59  ;;  %931 = vmatprep.mubr.f32.mxu0 %v2099_v61 }
  0x9d   : > { %969 = vmatpush1.msra.mxu1 %v1835_v4  ;;  %1002 = vmatprep.mubr.f32.mxu1 %v2099_v61  ;;  %v413_v1 = vsub.s32 0, %v412_v0  ;;  %v417_v2 = vsub.s32 1, %v412_v0  ;;  %v421_v57 = vsub.s32 2, %v412_v0  ;;  %v425_v61 = vsub.s32 3, %v412_v0 }
  0x9e   : > { %1057 = vmatprep.subr.mxu0 %v1641_v3  ;;  %1128 = vmatprep.subr.mxu1 %v1644_v5 }
  0x9f   : > { %v414_v60 = vrot.slane %v409_v48, %v413_v1  ;;  %v418_v58 = vrot.slane %v409_v48, %v417_v2  ;;  %v422_v55 = vrot.slane %v409_v48, %v421_v57  ;;  %v426_v53 = vrot.slane %v409_v48, %v425_v61 }
 0x115   : > { %v497_v50 = vpop.f32.mrf.mxu0 }
 0x117   : > { %v499_v59 = vpop.f32.mrf.mxu0  ;;  %v580_v49 = vpop.f32.mrf.mxu1 }
 0x118   : > { %v500_v61 = vadd.f32 %v499_v59, %v418_v58  ;;  %v844_v59 = vld [vmem:[#allocation3] sm:$0xff] }
 0x119   : > { %v582_v3 = vpop.f32.mrf.mxu1 }
 0x12d   : > { %v503_v4 = vpop.f32.mrf.mxu0 }
 0x12e   : > { %v1918_v56 = vadd.f32 %v503_v4, %v414_v60 }
 0x12f   : > { %v505_v5 = vpop.f32.mrf.mxu0 }
 0x130   : > { %2103 = vst [vmem:[#allocation35_spill] sm:$0xff] %v1918_v56  ;;  %v1920_v63 = vadd.f32 %v505_v5, %v418_v58  ;;  %v498_v5 = vadd.f32 %v497_v50, %v414_v60 }
 0x131   : > { %v586_v54 = vpop.f32.mrf.mxu1 }
 0x132   : > { %2104 = vst [vmem:[#allocation36_spill] sm:$0xff] %v1920_v63  ;;  %v1922_v52 = vadd.f32 %v586_v54, %v422_v55 }
 0x133   : > { %v509_v51 = vpop.f32.mrf.mxu0  ;;  %v588_v47 = vpop.f32.mrf.mxu1 }
 0x134   : > { %2105 = vst [vmem:[#allocation37_spill] sm:$0xff] %v1922_v52  ;;  %v1924_v46 = vadd.f32 %v509_v51, %v414_v60  ;;  %v1926_v1 = vadd.f32 %v588_v47, %v426_v53 }
 0x135   : > { %v511_v45 = vpop.f32.mrf.mxu0 }
 0x136   : > { %2106 = vst [vmem:[#allocation38_spill] sm:$0xff] %v1924_v46  ;;  %2107 = vst [vmem:[#allocation39_spill] sm:$0xff] %v1926_v1  ;;  %v1928_v2 = vadd.f32 %v511_v45, %v418_v58 }
 0x137   : > { %v592_v4 = vpop.f32.mrf.mxu1 }
 0x138   : > { %2108 = vst [vmem:[#allocation40_spill] sm:$0xff] %v1928_v2  ;;  %v1930_v0 = vadd.f32 %v592_v4, %v422_v55  ;;  %v583_v2 = vadd.f32 %v582_v3, %v426_v53  ;;  %v581_v4 = vadd.f32 %v580_v49, %v422_v55 }
 0x139   : > { %v594_v56 = vpop.f32.mrf.mxu1 }
 0x13a   : > { %2109 = vst [vmem:[#allocation41_spill] sm:$0xff] %v1930_v0  ;;  %v1932_v57 = vadd.f32 %v594_v56, %v426_v53  ;;  %v854_v53 = vstv %s853_s16 }
 0x13b   : > { %vm855_vm0 = vcmp.eq.s32.totalorder %v854_v53, 1 }
 0x13c   : > { %2110 = vst [vmem:[#allocation42_spill] sm:$0xff] %v1932_v57  ;;  %v745_v63 = vpop.f32.mrf.mxu0  ;;  %v816_v51 = vpop.f32.mrf.mxu1 }
 0x13d   : > { %v821_v54 = vadd.f32 %v745_v63, %v498_v5  ;;  %v823_v56 = vadd.f32 %v816_v51, %v581_v4 }
 0x13e   : > { %v747_v48 = vpop.f32.mrf.mxu0  ;;  %v818_v45 = vpop.f32.mrf.mxu1 }
 0x13f   : > { %v1351_v52 = vmul.f32 -1.442695, %v821_v54  ;;  %v822_v44 = vadd.f32 %v747_v48, %v500_v61  ;;  %v824_v46 = vadd.f32 %v818_v45, %v583_v2 }
 0x141   : > { %1397 = vpow2.f32 %v1351_v52  ;;  %v1352_v47 = vmul.f32 -1.442695, %v822_v44  ;;  %v1353_v0 = vmul.f32 -1.442695, %v824_v46 }
 0x143   : > { %1399 = vpow2.f32 %v1352_v47 }
 0x144   : > { %1401 = vpow2.f32 %v1353_v0 }
 0x14e   : > { %v1398_v1 = vpop.eup %1397 }
 0x14f   : > { %v828_v57 = vadd.f32 1.0, %v1398_v1 }
 0x150   : > { %v1400_v50 = vpop.eup %1399 }
 0x151   : > { %1403 = vrcp.f32 %v828_v57  ;;  %v834_v58 = vadd.f32 1.0, %v1400_v50  ;;  %v1402_v52 = vpop.eup %1401 }
 0x152   : > { %1405 = vtanh.f32 %v823_v56  ;;  %v841_v49 = vadd.f32 1.0, %v1402_v52 }
 0x153   : > { %1407 = vrcp.f32 %v834_v58  ;;  %v1044_v58 = vstv %s1043_s18 }
 0x154   : > { %1409 = vrcp.f32 %v841_v49  ;;  %vm1045_vm1 = vcmp.eq.s32.totalorder %v1044_v58, 1 }
 0x15e   : > { %v1404_v44 = vpop.eup %1403 }
 0x15f   : > { %v1406_v60 = vpop.eup %1405 }
 0x160   : > { %v1408_v3 = vpop.eup %1407  ;;  %v846_v46 = vmul.f32 %v1406_v60, %v1404_v44 }
 0x161   : > { %v845_v55 = vmul.f32 %v1408_v3, %v844_v59  ;;  %v1410_v2 = vpop.eup %1409 }
 0x163   : > { %v847_v63 = vadd.f32 %v846_v46, %v845_v55 }
 0x165   : > { %1411 = vtanh.f32 %v847_v63  ;;  %v1936_v1 = vsel %vm855_vm0, %v847_v63, %v844_v59 }
 0x172   : > { %v1412_v0 = vpop.eup %1411 }
 0x173   : > { %v849_v57 = vmul.f32 %v1412_v0, %v1410_v2  ;;  %v2140_v2 = vld [vmem:[#allocation38_spill] sm:$0xff] }
 0x175   : > { %850 = vst [vmem:[%s1630_s9] sm:$0xff] %v849_v57  ;;  %v1940_v5 = vsel %vm855_vm0, %v849_v57, %v1839_v62 }
 0x176   : > { %932 = vmatmul.mubr.f32.vlgmr.msra.gmra.mxu0 %v1940_v5  ;;  %1003 = vmatmul.mubr.f32.vlgmr.msra.gmra.mxu1 %v1940_v5 }
 0x177   : > { %1058 = vmatpush1.msra.mxu0 %v1646_v6  ;;  %1129 = vmatpush1.msra.mxu1 %v1648_v7  ;;  %v2111_v6 = vld [vmem:[#allocation11_spill] sm:$0xff]  ;;  %v2112_v7 = vld [vmem:[#allocation12_spill] sm:$0xff] }
 0x178   : > { %1059 = vmatprep.subr.mxu0 %v1652_v8  ;;  %1130 = vmatprep.subr.mxu1 %v1654_v9  ;;  %v2113_v8 = vld [vmem:[#allocation13_spill] sm:$0xff]  ;;  %v2114_v9 = vld [vmem:[#allocation14_spill] sm:$0xff] }
 0x179   : > { %1060 = vmatpush1.msra.mxu0 %v1657_v10  ;;  %1131 = vmatpush1.msra.mxu1 %v1659_v11  ;;  %v2115_v10 = vld [vmem:[#allocation15_spill] sm:$0xff]  ;;  %v2116_v11 = vld [vmem:[#allocation16_spill] sm:$0xff] }
 0x17a   : > { %1061 = vmatprep.subr.mxu0 %v1663_v12  ;;  %1132 = vmatprep.subr.mxu1 %v1665_v13  ;;  %v2117_v12 = vld [vmem:[#allocation17_spill] sm:$0xff]  ;;  %v2118_v13 = vld [vmem:[#allocation18_spill] sm:$0xff] }
 0x17b   : > { %1062 = vmatpush1.msra.mxu0 %v1669_v14  ;;  %1133 = vmatpush1.msra.mxu1 %v1671_v15  ;;  %v2119_v14 = vld [vmem:[#allocation19_spill] sm:$0xff]  ;;  %v2120_v15 = vld [vmem:[#allocation20_spill] sm:$0xff] }
 0x17c   : > { %1063 = vmatprep.subr.mxu0 %v1675_v16  ;;  %1134 = vmatprep.subr.mxu1 %v1677_v17  ;;  %v2121_v16 = vld [vmem:[#allocation21_spill] sm:$0xff]  ;;  %v2122_v17 = vld [vmem:[#allocation22_spill] sm:$0xff] }
 0x17d   : > { %1064 = vmatpush1.msra.mxu0 %v1681_v18  ;;  %1135 = vmatpush1.msra.mxu1 %v1683_v19  ;;  %v2123_v18 = vld [vmem:[#allocation23_spill] sm:$0xff]  ;;  %v2124_v19 = vld [vmem:[#allocation24_spill] sm:$0xff] }
 0x17e   : > { %1065 = vmatprep.subr.mxu0 %v1687_v20  ;;  %1136 = vmatprep.subr.mxu1 %v1689_v21  ;;  %v2125_v20 = vld [vmem:[#allocation25_spill] sm:$0xff]  ;;  %v2126_v21 = vld [vmem:[#allocation26_spill] sm:$0xff] }
 0x17f   : > { %1066 = vmatpush1.msra.mxu0 %v1693_v22  ;;  %1137 = vmatpush1.msra.mxu1 %v1695_v23  ;;  %v2127_v22 = vld [vmem:[#allocation27_spill] sm:$0xff]  ;;  %v2128_v23 = vld [vmem:[#allocation28_spill] sm:$0xff] }
 0x180   : > { %1067 = vmatprep.subr.mxu0 %v1699_v24  ;;  %1138 = vmatprep.subr.mxu1 %v1701_v25  ;;  %v2129_v24 = vld [vmem:[#allocation29_spill] sm:$0xff]  ;;  %v2130_v25 = vld [vmem:[#allocation30_spill] sm:$0xff] }
 0x181   : > { %1068 = vmatpush1.msra.mxu0 %v1705_v26  ;;  %1139 = vmatpush1.msra.mxu1 %v1707_v27  ;;  %v2131_v26 = vld [vmem:[#allocation31_spill] sm:$0xff]  ;;  %v2132_v27 = vld [vmem:[#allocation32_spill] sm:$0xff] }
 0x182   : > { %1069 = vmatprep.subr.mxu0 %v1711_v28  ;;  %1140 = vmatprep.subr.mxu1 %v1713_v29  ;;  %v2133_v28 = vld [vmem:[#allocation33_spill] sm:$0xff]  ;;  %v2134_v29 = vmov 0.0  }
 0x183   : > { %1070 = vmatpush1.msra.mxu0 %v1717_v30  ;;  %1141 = vmatpush1.msra.mxu1 %v1719_v31  ;;  %v2135_v30 = vld [vmem:[#allocation34_spill] sm:$0xff] }
 0x184   : > { %1071 = vmatprep.subr.mxu0 %v1723_v32  ;;  %1142 = vmatprep.subr.mxu1 %v1725_v33  ;;  %v2136_v32 = vld [vmem:[#allocation35_spill] sm:$0xff] }
 0x185   : > { %1072 = vmatpush1.msra.mxu0 %v1729_v34  ;;  %1143 = vmatpush1.msra.mxu1 %v1731_v35 }
 0x186   : > { %1073 = vmatprep.subr.mxu0 %v1735_v36  ;;  %1144 = vmatprep.subr.mxu1 %v1737_v37  ;;  %v2137_v36 = vld [vmem:[#allocation36_spill] sm:$0xff] }
 0x187   : > { %1074 = vmatpush1.msra.mxu0 %v1741_v38  ;;  %1145 = vmatpush1.msra.mxu1 %v1743_v39 }
 0x188   : > { %1075 = vmatprep.subr.mxu0 %v1747_v40  ;;  %1146 = vmatprep.subr.mxu1 %v1749_v41  ;;  %v2138_v41 = vld [vmem:[#allocation39_spill] sm:$0xff] }
 0x189   : > { %1076 = vmatpush1.msra.mxu0 %v1753_v42  ;;  %1147 = vmatpush1.msra.mxu1 %v1755_v43  ;;  %v2139_v43 = vld [vmem:[#allocation37_spill] sm:$0xff] }
 0x18a   : > { %1077 = vmatprep.subr.mxu0 %v2111_v6  ;;  %1148 = vmatprep.subr.mxu1 %v2112_v7  ;;  %v2141_v7 = vld [vmem:[#allocation40_spill] sm:$0xff] }
 0x18b   : > { %1078 = vmatpush1.msra.mxu0 %v2113_v8  ;;  %1149 = vmatpush1.msra.mxu1 %v2114_v9 }
 0x18c   : > { %1079 = vmatprep.subr.mxu0 %v2115_v10  ;;  %1150 = vmatprep.subr.mxu1 %v2116_v11  ;;  %v2142_v11 = vld [vmem:[#allocation42_spill] sm:$0xff] }
 0x18d   : > { %1080 = vmatpush1.msra.mxu0 %v2117_v12  ;;  %1151 = vmatpush1.msra.mxu1 %v2118_v13  ;;  %v2143_v13 = vld [vmem:[#allocation41_spill] sm:$0xff] }
 0x18e   : > { %1081 = vmatprep.subr.mxu0 %v2119_v14  ;;  %1152 = vmatprep.subr.mxu1 %v2120_v15 }
 0x18f   : > { %1082 = vmatpush1.msra.mxu0 %v2121_v16  ;;  %1153 = vmatpush1.msra.mxu1 %v2122_v17 }
 0x190   : > { %1083 = vmatprep.subr.mxu0 %v2123_v18  ;;  %1154 = vmatprep.subr.mxu1 %v2124_v19 }
 0x191   : > { %1084 = vmatpush1.msra.mxu0 %v2125_v20  ;;  %1155 = vmatpush1.msra.mxu1 %v2126_v21 }
 0x192   : > { %1085 = vmatprep.subr.mxu0 %v2127_v22  ;;  %1156 = vmatprep.subr.mxu1 %v2128_v23  ;;  %v1234_v23 = vstv %s1233_s20 }
 0x193   : > { %1086 = vmatpush1.msra.mxu0 %v2129_v24  ;;  %1157 = vmatpush1.msra.mxu1 %v2130_v25  ;;  %vm1235_vm2 = vcmp.eq.s32.totalorder %v1234_v23, 1 }
 0x194   : > { %1087 = vmatprep.subr.mxu0 %v2131_v26  ;;  %1158 = vmatprep.subr.mxu1 %v2132_v27 }
 0x195   : > { %1088 = vmatpush1.msra.mxu0 %v2133_v28  ;;  %1121 = vmatprep.mubr.f32.mxu0 %v2134_v29 }
 0x196   : > { %1159 = vmatpush1.msra.mxu1 %v2135_v30  ;;  %1192 = vmatprep.mubr.f32.mxu1 %v2134_v29 }
 0x236   : > { %v933_v31 = vpop.f32.mrf.mxu0  ;;  %v1004_v38 = vpop.f32.mrf.mxu1 }
 0x237   : > { %v1009_v33 = vadd.f32 %v933_v31, %v2136_v32  ;;  %v1011_v62 = vadd.f32 %v1004_v38, %v2139_v43 }
 0x238   : > { %v935_v34 = vpop.f32.mrf.mxu0  ;;  %v1006_v40 = vpop.f32.mrf.mxu1 }
 0x239   : > { %v1354_v35 = vmul.f32 -1.442695, %v1009_v33  ;;  %v1010_v37 = vadd.f32 %v935_v34, %v2137_v36  ;;  %v1012_v42 = vadd.f32 %v1006_v40, %v2138_v41 }
 0x23b   : > { %1413 = vpow2.f32 %v1354_v35  ;;  %v1355_v39 = vmul.f32 -1.442695, %v1010_v37  ;;  %v1356_v61 = vmul.f32 -1.442695, %v1012_v42 }
 0x23d   : > { %1415 = vpow2.f32 %v1355_v39 }
 0x23e   : > { %1417 = vtanh.f32 %v1011_v62 }
 0x23f   : > { %1419 = vpow2.f32 %v1356_v61 }
 0x248   : > { %v1414_v54 = vpop.eup %1413 }
 0x249   : > { %v1016_v48 = vadd.f32 1.0, %v1414_v54 }
 0x24a   : > { %v1416_v51 = vpop.eup %1415 }
 0x24b   : > { %1421 = vrcp.f32 %v1016_v48  ;;  %v1022_v47 = vadd.f32 1.0, %v1416_v51  ;;  %v1418_v45 = vpop.eup %1417 }
 0x24c   : > { %v1420_v4 = vpop.eup %1419 }
 0x24d   : > { %1423 = vrcp.f32 %v1022_v47  ;;  %v1029_v44 = vadd.f32 1.0, %v1420_v4 }
 0x24f   : > { %1425 = vrcp.f32 %v1029_v44 }
 0x258   : > { %v1422_v56 = vpop.eup %1421 }
 0x259   : > { %v1034_v50 = vmul.f32 %v1422_v56, %v1418_v45 }
 0x25a   : > { %v1424_v52 = vpop.eup %1423 }
 0x25b   : > { %v1033_v59 = vmul.f32 %v1424_v52, %v1936_v1 }
 0x25c   : > { %v1426_v3 = vpop.eup %1425 }
 0x25d   : > { %v1035_v60 = vadd.f32 %v1034_v50, %v1033_v59 }
 0x25f   : > { %1427 = vtanh.f32 %v1035_v60  ;;  %v1046_v53 = vsel %vm1045_vm1, %v1035_v60, %v1936_v1 }
 0x26c   : > { %v1428_v49 = vpop.eup %1427 }
 0x26d   : > { %v1037_v46 = vmul.f32 %v1428_v49, %v1426_v3 }
 0x26f   : > { %1357 = vst [vmem:[%s1630_s9 + $0x8] sm:$0xff] %v1037_v46  ;;  %v1049_v55 = vsel %vm1045_vm1, %v1037_v46, %v1940_v5 }
 0x270   : > { %1122 = vmatmul.mubr.f32.vlgmr.msra.gmra.mxu0 %v1049_v55  ;;  %1193 = vmatmul.mubr.f32.vlgmr.msra.gmra.mxu1 %v1049_v55 }
 0x330   : > { %v1123_v63 = vpop.f32.mrf.mxu0  ;;  %v1194_v9 = vpop.f32.mrf.mxu1 }
 0x331   : > { %v1199_v0 = vadd.f32 %v1123_v63, %v2140_v2  ;;  %v1201_v14 = vadd.f32 %v1194_v9, %v2143_v13 }
 0x332   : > { %v1125_v57 = vpop.f32.mrf.mxu0  ;;  %v1196_v1 = vpop.f32.mrf.mxu1 }
 0x333   : > { %v1358_v6 = vmul.f32 -1.442695, %v1199_v0  ;;  %v1200_v8 = vadd.f32 %v1125_v57, %v2141_v7  ;;  %v1202_v12 = vadd.f32 %v1196_v1, %v2142_v11 }
 0x335   : > { %1429 = vpow2.f32 %v1358_v6  ;;  %v1359_v10 = vmul.f32 -1.442695, %v1200_v8  ;;  %v1360_v5 = vmul.f32 -1.442695, %v1202_v12 }
 0x337   : > { %1431 = vpow2.f32 %v1359_v10 }
 0x338   : > { %1433 = vtanh.f32 %v1201_v14 }
 0x339   : > { %1435 = vpow2.f32 %v1360_v5 }
 0x342   : > { %v1430_v15 = vpop.eup %1429 }
 0x343   : > { %v1206_v16 = vadd.f32 1.0, %v1430_v15 }
 0x344   : > { %v1432_v17 = vpop.eup %1431 }
 0x345   : > { %1437 = vrcp.f32 %v1206_v16  ;;  %v1212_v18 = vadd.f32 1.0, %v1432_v17  ;;  %v1434_v19 = vpop.eup %1433 }
 0x346   : > { %v1436_v20 = vpop.eup %1435 }
 0x347   : > { %1439 = vrcp.f32 %v1212_v18  ;;  %v1219_v25 = vadd.f32 1.0, %v1436_v20 }
 0x349   : > { %1441 = vrcp.f32 %v1219_v25 }
 0x352   : > { %v1438_v21 = vpop.eup %1437 }
 0x353   : > { %v1224_v22 = vmul.f32 %v1438_v21, %v1434_v19 }
 0x354   : > { %v1440_v24 = vpop.eup %1439 }
 0x355   : > { %v1223_v26 = vmul.f32 %v1440_v24, %v1046_v53 }
 0x356   : > { %v1442_v29 = vpop.eup %1441 }
 0x357   : > { %v1225_v27 = vadd.f32 %v1224_v22, %v1223_v26 }
 0x359   : > { %1443 = vtanh.f32 %v1225_v27  ;;  %v1236_v28 = vsel %vm1235_vm2, %v1225_v27, %v1046_v53 }
 0x35a   : > { %1237 = vst [vmem:[#allocation3] sm:$0xff] %v1236_v28 }
 0x366   : > { %v1444_v30 = vpop.eup %1443  ;;  %1244 = sbr.rel (%p1362_p7) target bundleno = 883 (0x373), region = 60 }
 0x367   : > { %v1227_v31 = vmul.f32 %v1444_v30, %v1442_v29 }
 0x369   : > { %1361 = vst [vmem:[%s1630_s9 + $0x10] sm:$0xff] %v1227_v31  ;;  %v1239_v32 = vsel %vm1235_vm2, %v1227_v31, %v1049_v55 }
 0x36a   : > { %1240 = vst [vmem:[#allocation2] sm:$0xff] %v1239_v32 }
 0x36b   : > { %v1247_v34 = vld [vmem:[#allocation3] sm:$0xff] }
 0x36c   : > { %1248 = vst [vmem:[%s2041_s8] sm:$0xff] %v1247_v34 }
 0x371   : > { %v1245_v33 = vld [vmem:[#allocation2] sm:$0xff] }
 0x372   : > { %1246 = vst [vmem:[%s2040_s7] sm:$0xff] %v1245_v33 }
 0x373 PF: > { %s21_s27 = sadd.s32 1, %s1511_s27  }
 0x374   : > { %p18_p12 = scmp.ge.s32.totalorder %s21_s27, 5  }
 0x376   :  { %20 = sbr.rel (!%p18_p12) target bundleno = 2 (0x2), region = 111 }
 0x37b   :  { %1283 = vsyncpa [#allocation6], 1 }
 0x37c   :  { %1285 = vsyncpa [#allocation6 + $0x1], 1 }
 0x37d   :  { %1286 = vsyncpa [#allocation8], 1 }

</bundles_post_ra>
